<compile_context>
chip_gen: v5e
topology: v5e:2x2
jax: 0.10.0
libtpu: 0.0.40
codegen_flags: <defaults>
</compile_context>

<pallas_src>
import functools

import jax
import jax.numpy as jnp
from jax.experimental import pallas as pl
from jax.experimental.pallas import tpu as pltpu

_COMPUTE = jnp.bfloat16            # MXU operand / inter-kernel activation dtype
_VMEM_LIMIT = 64 * 1024 * 1024     # working sets kept < ~24 MiB (v7x-safe)

_TM_MATMUL = 1024                  # row tile (tokens) for the fused matmuls
_TK_MATMUL = 2048                  # only K-tile when K is huge and divides
_TM_LN = 2048                      # row tile for standalone LayerNorm


def _round_up(v, m):
    return -(-v // m) * m


# ----------------------------------------------------------------------------
# fused tiled matmul:  out = [LN_N]( [LN_K](x) @ w + b ) [+ residual]
# ----------------------------------------------------------------------------
def _fused_matmul(x, w, b, *, ln_in=None, ln_out=None, residual=None,
                  eps_in=1e-6, eps_out=1e-5, out_dtype=_COMPUTE):
    """Tiled / pipelined matmul with optional fused LayerNorm prologue (over
    K), LayerNorm epilogue (over N) and residual add.  bf16 MXU operands, f32
    VMEM accumulator, f32 epilogue.  Only the token (row) axis is tiled; a
    ragged last row tile is handled by Pallas (no host pad / slice)."""
    M, K = x.shape
    Kw, N = w.shape
    assert K == Kw

    tm = M if M <= _TM_MATMUL else _TM_MATMUL            # multiple of 8 if tiled
    # Never K-tile with a ragged tail: out-of-bounds garbage would enter the
    # accumulation.  (SegFormer K <= 2048 so nk == 1 in practice.)
    tk = K if (ln_in is not None or K <= _TK_MATMUL or K % _TK_MATMUL != 0) \
        else _TK_MATMUL
    tn = N                                               # full output row
    nm = pl.cdiv(M, tm)
    nk = pl.cdiv(K, tk)

    has_ln_in = ln_in is not None
    has_ln_out = ln_out is not None
    has_res = residual is not None
    assert (not has_ln_in) or nk == 1

    x = x.astype(_COMPUTE)                               # no-op when pre-cast
    w = w.astype(_COMPUTE)
    b2 = b.reshape(1, N).astype(jnp.float32)

    inputs = [x, w, b2]
    in_specs = [
        pl.BlockSpec((tm, tk), lambda i, k: (i, k)),
        pl.BlockSpec((tk, tn), lambda i, k: (k, 0)),
        pl.BlockSpec((1, tn), lambda i, k: (0, 0)),
    ]
    if has_ln_in:
        inputs += [ln_in[0].reshape(1, K).astype(jnp.float32),
                   ln_in[1].reshape(1, K).astype(jnp.float32)]
        in_specs += [pl.BlockSpec((1, tk), lambda i, k: (0, k))] * 2
    if has_ln_out:
        inputs += [ln_out[0].reshape(1, N).astype(jnp.float32),
                   ln_out[1].reshape(1, N).astype(jnp.float32)]
        in_specs += [pl.BlockSpec((1, tn), lambda i, k: (0, 0))] * 2
    if has_res:
        inputs.append(residual.astype(_COMPUTE))
        in_specs.append(pl.BlockSpec((tm, tn), lambda i, k: (i, 0)))

    def kernel(x_ref, w_ref, b_ref, *rest):
        pos = 0
        if has_ln_in:
            gin_ref, bin_ref = rest[pos], rest[pos + 1]
            pos += 2
        if has_ln_out:
            gout_ref, bout_ref = rest[pos], rest[pos + 1]
            pos += 2
        if has_res:
            res_ref = rest[pos]
            pos += 1
        o_ref, acc_ref = rest[pos], rest[pos + 1]

        k = pl.program_id(1)

        @pl.when(k == 0)
        def _init():
            acc_ref[...] = jnp.zeros_like(acc_ref)

        xv = x_ref[...]
        if has_ln_in:                                    # LayerNorm prologue
            xf = xv.astype(jnp.float32)
            mu = jnp.mean(xf, axis=-1, keepdims=True)
            xc = xf - mu
            var = jnp.mean(xc * xc, axis=-1, keepdims=True)
            xv = (xc * jax.lax.rsqrt(var + eps_in) * gin_ref[...] +
                  bin_ref[...]).astype(_COMPUTE)
        acc_ref[...] += jnp.dot(xv, w_ref[...],
                                preferred_element_type=jnp.float32)

        @pl.when(k == nk - 1)
        def _epilogue():
            acc = acc_ref[...] + b_ref[...]
            if has_ln_out:                               # LayerNorm epilogue
                mu = jnp.mean(acc, axis=-1, keepdims=True)
                xc = acc - mu
                var = jnp.mean(xc * xc, axis=-1, keepdims=True)
                acc = xc * jax.lax.rsqrt(var + eps_out) * gout_ref[...] \
                    + bout_ref[...]
            if has_res:                                  # fused residual add
                acc = acc + res_ref[...].astype(jnp.float32)
            o_ref[...] = acc.astype(o_ref.dtype)

    return pl.pallas_call(
        kernel,
        out_shape=jax.ShapeDtypeStruct((M, N), out_dtype),
        grid=(nm, nk),
        in_specs=in_specs,
        out_specs=pl.BlockSpec((tm, tn), lambda i, k: (i, 0)),
        scratch_shapes=[pltpu.VMEM((tm, tn), jnp.float32)],
        compiler_params=pltpu.CompilerParams(
            dimension_semantics=("parallel", "arbitrary"),
            vmem_limit_bytes=_VMEM_LIMIT),
    )(*inputs)


# ----------------------------------------------------------------------------
# standalone (tiled) LayerNorm over the channel axis of (M, C) tokens
# ----------------------------------------------------------------------------
def _layernorm(x2d, gamma, beta, eps, out_dtype=_COMPUTE):
    M, C = x2d.shape
    tm = M if M <= _TM_LN else _TM_LN
    g = gamma.reshape(1, C).astype(jnp.float32)
    bt = beta.reshape(1, C).astype(jnp.float32)

    def kernel(x_ref, g_ref, b_ref, o_ref):
        xf = x_ref[...].astype(jnp.float32)
        mu = jnp.mean(xf, axis=-1, keepdims=True)
        xc = xf - mu
        var = jnp.mean(xc * xc, axis=-1, keepdims=True)
        o_ref[...] = (xc * jax.lax.rsqrt(var + eps) * g_ref[...] +
                      b_ref[...]).astype(o_ref.dtype)

    return pl.pallas_call(
        kernel,
        out_shape=jax.ShapeDtypeStruct((M, C), out_dtype),
        grid=(pl.cdiv(M, tm),),
        in_specs=[
            pl.BlockSpec((tm, C), lambda i: (i, 0)),
            pl.BlockSpec((1, C), lambda i: (0, 0)),
            pl.BlockSpec((1, C), lambda i: (0, 0)),
        ],
        out_specs=pl.BlockSpec((tm, C), lambda i: (i, 0)),
        compiler_params=pltpu.CompilerParams(
            dimension_semantics=("parallel",),
            vmem_limit_bytes=_VMEM_LIMIT),
    )(x2d.astype(_COMPUTE), g, bt)


# ----------------------------------------------------------------------------
# multi-head attention core: heads stay on the channel (lane) axis
# ----------------------------------------------------------------------------
def _attention_core(q_arr, kv_arr, *, C, num_heads, scale, k_off, v_off):
    """softmax(q_h k_h^T * scale) @ v_h per head.

    q_arr:  (B, Nq, Cq) -- query channels are q_arr[..., :C] (Cq may be 3C
            when a packed qkv tensor is passed in the sr_ratio==1 path).
    kv_arr: (B, Nk, Ckv) -- k at channel offset k_off, v at v_off.
    Heads are contiguous C//num_heads channel slices (no host transposes);
    each head's result is stored directly into its output channel slice.
    """
    B, Nq, Cq = q_arr.shape
    _, Nk, Ckv = kv_arr.shape
    dh = C // num_heads
    tq = Nq if Nq <= 512 else 512          # ragged last q tile handled by Pallas
    # TODO(synk): flash-style Nk tiling (online softmax) for very long key
    # sequences, and head-batched score/value matmuls for the 256-wide
    # v6e/v7x MXU if attention ever shows up MXU-bound.

    def kernel(q_ref, kv_ref, o_ref):
        qf = q_ref[0]
        if Cq != C:
            qf = qf[:, :C]
        kvf = kv_ref[0]
        for h in range(num_heads):
            qh = qf[:, h * dh:(h + 1) * dh]
            kh = kvf[:, k_off + h * dh:k_off + (h + 1) * dh]
            vh = kvf[:, v_off + h * dh:v_off + (h + 1) * dh]
            s = jax.lax.dot_general(qh, kh, (((1,), (1,)), ((), ())),
                                    preferred_element_type=jnp.float32) * scale
            s = s - jnp.max(s, axis=-1, keepdims=True)
            p = jnp.exp(s)
            p = p / jnp.sum(p, axis=-1, keepdims=True)   # exact division
            oh = jnp.dot(p.astype(_COMPUTE), vh,
                         preferred_element_type=jnp.float32)
            o_ref[0, :, h * dh:(h + 1) * dh] = oh.astype(o_ref.dtype)

    return pl.pallas_call(
        kernel,
        out_shape=jax.ShapeDtypeStruct((B, Nq, C), _COMPUTE),
        grid=(B, pl.cdiv(Nq, tq)),
        in_specs=[
            pl.BlockSpec((1, tq, Cq), lambda b, i: (b, i, 0)),
            pl.BlockSpec((1, Nk, Ckv), lambda b, i: (b, 0, 0)),
        ],
        out_specs=pl.BlockSpec((1, tq, C), lambda b, i: (b, i, 0)),
        compiler_params=pltpu.CompilerParams(
            dimension_semantics=("parallel", "parallel"),
            vmem_limit_bytes=_VMEM_LIMIT),
    )(q_arr, kv_arr)


# ----------------------------------------------------------------------------
# 3x3 depthwise conv + bias + GELU, tiled over (batch, channel groups),
# accumulated over 8-row output strips (small live f32 accumulator)
# ----------------------------------------------------------------------------
def _dwconv_gelu(x_nhwc, w, b):
    B, H, W, C = x_nhwc.shape
    if C % 256 == 0:
        tc = 256
    elif C % 128 == 0:
        tc = 128
    else:
        tc = C
    # TODO(synk): handle the 1-pixel halo inside the kernel (masked border
    # taps) instead of the HBM jnp.pad, and use pltpu.roll for the dx-shifted
    # taps so they run on the XLU.
    xp = jnp.pad(x_nhwc.astype(_COMPUTE), ((0, 0), (1, 1), (1, 1), (0, 0)))
    wf = w.astype(jnp.float32)
    bf = b.reshape(1, C).astype(jnp.float32)

    th = H if H < 8 else 8
    n_strips = -(-H // th)

    def kernel(x_ref, w_ref, b_ref, o_ref):
        xi_full = x_ref[0]                               # (H+2, W+2, tc) bf16
        wv = w_ref[...]                                  # (3, 3, tc) f32
        bv = b_ref[0]                                    # (tc,)      f32
        for s in range(n_strips):                        # static strip loop
            r0 = s * th
            rows = min(th, H - r0)
            xi = xi_full[r0:r0 + rows + 2].astype(jnp.float32)
            acc = jnp.zeros((rows, W, tc), jnp.float32)
            for dy in range(3):
                for dx in range(3):
                    acc = acc + xi[dy:dy + rows, dx:dx + W, :] * wv[dy, dx, :]
            acc = acc + bv
            # TODO(synk): PyTorch nn.GELU() default is exact erf; tanh approx.
            o_ref[0, r0:r0 + rows] = jax.nn.gelu(
                acc, approximate=True).astype(o_ref.dtype)

    return pl.pallas_call(
        kernel,
        out_shape=jax.ShapeDtypeStruct((B, H, W, C), _COMPUTE),
        grid=(B, C // tc),
        in_specs=[
            pl.BlockSpec((1, H + 2, W + 2, tc), lambda bb, c: (bb, 0, 0, c)),
            pl.BlockSpec((3, 3, tc), lambda bb, c: (0, 0, c)),
            pl.BlockSpec((1, tc), lambda bb, c: (0, c)),
        ],
        out_specs=pl.BlockSpec((1, H, W, tc), lambda bb, c: (bb, 0, 0, c)),
        compiler_params=pltpu.CompilerParams(
            dimension_semantics=("parallel", "parallel"),
            vmem_limit_bytes=_VMEM_LIMIT),
    )(xp, wf, bf)


# ----------------------------------------------------------------------------
# plain-JAX glue
# ----------------------------------------------------------------------------
def _im2col(x_nhwc, ksize, stride, pad):
    """Overlapping patch extraction for the patch-embed conv (columns ordered
    (dy, dx, c_in) to match the pre-flattened conv weights).
    TODO(synk): replace with a Pallas kernel using strided loads so the
    overlapping patches are never materialized in HBM for large inputs."""
    B, H, W, Cin = x_nhwc.shape
    xp = jnp.pad(x_nhwc, ((0, 0), (pad, pad), (pad, pad), (0, 0)))
    Ho = (H + 2 * pad - ksize) // stride + 1
    Wo = (W + 2 * pad - ksize) // stride + 1
    cols = []
    for dy in range(ksize):
        for dx in range(ksize):
            cols.append(xp[:, dy:dy + stride * Ho:stride,
                           dx:dx + stride * Wo:stride, :])
    cols = jnp.stack(cols, axis=3)                       # (B, Ho, Wo, k*k, C)
    return cols.reshape(B, Ho * Wo, ksize * ksize * Cin), Ho, Wo


def _space_to_depth(x_tok, B, H, W, C, sr):
    """sr-reduction conv has kernel_size == stride, so it is exactly a reshape
    (space-to-depth, (dy, dx, c) channel order) followed by a matmul.
    TODO(synk): read the sr*sr token groups via the sr matmul's index_map
    instead of this XLA transpose."""
    assert H % sr == 0 and W % sr == 0
    x = x_tok.reshape(B, H // sr, sr, W // sr, sr, C)
    x = jnp.transpose(x, (0, 1, 3, 2, 4, 5))
    return x.reshape(B * (H // sr) * (W // sr), sr * sr * C)


def _block_forward(x2, B, H, W, C, p, num_heads, sr_ratio, eps_block=1e-6):
    """One transformer block on (B*N, C) tokens (compute dtype)."""
    N = H * W
    dh = C // num_heads
    scale = dh ** -0.5

    # ---- efficient self-attention ------------------------------------------
    if sr_ratio > 1:
        # TODO(synk): fold norm1 into the sr matmul as a grouped per-C LN
        # prologue to remove this standalone LN HBM pass.
        xn = _layernorm(x2, p["n1_g"], p["n1_b"], eps_block)
        q = _fused_matmul(xn, p["q_w"], p["q_b"])
        xr = _space_to_depth(xn, B, H, W, C, sr_ratio)
        x_ = _fused_matmul(xr, p["sr_w"], p["sr_b"],
                           ln_out=(p["srn_g"], p["srn_b"]), eps_out=1e-5)
        kv = _fused_matmul(x_, p["kv_w"], p["kv_b"])
        Nk = (H // sr_ratio) * (W // sr_ratio)
        o = _attention_core(q.reshape(B, N, C), kv.reshape(B, Nk, 2 * C),
                            C=C, num_heads=num_heads, scale=scale,
                            k_off=0, v_off=C)
    else:
        # one fused qkv matmul: reads the (B*N, C) activation and evaluates
        # the norm1 prologue once instead of twice; the packed (B,N,3C)
        # result feeds the attention kernel directly (no host split).
        qkv = _fused_matmul(x2, p["qkv_w"], p["qkv_b"],
                            ln_in=(p["n1_g"], p["n1_b"]), eps_in=eps_block)
        qkv3 = qkv.reshape(B, N, 3 * C)
        o = _attention_core(qkv3, qkv3, C=C, num_heads=num_heads, scale=scale,
                            k_off=C, v_off=2 * C)

    x2 = _fused_matmul(o.reshape(B * N, C), p["proj_w"], p["proj_b"],
                       residual=x2)                      # residual add fused

    # ---- Mix-FFN (norm2 fused into fc1, residual fused into fc2) -----------
    hidden = p["fc1_w"].shape[1]
    h = _fused_matmul(x2, p["fc1_w"], p["fc1_b"],
                      ln_in=(p["n2_g"], p["n2_b"]), eps_in=eps_block)
    h = _dwconv_gelu(h.reshape(B, H, W, hidden), p["dw_w"], p["dw_b"])
    x2 = _fused_matmul(h.reshape(B * N, hidden), p["fc2_w"], p["fc2_b"],
                       residual=x2)
    return x2


def mix_transformer_stage_forward(x_nchw, params, cfg):
    """Full stage forward.  Input NCHW, output NCHW (b, embed_dim, H', W').
    NOTE: official SegFormer uses eps=1e-6 for block/stage LayerNorms and the
    PyTorch default 1e-5 for the patch-embed / sr LayerNorms; kept as such."""
    B = x_nchw.shape[0]
    C = cfg["embed_dim"]
    x = jnp.transpose(x_nchw, (0, 2, 3, 1)).astype(_COMPUTE)     # NHWC, bf16

    # OverlapPatchEmbed: conv via im2col + matmul with the LayerNorm fused
    # into the matmul epilogue.  pe_w rows are zero-padded to a multiple of
    # 128 at init; pad the cols' K dim to match (fuses with the im2col).
    cols, Ho, Wo = _im2col(x, cfg["patch_size"], cfg["stride"], cfg["padding"])
    N = Ho * Wo
    K = cols.shape[-1]
    Kp = params["pe_w"].shape[0]
    if Kp != K:
        cols = jnp.pad(cols, ((0, 0), (0, 0), (0, Kp - K)))
    tok = _fused_matmul(cols.reshape(B * N, Kp), params["pe_w"], params["pe_b"],
                        ln_out=(params["pe_ln_g"], params["pe_ln_b"]),
                        eps_out=1e-5)                            # (B*N, C)

    for bp in params["blocks"]:
        tok = _block_forward(tok, B, Ho, Wo, C, bp,
                             cfg["num_heads"], cfg["sr_ratio"])

    # final stage LayerNorm (f32 output), then rearrange 'b (h w) c -> b c h w'
    tok = _layernorm(tok, params["norm_g"], params["norm_b"], 1e-6,
                     out_dtype=jnp.float32)
    tok = tok.reshape(B, Ho, Wo, C)
    return jnp.transpose(tok, (0, 3, 1, 2))


# ----------------------------------------------------------------------------
# deterministic parameter init (synthetic; shapes follow SegFormer module
# defs).  Weights are pre-cast to their kernel dtypes (bf16 matmul weights,
# f32 LN / bias / depthwise-conv vectors) so no per-call casts are needed.
# ----------------------------------------------------------------------------
def init_params(key, cfg):
    keys = iter(jax.random.split(key, 256))

    def nrm(shape, scale=0.05, dtype=_COMPUTE):
        return (scale * jax.random.normal(next(keys), shape, jnp.float32)
                ).astype(dtype)

    Cin, C = cfg["in_chans"], cfg["embed_dim"]
    ps, sr = cfg["patch_size"], cfg["sr_ratio"]
    hidden = C * cfg["mlp_ratio"]

    # Patch-embed conv weight pre-flattened to rows (dy, dx, c_in), cols c_out,
    # zero-padded on the input axis to a multiple of 128 (MXU/lane alignment).
    # NOTE: real PyTorch Conv2d weights (C_out, C_in, kH, kW) must be permuted
    # to (kH, kW, C_in, C_out), flattened, then zero-padded the same way.
    K_pe = ps * ps * Cin
    K_pad = _round_up(K_pe, 128)
    pe_w = jnp.pad(nrm((K_pe, C)), ((0, K_pad - K_pe), (0, 0)))

    params = {
        "pe_w": pe_w,
        "pe_b": nrm((C,), dtype=jnp.float32),
        "pe_ln_g": jnp.ones((C,), jnp.float32),
        "pe_ln_b": jnp.zeros((C,), jnp.float32),
        "norm_g": jnp.ones((C,), jnp.float32),
        "norm_b": jnp.zeros((C,), jnp.float32),
        "blocks": [],
    }
    for _ in range(cfg["depth"]):
        p = {
            "n1_g": jnp.ones((C,), jnp.float32),
            "n1_b": jnp.zeros((C,), jnp.float32),
            "proj_w": nrm((C, C)), "proj_b": nrm((C,), dtype=jnp.float32),
            "n2_g": jnp.ones((C,), jnp.float32),
            "n2_b": jnp.zeros((C,), jnp.float32),
            "fc1_w": nrm((C, hidden)), "fc1_b": nrm((hidden,), dtype=jnp.float32),
            "dw_w": nrm((3, 3, hidden), dtype=jnp.float32),
            "dw_b": nrm((hidden,), dtype=jnp.float32),
            "fc2_w": nrm((hidden, C)), "fc2_b": nrm((C,), dtype=jnp.float32),
        }
        if sr > 1:
            p["q_w"] = nrm((C, C))
            p["q_b"] = nrm((C,), dtype=jnp.float32)
            p["kv_w"] = nrm((C, 2 * C))
            p["kv_b"] = nrm((2 * C,), dtype=jnp.float32)
            p["sr_w"] = nrm((sr * sr * C, C))   # sr conv weight pre-flattened
            p["sr_b"] = nrm((C,), dtype=jnp.float32)
            p["srn_g"] = jnp.ones((C,), jnp.float32)
            p["srn_b"] = jnp.zeros((C,), jnp.float32)
        else:
            # q / kv Linear weights concatenated once at init -> single fused
            # qkv projection per block (columns ordered [q | k | v]).
            p["qkv_w"] = nrm((C, 3 * C))
            p["qkv_b"] = nrm((3 * C,), dtype=jnp.float32)
        params["blocks"].append(p)
    return params


# ----------------------------------------------------------------------------
if __name__ == "__main__":
    key = jax.random.PRNGKey(0)
    kx1, kp1, kx2, kp2 = jax.random.split(key, 4)

    # config 1: sr_ratio = 2 (spatial-reduction attention path)
    cfg1 = dict(in_chans=3, embed_dim=32, patch_size=7, stride=4, padding=3,
                depth=2, num_heads=2, sr_ratio=2, mlp_ratio=4)
    x1 = jax.random.normal(kx1, (2, 3, 16, 16), jnp.float32)      # NCHW
    params1 = init_params(kp1, cfg1)
    fwd1 = jax.jit(functools.partial(mix_transformer_stage_forward,
                                     params=params1, cfg=cfg1))
    out1 = jax.block_until_ready(fwd1(x1))
    assert out1.shape == (2, cfg1["embed_dim"], 4, 4), out1.shape
    assert bool(jnp.all(jnp.isfinite(out1)))

    # config 2: sr_ratio = 1 (fused qkv projection + packed attention path)
    cfg2 = dict(in_chans=3, embed_dim=32, patch_size=3, stride=2, padding=1,
                depth=1, num_heads=2, sr_ratio=1, mlp_ratio=4)
    x2 = jax.random.normal(kx2, (2, 3, 8, 8), jnp.float32)
    params2 = init_params(kp2, cfg2)
    fwd2 = jax.jit(functools.partial(mix_transformer_stage_forward,
                                     params=params2, cfg=cfg2))
    out2 = jax.block_until_ready(fwd2(x2))
    assert out2.shape == (2, cfg2["embed_dim"], 4, 4), out2.shape
    assert bool(jnp.all(jnp.isfinite(out2)))

    print("KERNEL_OK")
</pallas_src>

<mosaic_0001>
module attributes {stable_mosaic.version = 11 : i64} {
  func.func @kernel(%arg0: i32, %arg1: i32, %arg2: memref<32x256xbf16, #tpu.memory_space<vmem>>, %arg3: memref<256x32xbf16, #tpu.memory_space<vmem>>, %arg4: memref<1x32xf32, #tpu.memory_space<vmem>>, %arg5: memref<1x32xf32, #tpu.memory_space<vmem>>, %arg6: memref<1x32xf32, #tpu.memory_space<vmem>>, %arg7: memref<32x32xbf16, #tpu.memory_space<vmem>>, %arg8: memref<32x32xf32, #tpu.memory_space<vmem>>) attributes {dimension_semantics = [#tpu.dimension_semantics<parallel>, #tpu.dimension_semantics<arbitrary>], iteration_bounds = array<i64: 1, 1>, scalar_prefetch = 0 : i64, scratch_operands = 1 : i64, tpu.core_type = #tpu.core_type<tc>, window_params = [{transform_indices = @transform_0, window_bounds = array<i64: 32, 256>}, {transform_indices = @transform_1, window_bounds = array<i64: 256, 32>}, {pipeline_mode = #tpu.pipeline_mode<synchronous>, transform_indices = @transform_2, window_bounds = array<i64: 1, 32>}, {pipeline_mode = #tpu.pipeline_mode<synchronous>, transform_indices = @transform_3, window_bounds = array<i64: 1, 32>}, {pipeline_mode = #tpu.pipeline_mode<synchronous>, transform_indices = @transform_4, window_bounds = array<i64: 1, 32>}, {transform_indices = @transform_5, window_bounds = array<i64: 32, 32>}]} {
    %c0_i32 = arith.constant 0 : i32
    %0 = arith.cmpi eq, %arg1, %c0_i32 : i32
    %1 = arith.extui %0 : i1 to i32
    %c0_i32_0 = arith.constant 0 : i32
    %2 = arith.cmpi ne, %1, %c0_i32_0 : i32
    scf.if %2 {
      %cst_10 = arith.constant 0.000000e+00 : f32
      %12 = vector.broadcast %cst_10 : f32 to vector<32x32xf32>
      %c0_11 = arith.constant 0 : index
      %c0_12 = arith.constant 0 : index
      %13 = vector.load %arg8[%c0_11, %c0_12] : memref<32x32xf32, #tpu.memory_space<vmem>>, vector<32x32xf32>
      tpu.vector_store %arg8[%c0_11, %c0_12], %12 {strides = array<i32>} : memref<32x32xf32, #tpu.memory_space<vmem>>, vector<32x32xf32>,
    } else {
    }
    %c0 = arith.constant 0 : index
    %c0_1 = arith.constant 0 : index
    %3 = vector.load %arg2[%c0, %c0_1] : memref<32x256xbf16, #tpu.memory_space<vmem>>, vector<32x256xbf16>
    %c0_2 = arith.constant 0 : index
    %c0_3 = arith.constant 0 : index
    %4 = vector.load %arg8[%c0_2, %c0_3] : memref<32x32xf32, #tpu.memory_space<vmem>>, vector<32x32xf32>
    %c0_4 = arith.constant 0 : index
    %c0_5 = arith.constant 0 : index
    %5 = vector.load %arg3[%c0_4, %c0_5] : memref<256x32xbf16, #tpu.memory_space<vmem>>, vector<256x32xbf16>
    %cst = arith.constant dense<0.000000e+00> : vector<32x32xf32>
    %6 = tpu.matmul %3, %5, %cst {dimension_numbers = #tpu.dot_dimension_numbers<[1], [0], [0], [1], [0, 0, 1, 1], [], []>} : vector<32x256xbf16>, vector<256x32xbf16>, vector<32x32xf32> -> vector<32x32xf32>
    %7 = arith.addf %4, %6 : vector<32x32xf32>
    %c0_6 = arith.constant 0 : index
    %c0_7 = arith.constant 0 : index
    %8 = vector.load %arg8[%c0_6, %c0_7] : memref<32x32xf32, #tpu.memory_space<vmem>>, vector<32x32xf32>
    tpu.vector_store %arg8[%c0_6, %c0_7], %7 {strides = array<i32>} : memref<32x32xf32, #tpu.memory_space<vmem>>, vector<32x32xf32>,
    %c0_i32_8 = arith.constant 0 : i32
    %9 = arith.cmpi eq, %arg1, %c0_i32_8 : i32
    %10 = arith.extui %9 : i1 to i32
    %c0_i32_9 = arith.constant 0 : i32
    %11 = arith.cmpi ne, %10, %c0_i32_9 : i32
    scf.if %11 {
      %c0_10 = arith.constant 0 : index
      %c0_11 = arith.constant 0 : index
      %12 = vector.load %arg8[%c0_10, %c0_11] : memref<32x32xf32, #tpu.memory_space<vmem>>, vector<32x32xf32>
      %c0_12 = arith.constant 0 : index
      %c0_13 = arith.constant 0 : index
      %13 = vector.load %arg4[%c0_12, %c0_13] : memref<1x32xf32, #tpu.memory_space<vmem>>, vector<1x32xf32>
      %14 = vector.broadcast %13 : vector<1x32xf32> to vector<32x32xf32>
      %15 = arith.addf %12, %14 : vector<32x32xf32>
      %cst_14 = arith.constant dense<0.000000e+00> : vector<32xf32>
      %16 = vector.multi_reduction <add>, %15, %cst_14 [1] : vector<32x32xf32> to vector<32xf32>
      %17 = vector.shape_cast %16 : vector<32xf32> to vector<32x1xf32>
      %cst_15 = arith.constant 3.200000e+01 : f32
      %18 = vector.broadcast %cst_15 : f32 to vector<32x1xf32>
      %19 = arith.divf %17, %18 : vector<32x1xf32>
      %20 = vector.broadcast %19 : vector<32x1xf32> to vector<32x32xf32>
      %21 = arith.subf %15, %20 : vector<32x32xf32>
      %22 = arith.mulf %21, %21 : vector<32x32xf32>
      %cst_16 = arith.constant dense<0.000000e+00> : vector<32xf32>
      %23 = vector.multi_reduction <add>, %22, %cst_16 [1] : vector<32x32xf32> to vector<32xf32>
      %24 = vector.shape_cast %23 : vector<32xf32> to vector<32x1xf32>
      %cst_17 = arith.constant 3.200000e+01 : f32
      %25 = vector.broadcast %cst_17 : f32 to vector<32x1xf32>
      %26 = arith.divf %24, %25 : vector<32x1xf32>
      %cst_18 = arith.constant 9.99999974E-6 : f32
      %27 = vector.broadcast %cst_18 : f32 to vector<32x1xf32>
      %28 = arith.addf %26, %27 : vector<32x1xf32>
      %29 = math.rsqrt %28 : vector<32x1xf32>
      %30 = vector.broadcast %29 : vector<32x1xf32> to vector<32x32xf32>
      %31 = arith.mulf %21, %30 : vector<32x32xf32>
      %c0_19 = arith.constant 0 : index
      %c0_20 = arith.constant 0 : index
      %32 = vector.load %arg5[%c0_19, %c0_20] : memref<1x32xf32, #tpu.memory_space<vmem>>, vector<1x32xf32>
      %33 = vector.broadcast %32 : vector<1x32xf32> to vector<32x32xf32>
      %34 = arith.mulf %31, %33 : vector<32x32xf32>
      %c0_21 = arith.constant 0 : index
      %c0_22 = arith.constant 0 : index
      %35 = vector.load %arg6[%c0_21, %c0_22] : memref<1x32xf32, #tpu.memory_space<vmem>>, vector<1x32xf32>
      %36 = vector.broadcast %35 : vector<1x32xf32> to vector<32x32xf32>
      %37 = arith.addf %34, %36 : vector<32x32xf32>
      %38 = arith.truncf %37 : vector<32x32xf32> to vector<32x32xbf16>
      %c0_23 = arith.constant 0 : index
      %c0_24 = arith.constant 0 : index
      %39 = vector.load %arg7[%c0_23, %c0_24] : memref<32x32xbf16, #tpu.memory_space<vmem>>, vector<32x32xbf16>
      tpu.vector_store %arg7[%c0_23, %c0_24], %38 {strides = array<i32>} : memref<32x32xbf16, #tpu.memory_space<vmem>>, vector<32x32xbf16>,
    } else {
    }
    return
  }
  func.func @transform_0(%arg0: i32, %arg1: i32) -> (i32, i32) {
    %c0_i32 = arith.constant 0 : i32
    return %arg0, %arg1 : i32, i32
  }
  func.func @transform_1(%arg0: i32, %arg1: i32) -> (i32, i32) {
    %c0_i32 = arith.constant 0 : i32
    %c0_i32_0 = arith.constant 0 : i32
    return %arg1, %c0_i32 : i32, i32
  }
  func.func @transform_2(%arg0: i32, %arg1: i32) -> (i32, i32) {
    %c0_i32 = arith.constant 0 : i32
    %c0_i32_0 = arith.constant 0 : i32
    %c0_i32_1 = arith.constant 0 : i32
    return %c0_i32, %c0_i32_0 : i32, i32
  }
  func.func @transform_3(%arg0: i32, %arg1: i32) -> (i32, i32) {
    %c0_i32 = arith.constant 0 : i32
    %c0_i32_0 = arith.constant 0 : i32
    %c0_i32_1 = arith.constant 0 : i32
    return %c0_i32, %c0_i32_0 : i32, i32
  }
  func.func @transform_4(%arg0: i32, %arg1: i32) -> (i32, i32) {
    %c0_i32 = arith.constant 0 : i32
    %c0_i32_0 = arith.constant 0 : i32
    %c0_i32_1 = arith.constant 0 : i32
    return %c0_i32, %c0_i32_0 : i32, i32
  }
  func.func @transform_5(%arg0: i32, %arg1: i32) -> (i32, i32) {
    %c0_i32 = arith.constant 0 : i32
    %c0_i32_0 = arith.constant 0 : i32
    return %arg0, %c0_i32 : i32, i32
  }
}

module attributes {stable_mosaic.version = 11 : i64} {
  func.func @kernel(%arg0: i32, %arg1: memref<32x32xbf16, #tpu.memory_space<vmem>>, %arg2: memref<1x32xf32, #tpu.memory_space<vmem>>, %arg3: memref<1x32xf32, #tpu.memory_space<vmem>>, %arg4: memref<32x32xbf16, #tpu.memory_space<vmem>>) attributes {dimension_semantics = [#tpu.dimension_semantics<parallel>], iteration_bounds = array<i64: 1>, scalar_prefetch = 0 : i64, scratch_operands = 0 : i64, tpu.core_type = #tpu.core_type<tc>, window_params = [{transform_indices = @transform_0, window_bounds = array<i64: 32, 32>}, {pipeline_mode = #tpu.pipeline_mode<synchronous>, transform_indices = @transform_1, window_bounds = array<i64: 1, 32>}, {pipeline_mode = #tpu.pipeline_mode<synchronous>, transform_indices = @transform_2, window_bounds = array<i64: 1, 32>}, {transform_indices = @transform_3, window_bounds = array<i64: 32, 32>}]} {
    %c0 = arith.constant 0 : index
    %c0_0 = arith.constant 0 : index
    %0 = vector.load %arg1[%c0, %c0_0] : memref<32x32xbf16, #tpu.memory_space<vmem>>, vector<32x32xbf16>
    %1 = arith.extf %0 : vector<32x32xbf16> to vector<32x32xf32>
    %cst = arith.constant dense<0.000000e+00> : vector<32xf32>
    %2 = vector.multi_reduction <add>, %1, %cst [1] : vector<32x32xf32> to vector<32xf32>
    %3 = vector.shape_cast %2 : vector<32xf32> to vector<32x1xf32>
    %cst_1 = arith.constant 3.200000e+01 : f32
    %4 = vector.broadcast %cst_1 : f32 to vector<32x1xf32>
    %5 = arith.divf %3, %4 : vector<32x1xf32>
    %6 = vector.broadcast %5 : vector<32x1xf32> to vector<32x32xf32>
    %7 = arith.subf %1, %6 : vector<32x32xf32>
    %8 = arith.mulf %7, %7 : vector<32x32xf32>
    %cst_2 = arith.constant dense<0.000000e+00> : vector<32xf32>
    %9 = vector.multi_reduction <add>, %8, %cst_2 [1] : vector<32x32xf32> to vector<32xf32>
    %10 = vector.shape_cast %9 : vector<32xf32> to vector<32x1xf32>
    %cst_3 = arith.constant 3.200000e+01 : f32
    %11 = vector.broadcast %cst_3 : f32 to vector<32x1xf32>
    %12 = arith.divf %10, %11 : vector<32x1xf32>
    %cst_4 = arith.constant 9.99999997E-7 : f32
    %13 = vector.broadcast %cst_4 : f32 to vector<32x1xf32>
    %14 = arith.addf %12, %13 : vector<32x1xf32>
    %15 = math.rsqrt %14 : vector<32x1xf32>
    %16 = vector.broadcast %15 : vector<32x1xf32> to vector<32x32xf32>
    %17 = arith.mulf %7, %16 : vector<32x32xf32>
    %c0_5 = arith.constant 0 : index
    %c0_6 = arith.constant 0 : index
    %18 = vector.load %arg2[%c0_5, %c0_6] : memref<1x32xf32, #tpu.memory_space<vmem>>, vector<1x32xf32>
    %19 = vector.broadcast %18 : vector<1x32xf32> to vector<32x32xf32>
    %20 = arith.mulf %17, %19 : vector<32x32xf32>
    %c0_7 = arith.constant 0 : index
    %c0_8 = arith.constant 0 : index
    %21 = vector.load %arg3[%c0_7, %c0_8] : memref<1x32xf32, #tpu.memory_space<vmem>>, vector<1x32xf32>
    %22 = vector.broadcast %21 : vector<1x32xf32> to vector<32x32xf32>
    %23 = arith.addf %20, %22 : vector<32x32xf32>
    %24 = arith.truncf %23 : vector<32x32xf32> to vector<32x32xbf16>
    %c0_9 = arith.constant 0 : index
    %c0_10 = arith.constant 0 : index
    %25 = vector.load %arg4[%c0_9, %c0_10] : memref<32x32xbf16, #tpu.memory_space<vmem>>, vector<32x32xbf16>
    tpu.vector_store %arg4[%c0_9, %c0_10], %24 {strides = array<i32>} : memref<32x32xbf16, #tpu.memory_space<vmem>>, vector<32x32xbf16>,
    return
  }
  func.func @transform_0(%arg0: i32) -> (i32, i32) {
    %c0_i32 = arith.constant 0 : i32
    %c0_i32_0 = arith.constant 0 : i32
    return %arg0, %c0_i32 : i32, i32
  }
  func.func @transform_1(%arg0: i32) -> (i32, i32) {
    %c0_i32 = arith.constant 0 : i32
    %c0_i32_0 = arith.constant 0 : i32
    %c0_i32_1 = arith.constant 0 : i32
    return %c0_i32, %c0_i32_0 : i32, i32
  }
  func.func @transform_2(%arg0: i32) -> (i32, i32) {
    %c0_i32 = arith.constant 0 : i32
    %c0_i32_0 = arith.constant 0 : i32
    %c0_i32_1 = arith.constant 0 : i32
    return %c0_i32, %c0_i32_0 : i32, i32
  }
  func.func @transform_3(%arg0: i32) -> (i32, i32) {
    %c0_i32 = arith.constant 0 : i32
    %c0_i32_0 = arith.constant 0 : i32
    return %arg0, %c0_i32 : i32, i32
  }
}

module attributes {stable_mosaic.version = 11 : i64} {
  func.func @kernel(%arg0: i32, %arg1: i32, %arg2: memref<8x128xbf16, #tpu.memory_space<vmem>>, %arg3: memref<128x32xbf16, #tpu.memory_space<vmem>>, %arg4: memref<1x32xf32, #tpu.memory_space<vmem>>, %arg5: memref<1x32xf32, #tpu.memory_space<vmem>>, %arg6: memref<1x32xf32, #tpu.memory_space<vmem>>, %arg7: memref<8x32xbf16, #tpu.memory_space<vmem>>, %arg8: memref<8x32xf32, #tpu.memory_space<vmem>>) attributes {dimension_semantics = [#tpu.dimension_semantics<parallel>, #tpu.dimension_semantics<arbitrary>], iteration_bounds = array<i64: 1, 1>, scalar_prefetch = 0 : i64, scratch_operands = 1 : i64, tpu.core_type = #tpu.core_type<tc>, window_params = [{transform_indices = @transform_0, window_bounds = array<i64: 8, 128>}, {transform_indices = @transform_1, window_bounds = array<i64: 128, 32>}, {pipeline_mode = #tpu.pipeline_mode<synchronous>, transform_indices = @transform_2, window_bounds = array<i64: 1, 32>}, {pipeline_mode = #tpu.pipeline_mode<synchronous>, transform_indices = @transform_3, window_bounds = array<i64: 1, 32>}, {pipeline_mode = #tpu.pipeline_mode<synchronous>, transform_indices = @transform_4, window_bounds = array<i64: 1, 32>}, {transform_indices = @transform_5, window_bounds = array<i64: 8, 32>}]} {
    %c0_i32 = arith.constant 0 : i32
    %0 = arith.cmpi eq, %arg1, %c0_i32 : i32
    %1 = arith.extui %0 : i1 to i32
    %c0_i32_0 = arith.constant 0 : i32
    %2 = arith.cmpi ne, %1, %c0_i32_0 : i32
    scf.if %2 {
      %cst_10 = arith.constant 0.000000e+00 : f32
      %12 = vector.broadcast %cst_10 : f32 to vector<8x32xf32>
      %c0_11 = arith.constant 0 : index
      %c0_12 = arith.constant 0 : index
      %13 = vector.load %arg8[%c0_11, %c0_12] : memref<8x32xf32, #tpu.memory_space<vmem>>, vector<8x32xf32>
      tpu.vector_store %arg8[%c0_11, %c0_12], %12 {strides = array<i32>} : memref<8x32xf32, #tpu.memory_space<vmem>>, vector<8x32xf32>,
    } else {
    }
    %c0 = arith.constant 0 : index
    %c0_1 = arith.constant 0 : index
    %3 = vector.load %arg2[%c0, %c0_1] : memref<8x128xbf16, #tpu.memory_space<vmem>>, vector<8x128xbf16>
    %c0_2 = arith.constant 0 : index
    %c0_3 = arith.constant 0 : index
    %4 = vector.load %arg8[%c0_2, %c0_3] : memref<8x32xf32, #tpu.memory_space<vmem>>, vector<8x32xf32>
    %c0_4 = arith.constant 0 : index
    %c0_5 = arith.constant 0 : index
    %5 = vector.load %arg3[%c0_4, %c0_5] : memref<128x32xbf16, #tpu.memory_space<vmem>>, vector<128x32xbf16>
    %cst = arith.constant dense<0.000000e+00> : vector<8x32xf32>
    %6 = tpu.matmul %3, %5, %cst {dimension_numbers = #tpu.dot_dimension_numbers<[1], [0], [0], [1], [0, 0, 1, 1], [], []>} : vector<8x128xbf16>, vector<128x32xbf16>, vector<8x32xf32> -> vector<8x32xf32>
    %7 = arith.addf %4, %6 : vector<8x32xf32>
    %c0_6 = arith.constant 0 : index
    %c0_7 = arith.constant 0 : index
    %8 = vector.load %arg8[%c0_6, %c0_7] : memref<8x32xf32, #tpu.memory_space<vmem>>, vector<8x32xf32>
    tpu.vector_store %arg8[%c0_6, %c0_7], %7 {strides = array<i32>} : memref<8x32xf32, #tpu.memory_space<vmem>>, vector<8x32xf32>,
    %c0_i32_8 = arith.constant 0 : i32
    %9 = arith.cmpi eq, %arg1, %c0_i32_8 : i32
    %10 = arith.extui %9 : i1 to i32
    %c0_i32_9 = arith.constant 0 : i32
    %11 = arith.cmpi ne, %10, %c0_i32_9 : i32
    scf.if %11 {
      %c0_10 = arith.constant 0 : index
      %c0_11 = arith.constant 0 : index
      %12 = vector.load %arg8[%c0_10, %c0_11] : memref<8x32xf32, #tpu.memory_space<vmem>>, vector<8x32xf32>
      %c0_12 = arith.constant 0 : index
      %c0_13 = arith.constant 0 : index
      %13 = vector.load %arg4[%c0_12, %c0_13] : memref<1x32xf32, #tpu.memory_space<vmem>>, vector<1x32xf32>
      %14 = vector.broadcast %13 : vector<1x32xf32> to vector<8x32xf32>
      %15 = arith.addf %12, %14 : vector<8x32xf32>
      %cst_14 = arith.constant dense<0.000000e+00> : vector<8xf32>
      %16 = vector.multi_reduction <add>, %15, %cst_14 [1] : vector<8x32xf32> to vector<8xf32>
      %17 = vector.shape_cast %16 : vector<8xf32> to vector<8x1xf32>
      %cst_15 = arith.constant 3.200000e+01 : f32
      %18 = vector.broadcast %cst_15 : f32 to vector<8x1xf32>
      %19 = arith.divf %17, %18 : vector<8x1xf32>
      %20 = vector.broadcast %19 : vector<8x1xf32> to vector<8x32xf32>
      %21 = arith.subf %15, %20 : vector<8x32xf32>
      %22 = arith.mulf %21, %21 : vector<8x32xf32>
      %cst_16 = arith.constant dense<0.000000e+00> : vector<8xf32>
      %23 = vector.multi_reduction <add>, %22, %cst_16 [1] : vector<8x32xf32> to vector<8xf32>
      %24 = vector.shape_cast %23 : vector<8xf32> to vector<8x1xf32>
      %cst_17 = arith.constant 3.200000e+01 : f32
      %25 = vector.broadcast %cst_17 : f32 to vector<8x1xf32>
      %26 = arith.divf %24, %25 : vector<8x1xf32>
      %cst_18 = arith.constant 9.99999974E-6 : f32
      %27 = vector.broadcast %cst_18 : f32 to vector<8x1xf32>
      %28 = arith.addf %26, %27 : vector<8x1xf32>
      %29 = math.rsqrt %28 : vector<8x1xf32>
      %30 = vector.broadcast %29 : vector<8x1xf32> to vector<8x32xf32>
      %31 = arith.mulf %21, %30 : vector<8x32xf32>
      %c0_19 = arith.constant 0 : index
      %c0_20 = arith.constant 0 : index
      %32 = vector.load %arg5[%c0_19, %c0_20] : memref<1x32xf32, #tpu.memory_space<vmem>>, vector<1x32xf32>
      %33 = vector.broadcast %32 : vector<1x32xf32> to vector<8x32xf32>
      %34 = arith.mulf %31, %33 : vector<8x32xf32>
      %c0_21 = arith.constant 0 : index
      %c0_22 = arith.constant 0 : index
      %35 = vector.load %arg6[%c0_21, %c0_22] : memref<1x32xf32, #tpu.memory_space<vmem>>, vector<1x32xf32>
      %36 = vector.broadcast %35 : vector<1x32xf32> to vector<8x32xf32>
      %37 = arith.addf %34, %36 : vector<8x32xf32>
      %38 = arith.truncf %37 : vector<8x32xf32> to vector<8x32xbf16>
      %c0_23 = arith.constant 0 : index
      %c0_24 = arith.constant 0 : index
      %39 = vector.load %arg7[%c0_23, %c0_24] : memref<8x32xbf16, #tpu.memory_space<vmem>>, vector<8x32xbf16>
      tpu.vector_store %arg7[%c0_23, %c0_24], %38 {strides = array<i32>} : memref<8x32xbf16, #tpu.memory_space<vmem>>, vector<8x32xbf16>,
    } else {
    }
    return
  }
  func.func @transform_0(%arg0: i32, %arg1: i32) -> (i32, i32) {
    %c0_i32 = arith.constant 0 : i32
    return %arg0, %arg1 : i32, i32
  }
  func.func @transform_1(%arg0: i32, %arg1: i32) -> (i32, i32) {
    %c0_i32 = arith.constant 0 : i32
    %c0_i32_0 = arith.constant 0 : i32
    return %arg1, %c0_i32 : i32, i32
  }
  func.func @transform_2(%arg0: i32, %arg1: i32) -> (i32, i32) {
    %c0_i32 = arith.constant 0 : i32
    %c0_i32_0 = arith.constant 0 : i32
    %c0_i32_1 = arith.constant 0 : i32
    return %c0_i32, %c0_i32_0 : i32, i32
  }
  func.func @transform_3(%arg0: i32, %arg1: i32) -> (i32, i32) {
    %c0_i32 = arith.constant 0 : i32
    %c0_i32_0 = arith.constant 0 : i32
    %c0_i32_1 = arith.constant 0 : i32
    return %c0_i32, %c0_i32_0 : i32, i32
  }
  func.func @transform_4(%arg0: i32, %arg1: i32) -> (i32, i32) {
    %c0_i32 = arith.constant 0 : i32
    %c0_i32_0 = arith.constant 0 : i32
    %c0_i32_1 = arith.constant 0 : i32
    return %c0_i32, %c0_i32_0 : i32, i32
  }
  func.func @transform_5(%arg0: i32, %arg1: i32) -> (i32, i32) {
    %c0_i32 = arith.constant 0 : i32
    %c0_i32_0 = arith.constant 0 : i32
    return %arg0, %c0_i32 : i32, i32
  }
}

module attributes {stable_mosaic.version = 11 : i64} {
  func.func @kernel(%arg0: i32, %arg1: i32, %arg2: memref<8x32xbf16, #tpu.memory_space<vmem>>, %arg3: memref<32x64xbf16, #tpu.memory_space<vmem>>, %arg4: memref<1x64xf32, #tpu.memory_space<vmem>>, %arg5: memref<8x64xbf16, #tpu.memory_space<vmem>>, %arg6: memref<8x64xf32, #tpu.memory_space<vmem>>) attributes {dimension_semantics = [#tpu.dimension_semantics<parallel>, #tpu.dimension_semantics<arbitrary>], iteration_bounds = array<i64: 1, 1>, scalar_prefetch = 0 : i64, scratch_operands = 1 : i64, tpu.core_type = #tpu.core_type<tc>, window_params = [{transform_indices = @transform_0, window_bounds = array<i64: 8, 32>}, {transform_indices = @transform_1, window_bounds = array<i64: 32, 64>}, {pipeline_mode = #tpu.pipeline_mode<synchronous>, transform_indices = @transform_2, window_bounds = array<i64: 1, 64>}, {transform_indices = @transform_3, window_bounds = array<i64: 8, 64>}]} {
    %c0_i32 = arith.constant 0 : i32
    %0 = arith.cmpi eq, %arg1, %c0_i32 : i32
    %1 = arith.extui %0 : i1 to i32
    %c0_i32_0 = arith.constant 0 : i32
    %2 = arith.cmpi ne, %1, %c0_i32_0 : i32
    scf.if %2 {
      %cst_10 = arith.constant 0.000000e+00 : f32
      %12 = vector.broadcast %cst_10 : f32 to vector<8x64xf32>
      %c0_11 = arith.constant 0 : index
      %c0_12 = arith.constant 0 : index
      %13 = vector.load %arg6[%c0_11, %c0_12] : memref<8x64xf32, #tpu.memory_space<vmem>>, vector<8x64xf32>
      tpu.vector_store %arg6[%c0_11, %c0_12], %12 {strides = array<i32>} : memref<8x64xf32, #tpu.memory_space<vmem>>, vector<8x64xf32>,
    } else {
    }
    %c0 = arith.constant 0 : index
    %c0_1 = arith.constant 0 : index
    %3 = vector.load %arg2[%c0, %c0_1] : memref<8x32xbf16, #tpu.memory_space<vmem>>, vector<8x32xbf16>
    %c0_2 = arith.constant 0 : index
    %c0_3 = arith.constant 0 : index
    %4 = vector.load %arg6[%c0_2, %c0_3] : memref<8x64xf32, #tpu.memory_space<vmem>>, vector<8x64xf32>
    %c0_4 = arith.constant 0 : index
    %c0_5 = arith.constant 0 : index
    %5 = vector.load %arg3[%c0_4, %c0_5] : memref<32x64xbf16, #tpu.memory_space<vmem>>, vector<32x64xbf16>
    %cst = arith.constant dense<0.000000e+00> : vector<8x64xf32>
    %6 = tpu.matmul %3, %5, %cst {dimension_numbers = #tpu.dot_dimension_numbers<[1], [0], [0], [1], [0, 0, 1, 1], [], []>} : vector<8x32xbf16>, vector<32x64xbf16>, vector<8x64xf32> -> vector<8x64xf32>
    %7 = arith.addf %4, %6 : vector<8x64xf32>
    %c0_6 = arith.constant 0 : index
    %c0_7 = arith.constant 0 : index
    %8 = vector.load %arg6[%c0_6, %c0_7] : memref<8x64xf32, #tpu.memory_space<vmem>>, vector<8x64xf32>
    tpu.vector_store %arg6[%c0_6, %c0_7], %7 {strides = array<i32>} : memref<8x64xf32, #tpu.memory_space<vmem>>, vector<8x64xf32>,
    %c0_i32_8 = arith.constant 0 : i32
    %9 = arith.cmpi eq, %arg1, %c0_i32_8 : i32
    %10 = arith.extui %9 : i1 to i32
    %c0_i32_9 = arith.constant 0 : i32
    %11 = arith.cmpi ne, %10, %c0_i32_9 : i32
    scf.if %11 {
      %c0_10 = arith.constant 0 : index
      %c0_11 = arith.constant 0 : index
      %12 = vector.load %arg6[%c0_10, %c0_11] : memref<8x64xf32, #tpu.memory_space<vmem>>, vector<8x64xf32>
      %c0_12 = arith.constant 0 : index
      %c0_13 = arith.constant 0 : index
      %13 = vector.load %arg4[%c0_12, %c0_13] : memref<1x64xf32, #tpu.memory_space<vmem>>, vector<1x64xf32>
      %14 = vector.broadcast %13 : vector<1x64xf32> to vector<8x64xf32>
      %15 = arith.addf %12, %14 : vector<8x64xf32>
      %16 = arith.truncf %15 : vector<8x64xf32> to vector<8x64xbf16>
      %c0_14 = arith.constant 0 : index
      %c0_15 = arith.constant 0 : index
      %17 = vector.load %arg5[%c0_14, %c0_15] : memref<8x64xbf16, #tpu.memory_space<vmem>>, vector<8x64xbf16>
      tpu.vector_store %arg5[%c0_14, %c0_15], %16 {strides = array<i32>} : memref<8x64xbf16, #tpu.memory_space<vmem>>, vector<8x64xbf16>,
    } else {
    }
    return
  }
  func.func @transform_0(%arg0: i32, %arg1: i32) -> (i32, i32) {
    %c0_i32 = arith.constant 0 : i32
    return %arg0, %arg1 : i32, i32
  }
  func.func @transform_1(%arg0: i32, %arg1: i32) -> (i32, i32) {
    %c0_i32 = arith.constant 0 : i32
    %c0_i32_0 = arith.constant 0 : i32
    return %arg1, %c0_i32 : i32, i32
  }
  func.func @transform_2(%arg0: i32, %arg1: i32) -> (i32, i32) {
    %c0_i32 = arith.constant 0 : i32
    %c0_i32_0 = arith.constant 0 : i32
    %c0_i32_1 = arith.constant 0 : i32
    return %c0_i32, %c0_i32_0 : i32, i32
  }
  func.func @transform_3(%arg0: i32, %arg1: i32) -> (i32, i32) {
    %c0_i32 = arith.constant 0 : i32
    %c0_i32_0 = arith.constant 0 : i32
    return %arg0, %c0_i32 : i32, i32
  }
}

module attributes {stable_mosaic.version = 11 : i64} {
  func.func @kernel(%arg0: i32, %arg1: i32, %arg2: memref<32x32xbf16, #tpu.memory_space<vmem>>, %arg3: memref<32x32xbf16, #tpu.memory_space<vmem>>, %arg4: memref<1x32xf32, #tpu.memory_space<vmem>>, %arg5: memref<32x32xbf16, #tpu.memory_space<vmem>>, %arg6: memref<32x32xbf16, #tpu.memory_space<vmem>>, %arg7: memref<32x32xf32, #tpu.memory_space<vmem>>) attributes {dimension_semantics = [#tpu.dimension_semantics<parallel>, #tpu.dimension_semantics<arbitrary>], iteration_bounds = array<i64: 1, 1>, scalar_prefetch = 0 : i64, scratch_operands = 1 : i64, tpu.core_type = #tpu.core_type<tc>, window_params = [{transform_indices = @transform_0, window_bounds = array<i64: 32, 32>}, {transform_indices = @transform_1, window_bounds = array<i64: 32, 32>}, {pipeline_mode = #tpu.pipeline_mode<synchronous>, transform_indices = @transform_2, window_bounds = array<i64: 1, 32>}, {transform_indices = @transform_3, window_bounds = array<i64: 32, 32>}, {transform_indices = @transform_4, window_bounds = array<i64: 32, 32>}]} {
    %c0_i32 = arith.constant 0 : i32
    %0 = arith.cmpi eq, %arg1, %c0_i32 : i32
    %1 = arith.extui %0 : i1 to i32
    %c0_i32_0 = arith.constant 0 : i32
    %2 = arith.cmpi ne, %1, %c0_i32_0 : i32
    scf.if %2 {
      %cst_10 = arith.constant 0.000000e+00 : f32
      %12 = vector.broadcast %cst_10 : f32 to vector<32x32xf32>
      %c0_11 = arith.constant 0 : index
      %c0_12 = arith.constant 0 : index
      %13 = vector.load %arg7[%c0_11, %c0_12] : memref<32x32xf32, #tpu.memory_space<vmem>>, vector<32x32xf32>
      tpu.vector_store %arg7[%c0_11, %c0_12], %12 {strides = array<i32>} : memref<32x32xf32, #tpu.memory_space<vmem>>, vector<32x32xf32>,
    } else {
    }
    %c0 = arith.constant 0 : index
    %c0_1 = arith.constant 0 : index
    %3 = vector.load %arg2[%c0, %c0_1] : memref<32x32xbf16, #tpu.memory_space<vmem>>, vector<32x32xbf16>
    %c0_2 = arith.constant 0 : index
    %c0_3 = arith.constant 0 : index
    %4 = vector.load %arg7[%c0_2, %c0_3] : memref<32x32xf32, #tpu.memory_space<vmem>>, vector<32x32xf32>
    %c0_4 = arith.constant 0 : index
    %c0_5 = arith.constant 0 : index
    %5 = vector.load %arg3[%c0_4, %c0_5] : memref<32x32xbf16, #tpu.memory_space<vmem>>, vector<32x32xbf16>
    %cst = arith.constant dense<0.000000e+00> : vector<32x32xf32>
    %6 = tpu.matmul %3, %5, %cst {dimension_numbers = #tpu.dot_dimension_numbers<[1], [0], [0], [1], [0, 0, 1, 1], [], []>} : vector<32x32xbf16>, vector<32x32xbf16>, vector<32x32xf32> -> vector<32x32xf32>
    %7 = arith.addf %4, %6 : vector<32x32xf32>
    %c0_6 = arith.constant 0 : index
    %c0_7 = arith.constant 0 : index
    %8 = vector.load %arg7[%c0_6, %c0_7] : memref<32x32xf32, #tpu.memory_space<vmem>>, vector<32x32xf32>
    tpu.vector_store %arg7[%c0_6, %c0_7], %7 {strides = array<i32>} : memref<32x32xf32, #tpu.memory_space<vmem>>, vector<32x32xf32>,
    %c0_i32_8 = arith.constant 0 : i32
    %9 = arith.cmpi eq, %arg1, %c0_i32_8 : i32
    %10 = arith.extui %9 : i1 to i32
    %c0_i32_9 = arith.constant 0 : i32
    %11 = arith.cmpi ne, %10, %c0_i32_9 : i32
    scf.if %11 {
      %c0_10 = arith.constant 0 : index
      %c0_11 = arith.constant 0 : index
      %12 = vector.load %arg7[%c0_10, %c0_11] : memref<32x32xf32, #tpu.memory_space<vmem>>, vector<32x32xf32>
      %c0_12 = arith.constant 0 : index
      %c0_13 = arith.constant 0 : index
      %13 = vector.load %arg4[%c0_12, %c0_13] : memref<1x32xf32, #tpu.memory_space<vmem>>, vector<1x32xf32>
      %14 = vector.broadcast %13 : vector<1x32xf32> to vector<32x32xf32>
      %15 = arith.addf %12, %14 : vector<32x32xf32>
      %c0_14 = arith.constant 0 : index
      %c0_15 = arith.constant 0 : index
      %16 = vector.load %arg5[%c0_14, %c0_15] : memref<32x32xbf16, #tpu.memory_space<vmem>>, vector<32x32xbf16>
      %17 = arith.extf %16 : vector<32x32xbf16> to vector<32x32xf32>
      %18 = arith.addf %15, %17 : vector<32x32xf32>
      %19 = arith.truncf %18 : vector<32x32xf32> to vector<32x32xbf16>
      %c0_16 = arith.constant 0 : index
      %c0_17 = arith.constant 0 : index
      %20 = vector.load %arg6[%c0_16, %c0_17] : memref<32x32xbf16, #tpu.memory_space<vmem>>, vector<32x32xbf16>
      tpu.vector_store %arg6[%c0_16, %c0_17], %19 {strides = array<i32>} : memref<32x32xbf16, #tpu.memory_space<vmem>>, vector<32x32xbf16>,
    } else {
    }
    return
  }
  func.func @transform_0(%arg0: i32, %arg1: i32) -> (i32, i32) {
    %c0_i32 = arith.constant 0 : i32
    return %arg0, %arg1 : i32, i32
  }
  func.func @transform_1(%arg0: i32, %arg1: i32) -> (i32, i32) {
    %c0_i32 = arith.constant 0 : i32
    %c0_i32_0 = arith.constant 0 : i32
    return %arg1, %c0_i32 : i32, i32
  }
  func.func @transform_2(%arg0: i32, %arg1: i32) -> (i32, i32) {
    %c0_i32 = arith.constant 0 : i32
    %c0_i32_0 = arith.constant 0 : i32
    %c0_i32_1 = arith.constant 0 : i32
    return %c0_i32, %c0_i32_0 : i32, i32
  }
  func.func @transform_3(%arg0: i32, %arg1: i32) -> (i32, i32) {
    %c0_i32 = arith.constant 0 : i32
    %c0_i32_0 = arith.constant 0 : i32
    return %arg0, %c0_i32 : i32, i32
  }
  func.func @transform_4(%arg0: i32, %arg1: i32) -> (i32, i32) {
    %c0_i32 = arith.constant 0 : i32
    %c0_i32_0 = arith.constant 0 : i32
    return %arg0, %c0_i32 : i32, i32
  }
}

module attributes {stable_mosaic.version = 11 : i64} {
  func.func @kernel(%arg0: i32, %arg1: i32, %arg2: memref<1x16x32xbf16, #tpu.memory_space<vmem>>, %arg3: memref<1x4x64xbf16, #tpu.memory_space<vmem>>, %arg4: memref<1x16x32xbf16, #tpu.memory_space<vmem>>) attributes {dimension_semantics = [#tpu.dimension_semantics<parallel>, #tpu.dimension_semantics<parallel>], iteration_bounds = array<i64: 2, 1>, scalar_prefetch = 0 : i64, scratch_operands = 0 : i64, tpu.core_type = #tpu.core_type<tc>, window_params = [{transform_indices = @transform_0, window_bounds = array<i64: 1, 16, 32>}, {transform_indices = @transform_1, window_bounds = array<i64: 1, 4, 64>}, {transform_indices = @transform_2, window_bounds = array<i64: 1, 16, 32>}]} {
    %c0 = arith.constant 0 : index
    %c0_0 = arith.constant 0 : index
    %c0_1 = arith.constant 0 : index
    %0 = vector.load %arg2[%c0, %c0_0, %c0_1] : memref<1x16x32xbf16, #tpu.memory_space<vmem>>, vector<1x16x32xbf16>
    %1 = vector.shape_cast %0 : vector<1x16x32xbf16> to vector<16x32xbf16>
    %c0_2 = arith.constant 0 : index
    %c0_3 = arith.constant 0 : index
    %c0_4 = arith.constant 0 : index
    %2 = vector.load %arg3[%c0_2, %c0_3, %c0_4] : memref<1x4x64xbf16, #tpu.memory_space<vmem>>, vector<1x4x64xbf16>
    %3 = vector.shape_cast %2 : vector<1x4x64xbf16> to vector<4x64xbf16>
    %4 = vector.extract_strided_slice %1 {offsets = [0, 0], sizes = [16, 16], strides = [1, 1]} : vector<16x32xbf16> to vector<16x16xbf16>
    %5 = vector.extract_strided_slice %3 {offsets = [0, 0], sizes = [4, 16], strides = [1, 1]} : vector<4x64xbf16> to vector<4x16xbf16>
    %6 = vector.extract_strided_slice %3 {offsets = [0, 32], sizes = [4, 16], strides = [1, 1]} : vector<4x64xbf16> to vector<4x16xbf16>
    %cst = arith.constant dense<0.000000e+00> : vector<16x4xf32>
    %7 = tpu.matmul %4, %5, %cst {dimension_numbers = #tpu.dot_dimension_numbers<[1], [1], [0], [0], [0, 0, 1, 0], [], []>} : vector<16x16xbf16>, vector<4x16xbf16>, vector<16x4xf32> -> vector<16x4xf32>
    %cst_5 = arith.constant 2.500000e-01 : f32
    %8 = vector.broadcast %cst_5 : f32 to vector<16x4xf32>
    %9 = arith.mulf %7, %8 : vector<16x4xf32>
    %cst_6 = arith.constant dense<0xFF800000> : vector<16xf32>
    %10 = vector.multi_reduction <maximumf>, %9, %cst_6 [1] : vector<16x4xf32> to vector<16xf32>
    %11 = vector.shape_cast %10 : vector<16xf32> to vector<16x1xf32>
    %12 = vector.broadcast %11 : vector<16x1xf32> to vector<16x4xf32>
    %13 = arith.subf %9, %12 : vector<16x4xf32>
    %14 = math.exp %13 : vector<16x4xf32>
    %cst_7 = arith.constant dense<0.000000e+00> : vector<16xf32>
    %15 = vector.multi_reduction <add>, %14, %cst_7 [1] : vector<16x4xf32> to vector<16xf32>
    %16 = vector.shape_cast %15 : vector<16xf32> to vector<16x1xf32>
    %17 = vector.broadcast %16 : vector<16x1xf32> to vector<16x4xf32>
    %18 = arith.divf %14, %17 : vector<16x4xf32>
    %19 = arith.truncf %18 : vector<16x4xf32> to vector<16x4xbf16>
    %cst_8 = arith.constant dense<0.000000e+00> : vector<16x16xf32>
    %20 = tpu.matmul %19, %6, %cst_8 {dimension_numbers = #tpu.dot_dimension_numbers<[1], [0], [0], [1], [0, 0, 1, 1], [], []>} : vector<16x4xbf16>, vector<4x16xbf16>, vector<16x16xf32> -> vector<16x16xf32>
    %21 = arith.truncf %20 : vector<16x16xf32> to vector<16x16xbf16>
    %c0_9 = arith.constant 0 : index
    %c0_10 = arith.constant 0 : index
    %c0_11 = arith.constant 0 : index
    %22 = vector.load %arg4[%c0_9, %c0_10, %c0_11] : memref<1x16x32xbf16, #tpu.memory_space<vmem>>, vector<1x16x16xbf16>
    %23 = vector.shape_cast %22 : vector<1x16x16xbf16> to vector<16x16xbf16>
    %24 = vector.shape_cast %21 : vector<16x16xbf16> to vector<1x16x16xbf16>
    tpu.vector_store %arg4[%c0_9, %c0_10, %c0_11], %24 {strides = array<i32>} : memref<1x16x32xbf16, #tpu.memory_space<vmem>>, vector<1x16x16xbf16>,
    %25 = vector.extract_strided_slice %1 {offsets = [0, 16], sizes = [16, 16], strides = [1, 1]} : vector<16x32xbf16> to vector<16x16xbf16>
    %26 = vector.extract_strided_slice %3 {offsets = [0, 16], sizes = [4, 16], strides = [1, 1]} : vector<4x64xbf16> to vector<4x16xbf16>
    %27 = vector.extract_strided_slice %3 {offsets = [0, 48], sizes = [4, 16], strides = [1, 1]} : vector<4x64xbf16> to vector<4x16xbf16>
    %cst_12 = arith.constant dense<0.000000e+00> : vector<16x4xf32>
    %28 = tpu.matmul %25, %26, %cst_12 {dimension_numbers = #tpu.dot_dimension_numbers<[1], [1], [0], [0], [0, 0, 1, 0], [], []>} : vector<16x16xbf16>, vector<4x16xbf16>, vector<16x4xf32> -> vector<16x4xf32>
    %cst_13 = arith.constant 2.500000e-01 : f32
    %29 = vector.broadcast %cst_13 : f32 to vector<16x4xf32>
    %30 = arith.mulf %28, %29 : vector<16x4xf32>
    %cst_14 = arith.constant dense<0xFF800000> : vector<16xf32>
    %31 = vector.multi_reduction <maximumf>, %30, %cst_14 [1] : vector<16x4xf32> to vector<16xf32>
    %32 = vector.shape_cast %31 : vector<16xf32> to vector<16x1xf32>
    %33 = vector.broadcast %32 : vector<16x1xf32> to vector<16x4xf32>
    %34 = arith.subf %30, %33 : vector<16x4xf32>
    %35 = math.exp %34 : vector<16x4xf32>
    %cst_15 = arith.constant dense<0.000000e+00> : vector<16xf32>
    %36 = vector.multi_reduction <add>, %35, %cst_15 [1] : vector<16x4xf32> to vector<16xf32>
    %37 = vector.shape_cast %36 : vector<16xf32> to vector<16x1xf32>
    %38 = vector.broadcast %37 : vector<16x1xf32> to vector<16x4xf32>
    %39 = arith.divf %35, %38 : vector<16x4xf32>
    %40 = arith.truncf %39 : vector<16x4xf32> to vector<16x4xbf16>
    %cst_16 = arith.constant dense<0.000000e+00> : vector<16x16xf32>
    %41 = tpu.matmul %40, %27, %cst_16 {dimension_numbers = #tpu.dot_dimension_numbers<[1], [0], [0], [1], [0, 0, 1, 1], [], []>} : vector<16x4xbf16>, vector<4x16xbf16>, vector<16x16xf32> -> vector<16x16xf32>
    %42 = arith.truncf %41 : vector<16x16xf32> to vector<16x16xbf16>
    %c0_17 = arith.constant 0 : index
    %c0_18 = arith.constant 0 : index
    %c16 = arith.constant 16 : index
    %43 = vector.load %arg4[%c0_17, %c0_18, %c16] : memref<1x16x32xbf16, #tpu.memory_space<vmem>>, vector<1x16x16xbf16>
    %44 = vector.shape_cast %43 : vector<1x16x16xbf16> to vector<16x16xbf16>
    %45 = vector.shape_cast %42 : vector<16x16xbf16> to vector<1x16x16xbf16>
    tpu.vector_store %arg4[%c0_17, %c0_18, %c16], %45 {strides = array<i32>} : memref<1x16x32xbf16, #tpu.memory_space<vmem>>, vector<1x16x16xbf16>,
    return
  }
  func.func @transform_0(%arg0: i32, %arg1: i32) -> (i32, i32, i32) {
    %c0_i32 = arith.constant 0 : i32
    %c0_i32_0 = arith.constant 0 : i32
    return %arg0, %arg1, %c0_i32 : i32, i32, i32
  }
  func.func @transform_1(%arg0: i32, %arg1: i32) -> (i32, i32, i32) {
    %c0_i32 = arith.constant 0 : i32
    %c0_i32_0 = arith.constant 0 : i32
    %c0_i32_1 = arith.constant 0 : i32
    return %arg0, %c0_i32, %c0_i32_0 : i32, i32, i32
  }
  func.func @transform_2(%arg0: i32, %arg1: i32) -> (i32, i32, i32) {
    %c0_i32 = arith.constant 0 : i32
    %c0_i32_0 = arith.constant 0 : i32
    return %arg0, %arg1, %c0_i32 : i32, i32, i32
  }
}

module attributes {stable_mosaic.version = 11 : i64} {
  func.func @kernel(%arg0: i32, %arg1: i32, %arg2: memref<32x32xbf16, #tpu.memory_space<vmem>>, %arg3: memref<32x32xbf16, #tpu.memory_space<vmem>>, %arg4: memref<1x32xf32, #tpu.memory_space<vmem>>, %arg5: memref<32x32xbf16, #tpu.memory_space<vmem>>, %arg6: memref<32x32xf32, #tpu.memory_space<vmem>>) attributes {dimension_semantics = [#tpu.dimension_semantics<parallel>, #tpu.dimension_semantics<arbitrary>], iteration_bounds = array<i64: 1, 1>, scalar_prefetch = 0 : i64, scratch_operands = 1 : i64, tpu.core_type = #tpu.core_type<tc>, window_params = [{transform_indices = @transform_0, window_bounds = array<i64: 32, 32>}, {transform_indices = @transform_1, window_bounds = array<i64: 32, 32>}, {pipeline_mode = #tpu.pipeline_mode<synchronous>, transform_indices = @transform_2, window_bounds = array<i64: 1, 32>}, {transform_indices = @transform_3, window_bounds = array<i64: 32, 32>}]} {
    %c0_i32 = arith.constant 0 : i32
    %0 = arith.cmpi eq, %arg1, %c0_i32 : i32
    %1 = arith.extui %0 : i1 to i32
    %c0_i32_0 = arith.constant 0 : i32
    %2 = arith.cmpi ne, %1, %c0_i32_0 : i32
    scf.if %2 {
      %cst_10 = arith.constant 0.000000e+00 : f32
      %12 = vector.broadcast %cst_10 : f32 to vector<32x32xf32>
      %c0_11 = arith.constant 0 : index
      %c0_12 = arith.constant 0 : index
      %13 = vector.load %arg6[%c0_11, %c0_12] : memref<32x32xf32, #tpu.memory_space<vmem>>, vector<32x32xf32>
      tpu.vector_store %arg6[%c0_11, %c0_12], %12 {strides = array<i32>} : memref<32x32xf32, #tpu.memory_space<vmem>>, vector<32x32xf32>,
    } else {
    }
    %c0 = arith.constant 0 : index
    %c0_1 = arith.constant 0 : index
    %3 = vector.load %arg2[%c0, %c0_1] : memref<32x32xbf16, #tpu.memory_space<vmem>>, vector<32x32xbf16>
    %c0_2 = arith.constant 0 : index
    %c0_3 = arith.constant 0 : index
    %4 = vector.load %arg6[%c0_2, %c0_3] : memref<32x32xf32, #tpu.memory_space<vmem>>, vector<32x32xf32>
    %c0_4 = arith.constant 0 : index
    %c0_5 = arith.constant 0 : index
    %5 = vector.load %arg3[%c0_4, %c0_5] : memref<32x32xbf16, #tpu.memory_space<vmem>>, vector<32x32xbf16>
    %cst = arith.constant dense<0.000000e+00> : vector<32x32xf32>
    %6 = tpu.matmul %3, %5, %cst {dimension_numbers = #tpu.dot_dimension_numbers<[1], [0], [0], [1], [0, 0, 1, 1], [], []>} : vector<32x32xbf16>, vector<32x32xbf16>, vector<32x32xf32> -> vector<32x32xf32>
    %7 = arith.addf %4, %6 : vector<32x32xf32>
    %c0_6 = arith.constant 0 : index
    %c0_7 = arith.constant 0 : index
    %8 = vector.load %arg6[%c0_6, %c0_7] : memref<32x32xf32, #tpu.memory_space<vmem>>, vector<32x32xf32>
    tpu.vector_store %arg6[%c0_6, %c0_7], %7 {strides = array<i32>} : memref<32x32xf32, #tpu.memory_space<vmem>>, vector<32x32xf32>,
    %c0_i32_8 = arith.constant 0 : i32
    %9 = arith.cmpi eq, %arg1, %c0_i32_8 : i32
    %10 = arith.extui %9 : i1 to i32
    %c0_i32_9 = arith.constant 0 : i32
    %11 = arith.cmpi ne, %10, %c0_i32_9 : i32
    scf.if %11 {
      %c0_10 = arith.constant 0 : index
      %c0_11 = arith.constant 0 : index
      %12 = vector.load %arg6[%c0_10, %c0_11] : memref<32x32xf32, #tpu.memory_space<vmem>>, vector<32x32xf32>
      %c0_12 = arith.constant 0 : index
      %c0_13 = arith.constant 0 : index
      %13 = vector.load %arg4[%c0_12, %c0_13] : memref<1x32xf32, #tpu.memory_space<vmem>>, vector<1x32xf32>
      %14 = vector.broadcast %13 : vector<1x32xf32> to vector<32x32xf32>
      %15 = arith.addf %12, %14 : vector<32x32xf32>
      %16 = arith.truncf %15 : vector<32x32xf32> to vector<32x32xbf16>
      %c0_14 = arith.constant 0 : index
      %c0_15 = arith.constant 0 : index
      %17 = vector.load %arg5[%c0_14, %c0_15] : memref<32x32xbf16, #tpu.memory_space<vmem>>, vector<32x32xbf16>
      tpu.vector_store %arg5[%c0_14, %c0_15], %16 {strides = array<i32>} : memref<32x32xbf16, #tpu.memory_space<vmem>>, vector<32x32xbf16>,
    } else {
    }
    return
  }
  func.func @transform_0(%arg0: i32, %arg1: i32) -> (i32, i32) {
    %c0_i32 = arith.constant 0 : i32
    return %arg0, %arg1 : i32, i32
  }
  func.func @transform_1(%arg0: i32, %arg1: i32) -> (i32, i32) {
    %c0_i32 = arith.constant 0 : i32
    %c0_i32_0 = arith.constant 0 : i32
    return %arg1, %c0_i32 : i32, i32
  }
  func.func @transform_2(%arg0: i32, %arg1: i32) -> (i32, i32) {
    %c0_i32 = arith.constant 0 : i32
    %c0_i32_0 = arith.constant 0 : i32
    %c0_i32_1 = arith.constant 0 : i32
    return %c0_i32, %c0_i32_0 : i32, i32
  }
  func.func @transform_3(%arg0: i32, %arg1: i32) -> (i32, i32) {
    %c0_i32 = arith.constant 0 : i32
    %c0_i32_0 = arith.constant 0 : i32
    return %arg0, %c0_i32 : i32, i32
  }
}

module attributes {stable_mosaic.version = 11 : i64} {
  func.func @kernel(%arg0: i32, %arg1: i32, %arg2: memref<32x32xbf16, #tpu.memory_space<vmem>>, %arg3: memref<32x128xbf16, #tpu.memory_space<vmem>>, %arg4: memref<1x128xf32, #tpu.memory_space<vmem>>, %arg5: memref<1x32xf32, #tpu.memory_space<vmem>>, %arg6: memref<1x32xf32, #tpu.memory_space<vmem>>, %arg7: memref<32x128xbf16, #tpu.memory_space<vmem>>, %arg8: memref<32x128xf32, #tpu.memory_space<vmem>>) attributes {dimension_semantics = [#tpu.dimension_semantics<parallel>, #tpu.dimension_semantics<arbitrary>], iteration_bounds = array<i64: 1, 1>, scalar_prefetch = 0 : i64, scratch_operands = 1 : i64, tpu.core_type = #tpu.core_type<tc>, window_params = [{transform_indices = @transform_0, window_bounds = array<i64: 32, 32>}, {transform_indices = @transform_1, window_bounds = array<i64: 32, 128>}, {pipeline_mode = #tpu.pipeline_mode<synchronous>, transform_indices = @transform_2, window_bounds = array<i64: 1, 128>}, {transform_indices = @transform_3, window_bounds = array<i64: 1, 32>}, {transform_indices = @transform_4, window_bounds = array<i64: 1, 32>}, {transform_indices = @transform_5, window_bounds = array<i64: 32, 128>}]} {
    %c0_i32 = arith.constant 0 : i32
    %0 = arith.cmpi eq, %arg1, %c0_i32 : i32
    %1 = arith.extui %0 : i1 to i32
    %c0_i32_0 = arith.constant 0 : i32
    %2 = arith.cmpi ne, %1, %c0_i32_0 : i32
    scf.if %2 {
      %cst_19 = arith.constant 0.000000e+00 : f32
      %36 = vector.broadcast %cst_19 : f32 to vector<32x128xf32>
      %c0_20 = arith.constant 0 : index
      %c0_21 = arith.constant 0 : index
      %37 = vector.load %arg8[%c0_20, %c0_21] : memref<32x128xf32, #tpu.memory_space<vmem>>, vector<32x128xf32>
      tpu.vector_store %arg8[%c0_20, %c0_21], %36 {strides = array<i32>} : memref<32x128xf32, #tpu.memory_space<vmem>>, vector<32x128xf32>,
    } else {
    }
    %c0 = arith.constant 0 : index
    %c0_1 = arith.constant 0 : index
    %3 = vector.load %arg2[%c0, %c0_1] : memref<32x32xbf16, #tpu.memory_space<vmem>>, vector<32x32xbf16>
    %4 = arith.extf %3 : vector<32x32xbf16> to vector<32x32xf32>
    %cst = arith.constant dense<0.000000e+00> : vector<32xf32>
    %5 = vector.multi_reduction <add>, %4, %cst [1] : vector<32x32xf32> to vector<32xf32>
    %6 = vector.shape_cast %5 : vector<32xf32> to vector<32x1xf32>
    %cst_2 = arith.constant 3.200000e+01 : f32
    %7 = vector.broadcast %cst_2 : f32 to vector<32x1xf32>
    %8 = arith.divf %6, %7 : vector<32x1xf32>
    %9 = vector.broadcast %8 : vector<32x1xf32> to vector<32x32xf32>
    %10 = arith.subf %4, %9 : vector<32x32xf32>
    %11 = arith.mulf %10, %10 : vector<32x32xf32>
    %cst_3 = arith.constant dense<0.000000e+00> : vector<32xf32>
    %12 = vector.multi_reduction <add>, %11, %cst_3 [1] : vector<32x32xf32> to vector<32xf32>
    %13 = vector.shape_cast %12 : vector<32xf32> to vector<32x1xf32>
    %cst_4 = arith.constant 3.200000e+01 : f32
    %14 = vector.broadcast %cst_4 : f32 to vector<32x1xf32>
    %15 = arith.divf %13, %14 : vector<32x1xf32>
    %cst_5 = arith.constant 9.99999997E-7 : f32
    %16 = vector.broadcast %cst_5 : f32 to vector<32x1xf32>
    %17 = arith.addf %15, %16 : vector<32x1xf32>
    %18 = math.rsqrt %17 : vector<32x1xf32>
    %19 = vector.broadcast %18 : vector<32x1xf32> to vector<32x32xf32>
    %20 = arith.mulf %10, %19 : vector<32x32xf32>
    %c0_6 = arith.constant 0 : index
    %c0_7 = arith.constant 0 : index
    %21 = vector.load %arg5[%c0_6, %c0_7] : memref<1x32xf32, #tpu.memory_space<vmem>>, vector<1x32xf32>
    %22 = vector.broadcast %21 : vector<1x32xf32> to vector<32x32xf32>
    %23 = arith.mulf %20, %22 : vector<32x32xf32>
    %c0_8 = arith.constant 0 : index
    %c0_9 = arith.constant 0 : index
    %24 = vector.load %arg6[%c0_8, %c0_9] : memref<1x32xf32, #tpu.memory_space<vmem>>, vector<1x32xf32>
    %25 = vector.broadcast %24 : vector<1x32xf32> to vector<32x32xf32>
    %26 = arith.addf %23, %25 : vector<32x32xf32>
    %27 = arith.truncf %26 : vector<32x32xf32> to vector<32x32xbf16>
    %c0_10 = arith.constant 0 : index
    %c0_11 = arith.constant 0 : index
    %28 = vector.load %arg8[%c0_10, %c0_11] : memref<32x128xf32, #tpu.memory_space<vmem>>, vector<32x128xf32>
    %c0_12 = arith.constant 0 : index
    %c0_13 = arith.constant 0 : index
    %29 = vector.load %arg3[%c0_12, %c0_13] : memref<32x128xbf16, #tpu.memory_space<vmem>>, vector<32x128xbf16>
    %cst_14 = arith.constant dense<0.000000e+00> : vector<32x128xf32>
    %30 = tpu.matmul %27, %29, %cst_14 {dimension_numbers = #tpu.dot_dimension_numbers<[1], [0], [0], [1], [0, 0, 1, 1], [], []>} : vector<32x32xbf16>, vector<32x128xbf16>, vector<32x128xf32> -> vector<32x128xf32>
    %31 = arith.addf %28, %30 : vector<32x128xf32>
    %c0_15 = arith.constant 0 : index
    %c0_16 = arith.constant 0 : index
    %32 = vector.load %arg8[%c0_15, %c0_16] : memref<32x128xf32, #tpu.memory_space<vmem>>, vector<32x128xf32>
    tpu.vector_store %arg8[%c0_15, %c0_16], %31 {strides = array<i32>} : memref<32x128xf32, #tpu.memory_space<vmem>>, vector<32x128xf32>,
    %c0_i32_17 = arith.constant 0 : i32
    %33 = arith.cmpi eq, %arg1, %c0_i32_17 : i32
    %34 = arith.extui %33 : i1 to i32
    %c0_i32_18 = arith.constant 0 : i32
    %35 = arith.cmpi ne, %34, %c0_i32_18 : i32
    scf.if %35 {
      %c0_19 = arith.constant 0 : index
      %c0_20 = arith.constant 0 : index
      %36 = vector.load %arg8[%c0_19, %c0_20] : memref<32x128xf32, #tpu.memory_space<vmem>>, vector<32x128xf32>
      %c0_21 = arith.constant 0 : index
      %c0_22 = arith.constant 0 : index
      %37 = vector.load %arg4[%c0_21, %c0_22] : memref<1x128xf32, #tpu.memory_space<vmem>>, vector<1x128xf32>
      %38 = vector.broadcast %37 : vector<1x128xf32> to vector<32x128xf32>
      %39 = arith.addf %36, %38 : vector<32x128xf32>
      %40 = arith.truncf %39 : vector<32x128xf32> to vector<32x128xbf16>
      %c0_23 = arith.constant 0 : index
      %c0_24 = arith.constant 0 : index
      %41 = vector.load %arg7[%c0_23, %c0_24] : memref<32x128xbf16, #tpu.memory_space<vmem>>, vector<32x128xbf16>
      tpu.vector_store %arg7[%c0_23, %c0_24], %40 {strides = array<i32>} : memref<32x128xbf16, #tpu.memory_space<vmem>>, vector<32x128xbf16>,
    } else {
    }
    return
  }
  func.func @transform_0(%arg0: i32, %arg1: i32) -> (i32, i32) {
    %c0_i32 = arith.constant 0 : i32
    return %arg0, %arg1 : i32, i32
  }
  func.func @transform_1(%arg0: i32, %arg1: i32) -> (i32, i32) {
    %c0_i32 = arith.constant 0 : i32
    %c0_i32_0 = arith.constant 0 : i32
    return %arg1, %c0_i32 : i32, i32
  }
  func.func @transform_2(%arg0: i32, %arg1: i32) -> (i32, i32) {
    %c0_i32 = arith.constant 0 : i32
    %c0_i32_0 = arith.constant 0 : i32
    %c0_i32_1 = arith.constant 0 : i32
    return %c0_i32, %c0_i32_0 : i32, i32
  }
  func.func @transform_3(%arg0: i32, %arg1: i32) -> (i32, i32) {
    %c0_i32 = arith.constant 0 : i32
    %c0_i32_0 = arith.constant 0 : i32
    return %c0_i32, %arg1 : i32, i32
  }
  func.func @transform_4(%arg0: i32, %arg1: i32) -> (i32, i32) {
    %c0_i32 = arith.constant 0 : i32
    %c0_i32_0 = arith.constant 0 : i32
    return %c0_i32, %arg1 : i32, i32
  }
  func.func @transform_5(%arg0: i32, %arg1: i32) -> (i32, i32) {
    %c0_i32 = arith.constant 0 : i32
    %c0_i32_0 = arith.constant 0 : i32
    return %arg0, %c0_i32 : i32, i32
  }
}

module attributes {stable_mosaic.version = 11 : i64} {
  func.func @kernel(%arg0: i32, %arg1: i32, %arg2: memref<1x6x6x128xbf16, #tpu.memory_space<vmem>>, %arg3: memref<3x3x128xf32, #tpu.memory_space<vmem>>, %arg4: memref<1x128xf32, #tpu.memory_space<vmem>>, %arg5: memref<1x4x4x128xbf16, #tpu.memory_space<vmem>>) attributes {dimension_semantics = [#tpu.dimension_semantics<parallel>, #tpu.dimension_semantics<parallel>], iteration_bounds = array<i64: 2, 1>, scalar_prefetch = 0 : i64, scratch_operands = 0 : i64, tpu.core_type = #tpu.core_type<tc>, window_params = [{transform_indices = @transform_0, window_bounds = array<i64: 1, 6, 6, 128>}, {transform_indices = @transform_1, window_bounds = array<i64: 3, 3, 128>}, {transform_indices = @transform_2, window_bounds = array<i64: 1, 128>}, {transform_indices = @transform_3, window_bounds = array<i64: 1, 4, 4, 128>}]} {
    %c0 = arith.constant 0 : index
    %c0_0 = arith.constant 0 : index
    %c0_1 = arith.constant 0 : index
    %c0_2 = arith.constant 0 : index
    %0 = vector.load %arg2[%c0, %c0_0, %c0_1, %c0_2] : memref<1x6x6x128xbf16, #tpu.memory_space<vmem>>, vector<1x6x6x128xbf16>
    %1 = vector.shape_cast %0 : vector<1x6x6x128xbf16> to vector<6x6x128xbf16>
    %c0_3 = arith.constant 0 : index
    %c0_4 = arith.constant 0 : index
    %c0_5 = arith.constant 0 : index
    %2 = vector.load %arg3[%c0_3, %c0_4, %c0_5] : memref<3x3x128xf32, #tpu.memory_space<vmem>>, vector<3x3x128xf32>
    %c0_6 = arith.constant 0 : index
    %c0_7 = arith.constant 0 : index
    %3 = vector.load %arg4[%c0_6, %c0_7] : memref<1x128xf32, #tpu.memory_space<vmem>>, vector<1x128xf32>
    %4 = vector.shape_cast %3 : vector<1x128xf32> to vector<128xf32>
    %5 = arith.extf %1 : vector<6x6x128xbf16> to vector<6x6x128xf32>
    %cst = arith.constant 0.000000e+00 : f32
    %6 = vector.broadcast %cst : f32 to vector<4x4x128xf32>
    %7 = vector.extract_strided_slice %5 {offsets = [0, 0, 0], sizes = [4, 4, 128], strides = [1, 1, 1]} : vector<6x6x128xf32> to vector<4x4x128xf32>
    %8 = vector.extract_strided_slice %2 {offsets = [0, 0, 0], sizes = [1, 1, 128], strides = [1, 1, 1]} : vector<3x3x128xf32> to vector<1x1x128xf32>
    %9 = vector.shape_cast %8 : vector<1x1x128xf32> to vector<128xf32>
    %10 = vector.shape_cast %9 : vector<128xf32> to vector<1x1x128xf32>
    %11 = vector.broadcast %10 : vector<1x1x128xf32> to vector<4x4x128xf32>
    %12 = arith.mulf %7, %11 : vector<4x4x128xf32>
    %13 = arith.addf %6, %12 : vector<4x4x128xf32>
    %14 = vector.extract_strided_slice %5 {offsets = [0, 1, 0], sizes = [4, 4, 128], strides = [1, 1, 1]} : vector<6x6x128xf32> to vector<4x4x128xf32>
    %15 = vector.extract_strided_slice %2 {offsets = [0, 1, 0], sizes = [1, 1, 128], strides = [1, 1, 1]} : vector<3x3x128xf32> to vector<1x1x128xf32>
    %16 = vector.shape_cast %15 : vector<1x1x128xf32> to vector<128xf32>
    %17 = vector.shape_cast %16 : vector<128xf32> to vector<1x1x128xf32>
    %18 = vector.broadcast %17 : vector<1x1x128xf32> to vector<4x4x128xf32>
    %19 = arith.mulf %14, %18 : vector<4x4x128xf32>
    %20 = arith.addf %13, %19 : vector<4x4x128xf32>
    %21 = vector.extract_strided_slice %5 {offsets = [0, 2, 0], sizes = [4, 4, 128], strides = [1, 1, 1]} : vector<6x6x128xf32> to vector<4x4x128xf32>
    %22 = vector.extract_strided_slice %2 {offsets = [0, 2, 0], sizes = [1, 1, 128], strides = [1, 1, 1]} : vector<3x3x128xf32> to vector<1x1x128xf32>
    %23 = vector.shape_cast %22 : vector<1x1x128xf32> to vector<128xf32>
    %24 = vector.shape_cast %23 : vector<128xf32> to vector<1x1x128xf32>
    %25 = vector.broadcast %24 : vector<1x1x128xf32> to vector<4x4x128xf32>
    %26 = arith.mulf %21, %25 : vector<4x4x128xf32>
    %27 = arith.addf %20, %26 : vector<4x4x128xf32>
    %28 = vector.extract_strided_slice %5 {offsets = [1, 0, 0], sizes = [4, 4, 128], strides = [1, 1, 1]} : vector<6x6x128xf32> to vector<4x4x128xf32>
    %29 = vector.extract_strided_slice %2 {offsets = [1, 0, 0], sizes = [1, 1, 128], strides = [1, 1, 1]} : vector<3x3x128xf32> to vector<1x1x128xf32>
    %30 = vector.shape_cast %29 : vector<1x1x128xf32> to vector<128xf32>
    %31 = vector.shape_cast %30 : vector<128xf32> to vector<1x1x128xf32>
    %32 = vector.broadcast %31 : vector<1x1x128xf32> to vector<4x4x128xf32>
    %33 = arith.mulf %28, %32 : vector<4x4x128xf32>
    %34 = arith.addf %27, %33 : vector<4x4x128xf32>
    %35 = vector.extract_strided_slice %5 {offsets = [1, 1, 0], sizes = [4, 4, 128], strides = [1, 1, 1]} : vector<6x6x128xf32> to vector<4x4x128xf32>
    %36 = vector.extract_strided_slice %2 {offsets = [1, 1, 0], sizes = [1, 1, 128], strides = [1, 1, 1]} : vector<3x3x128xf32> to vector<1x1x128xf32>
    %37 = vector.shape_cast %36 : vector<1x1x128xf32> to vector<128xf32>
    %38 = vector.shape_cast %37 : vector<128xf32> to vector<1x1x128xf32>
    %39 = vector.broadcast %38 : vector<1x1x128xf32> to vector<4x4x128xf32>
    %40 = arith.mulf %35, %39 : vector<4x4x128xf32>
    %41 = arith.addf %34, %40 : vector<4x4x128xf32>
    %42 = vector.extract_strided_slice %5 {offsets = [1, 2, 0], sizes = [4, 4, 128], strides = [1, 1, 1]} : vector<6x6x128xf32> to vector<4x4x128xf32>
    %43 = vector.extract_strided_slice %2 {offsets = [1, 2, 0], sizes = [1, 1, 128], strides = [1, 1, 1]} : vector<3x3x128xf32> to vector<1x1x128xf32>
    %44 = vector.shape_cast %43 : vector<1x1x128xf32> to vector<128xf32>
    %45 = vector.shape_cast %44 : vector<128xf32> to vector<1x1x128xf32>
    %46 = vector.broadcast %45 : vector<1x1x128xf32> to vector<4x4x128xf32>
    %47 = arith.mulf %42, %46 : vector<4x4x128xf32>
    %48 = arith.addf %41, %47 : vector<4x4x128xf32>
    %49 = vector.extract_strided_slice %5 {offsets = [2, 0, 0], sizes = [4, 4, 128], strides = [1, 1, 1]} : vector<6x6x128xf32> to vector<4x4x128xf32>
    %50 = vector.extract_strided_slice %2 {offsets = [2, 0, 0], sizes = [1, 1, 128], strides = [1, 1, 1]} : vector<3x3x128xf32> to vector<1x1x128xf32>
    %51 = vector.shape_cast %50 : vector<1x1x128xf32> to vector<128xf32>
    %52 = vector.shape_cast %51 : vector<128xf32> to vector<1x1x128xf32>
    %53 = vector.broadcast %52 : vector<1x1x128xf32> to vector<4x4x128xf32>
    %54 = arith.mulf %49, %53 : vector<4x4x128xf32>
    %55 = arith.addf %48, %54 : vector<4x4x128xf32>
    %56 = vector.extract_strided_slice %5 {offsets = [2, 1, 0], sizes = [4, 4, 128], strides = [1, 1, 1]} : vector<6x6x128xf32> to vector<4x4x128xf32>
    %57 = vector.extract_strided_slice %2 {offsets = [2, 1, 0], sizes = [1, 1, 128], strides = [1, 1, 1]} : vector<3x3x128xf32> to vector<1x1x128xf32>
    %58 = vector.shape_cast %57 : vector<1x1x128xf32> to vector<128xf32>
    %59 = vector.shape_cast %58 : vector<128xf32> to vector<1x1x128xf32>
    %60 = vector.broadcast %59 : vector<1x1x128xf32> to vector<4x4x128xf32>
    %61 = arith.mulf %56, %60 : vector<4x4x128xf32>
    %62 = arith.addf %55, %61 : vector<4x4x128xf32>
    %63 = vector.extract_strided_slice %5 {offsets = [2, 2, 0], sizes = [4, 4, 128], strides = [1, 1, 1]} : vector<6x6x128xf32> to vector<4x4x128xf32>
    %64 = vector.extract_strided_slice %2 {offsets = [2, 2, 0], sizes = [1, 1, 128], strides = [1, 1, 1]} : vector<3x3x128xf32> to vector<1x1x128xf32>
    %65 = vector.shape_cast %64 : vector<1x1x128xf32> to vector<128xf32>
    %66 = vector.shape_cast %65 : vector<128xf32> to vector<1x1x128xf32>
    %67 = vector.broadcast %66 : vector<1x1x128xf32> to vector<4x4x128xf32>
    %68 = arith.mulf %63, %67 : vector<4x4x128xf32>
    %69 = arith.addf %62, %68 : vector<4x4x128xf32>
    %70 = vector.shape_cast %4 : vector<128xf32> to vector<1x1x128xf32>
    %71 = vector.broadcast %70 : vector<1x1x128xf32> to vector<4x4x128xf32>
    %72 = arith.addf %69, %71 : vector<4x4x128xf32>
    %73 = arith.mulf %72, %72 : vector<4x4x128xf32>
    %74 = arith.mulf %72, %73 : vector<4x4x128xf32>
    %cst_8 = arith.constant 4.471500e-02 : f32
    %75 = vector.broadcast %cst_8 : f32 to vector<4x4x128xf32>
    %76 = arith.mulf %75, %74 : vector<4x4x128xf32>
    %77 = arith.addf %72, %76 : vector<4x4x128xf32>
    %cst_9 = arith.constant 0.797884583 : f32
    %78 = vector.broadcast %cst_9 : f32 to vector<4x4x128xf32>
    %79 = arith.mulf %78, %77 : vector<4x4x128xf32>
    %80 = math.tanh %79 : vector<4x4x128xf32>
    %cst_10 = arith.constant 1.000000e+00 : f32
    %81 = vector.broadcast %cst_10 : f32 to vector<4x4x128xf32>
    %82 = arith.addf %81, %80 : vector<4x4x128xf32>
    %cst_11 = arith.constant 5.000000e-01 : f32
    %83 = vector.broadcast %cst_11 : f32 to vector<4x4x128xf32>
    %84 = arith.mulf %83, %82 : vector<4x4x128xf32>
    %85 = arith.mulf %72, %84 : vector<4x4x128xf32>
    %86 = arith.truncf %85 : vector<4x4x128xf32> to vector<4x4x128xbf16>
    %c0_12 = arith.constant 0 : index
    %c0_13 = arith.constant 0 : index
    %c0_14 = arith.constant 0 : index
    %c0_15 = arith.constant 0 : index
    %87 = vector.load %arg5[%c0_12, %c0_13, %c0_14, %c0_15] : memref<1x4x4x128xbf16, #tpu.memory_space<vmem>>, vector<1x4x4x128xbf16>
    %88 = vector.shape_cast %87 : vector<1x4x4x128xbf16> to vector<4x4x128xbf16>
    %89 = vector.shape_cast %86 : vector<4x4x128xbf16> to vector<1x4x4x128xbf16>
    tpu.vector_store %arg5[%c0_12, %c0_13, %c0_14, %c0_15], %89 {strides = array<i32>} : memref<1x4x4x128xbf16, #tpu.memory_space<vmem>>, vector<1x4x4x128xbf16>,
    return
  }
  func.func @transform_0(%arg0: i32, %arg1: i32) -> (i32, i32, i32, i32) {
    %c0_i32 = arith.constant 0 : i32
    %c0_i32_0 = arith.constant 0 : i32
    %c0_i32_1 = arith.constant 0 : i32
    return %arg0, %c0_i32, %c0_i32_0, %arg1 : i32, i32, i32, i32
  }
  func.func @transform_1(%arg0: i32, %arg1: i32) -> (i32, i32, i32) {
    %c0_i32 = arith.constant 0 : i32
    %c0_i32_0 = arith.constant 0 : i32
    %c0_i32_1 = arith.constant 0 : i32
    return %c0_i32, %c0_i32_0, %arg1 : i32, i32, i32
  }
  func.func @transform_2(%arg0: i32, %arg1: i32) -> (i32, i32) {
    %c0_i32 = arith.constant 0 : i32
    %c0_i32_0 = arith.constant 0 : i32
    return %c0_i32, %arg1 : i32, i32
  }
  func.func @transform_3(%arg0: i32, %arg1: i32) -> (i32, i32, i32, i32) {
    %c0_i32 = arith.constant 0 : i32
    %c0_i32_0 = arith.constant 0 : i32
    %c0_i32_1 = arith.constant 0 : i32
    return %arg0, %c0_i32, %c0_i32_0, %arg1 : i32, i32, i32, i32
  }
}

module attributes {stable_mosaic.version = 11 : i64} {
  func.func @kernel(%arg0: i32, %arg1: memref<32x32xbf16, #tpu.memory_space<vmem>>, %arg2: memref<1x32xf32, #tpu.memory_space<vmem>>, %arg3: memref<1x32xf32, #tpu.memory_space<vmem>>, %arg4: memref<32x32xf32, #tpu.memory_space<vmem>>) attributes {dimension_semantics = [#tpu.dimension_semantics<parallel>], iteration_bounds = array<i64: 1>, scalar_prefetch = 0 : i64, scratch_operands = 0 : i64, tpu.core_type = #tpu.core_type<tc>, window_params = [{transform_indices = @transform_0, window_bounds = array<i64: 32, 32>}, {pipeline_mode = #tpu.pipeline_mode<synchronous>, transform_indices = @transform_1, window_bounds = array<i64: 1, 32>}, {pipeline_mode = #tpu.pipeline_mode<synchronous>, transform_indices = @transform_2, window_bounds = array<i64: 1, 32>}, {transform_indices = @transform_3, window_bounds = array<i64: 32, 32>}]} {
    %c0 = arith.constant 0 : index
    %c0_0 = arith.constant 0 : index
    %0 = vector.load %arg1[%c0, %c0_0] : memref<32x32xbf16, #tpu.memory_space<vmem>>, vector<32x32xbf16>
    %1 = arith.extf %0 : vector<32x32xbf16> to vector<32x32xf32>
    %cst = arith.constant dense<0.000000e+00> : vector<32xf32>
    %2 = vector.multi_reduction <add>, %1, %cst [1] : vector<32x32xf32> to vector<32xf32>
    %3 = vector.shape_cast %2 : vector<32xf32> to vector<32x1xf32>
    %cst_1 = arith.constant 3.200000e+01 : f32
    %4 = vector.broadcast %cst_1 : f32 to vector<32x1xf32>
    %5 = arith.divf %3, %4 : vector<32x1xf32>
    %6 = vector.broadcast %5 : vector<32x1xf32> to vector<32x32xf32>
    %7 = arith.subf %1, %6 : vector<32x32xf32>
    %8 = arith.mulf %7, %7 : vector<32x32xf32>
    %cst_2 = arith.constant dense<0.000000e+00> : vector<32xf32>
    %9 = vector.multi_reduction <add>, %8, %cst_2 [1] : vector<32x32xf32> to vector<32xf32>
    %10 = vector.shape_cast %9 : vector<32xf32> to vector<32x1xf32>
    %cst_3 = arith.constant 3.200000e+01 : f32
    %11 = vector.broadcast %cst_3 : f32 to vector<32x1xf32>
    %12 = arith.divf %10, %11 : vector<32x1xf32>
    %cst_4 = arith.constant 9.99999997E-7 : f32
    %13 = vector.broadcast %cst_4 : f32 to vector<32x1xf32>
    %14 = arith.addf %12, %13 : vector<32x1xf32>
    %15 = math.rsqrt %14 : vector<32x1xf32>
    %16 = vector.broadcast %15 : vector<32x1xf32> to vector<32x32xf32>
    %17 = arith.mulf %7, %16 : vector<32x32xf32>
    %c0_5 = arith.constant 0 : index
    %c0_6 = arith.constant 0 : index
    %18 = vector.load %arg2[%c0_5, %c0_6] : memref<1x32xf32, #tpu.memory_space<vmem>>, vector<1x32xf32>
    %19 = vector.broadcast %18 : vector<1x32xf32> to vector<32x32xf32>
    %20 = arith.mulf %17, %19 : vector<32x32xf32>
    %c0_7 = arith.constant 0 : index
    %c0_8 = arith.constant 0 : index
    %21 = vector.load %arg3[%c0_7, %c0_8] : memref<1x32xf32, #tpu.memory_space<vmem>>, vector<1x32xf32>
    %22 = vector.broadcast %21 : vector<1x32xf32> to vector<32x32xf32>
    %23 = arith.addf %20, %22 : vector<32x32xf32>
    %c0_9 = arith.constant 0 : index
    %c0_10 = arith.constant 0 : index
    %24 = vector.load %arg4[%c0_9, %c0_10] : memref<32x32xf32, #tpu.memory_space<vmem>>, vector<32x32xf32>
    tpu.vector_store %arg4[%c0_9, %c0_10], %23 {strides = array<i32>} : memref<32x32xf32, #tpu.memory_space<vmem>>, vector<32x32xf32>,
    return
  }
  func.func @transform_0(%arg0: i32) -> (i32, i32) {
    %c0_i32 = arith.constant 0 : i32
    %c0_i32_0 = arith.constant 0 : i32
    return %arg0, %c0_i32 : i32, i32
  }
  func.func @transform_1(%arg0: i32) -> (i32, i32) {
    %c0_i32 = arith.constant 0 : i32
    %c0_i32_0 = arith.constant 0 : i32
    %c0_i32_1 = arith.constant 0 : i32
    return %c0_i32, %c0_i32_0 : i32, i32
  }
  func.func @transform_2(%arg0: i32) -> (i32, i32) {
    %c0_i32 = arith.constant 0 : i32
    %c0_i32_0 = arith.constant 0 : i32
    %c0_i32_1 = arith.constant 0 : i32
    return %c0_i32, %c0_i32_0 : i32, i32
  }
  func.func @transform_3(%arg0: i32) -> (i32, i32) {
    %c0_i32 = arith.constant 0 : i32
    %c0_i32_0 = arith.constant 0 : i32
    return %arg0, %c0_i32 : i32, i32
  }
}

module attributes {stable_mosaic.version = 11 : i64} {
  func.func @kernel(%arg0: i32, %arg1: i32, %arg2: memref<32x128xbf16, #tpu.memory_space<vmem>>, %arg3: memref<128x32xbf16, #tpu.memory_space<vmem>>, %arg4: memref<1x32xf32, #tpu.memory_space<vmem>>, %arg5: memref<32x32xbf16, #tpu.memory_space<vmem>>, %arg6: memref<32x32xbf16, #tpu.memory_space<vmem>>, %arg7: memref<32x32xf32, #tpu.memory_space<vmem>>) attributes {dimension_semantics = [#tpu.dimension_semantics<parallel>, #tpu.dimension_semantics<arbitrary>], iteration_bounds = array<i64: 1, 1>, scalar_prefetch = 0 : i64, scratch_operands = 1 : i64, tpu.core_type = #tpu.core_type<tc>, window_params = [{transform_indices = @transform_0, window_bounds = array<i64: 32, 128>}, {transform_indices = @transform_1, window_bounds = array<i64: 128, 32>}, {pipeline_mode = #tpu.pipeline_mode<synchronous>, transform_indices = @transform_2, window_bounds = array<i64: 1, 32>}, {transform_indices = @transform_3, window_bounds = array<i64: 32, 32>}, {transform_indices = @transform_4, window_bounds = array<i64: 32, 32>}]} {
    %c0_i32 = arith.constant 0 : i32
    %0 = arith.cmpi eq, %arg1, %c0_i32 : i32
    %1 = arith.extui %0 : i1 to i32
    %c0_i32_0 = arith.constant 0 : i32
    %2 = arith.cmpi ne, %1, %c0_i32_0 : i32
    scf.if %2 {
      %cst_10 = arith.constant 0.000000e+00 : f32
      %12 = vector.broadcast %cst_10 : f32 to vector<32x32xf32>
      %c0_11 = arith.constant 0 : index
      %c0_12 = arith.constant 0 : index
      %13 = vector.load %arg7[%c0_11, %c0_12] : memref<32x32xf32, #tpu.memory_space<vmem>>, vector<32x32xf32>
      tpu.vector_store %arg7[%c0_11, %c0_12], %12 {strides = array<i32>} : memref<32x32xf32, #tpu.memory_space<vmem>>, vector<32x32xf32>,
    } else {
    }
    %c0 = arith.constant 0 : index
    %c0_1 = arith.constant 0 : index
    %3 = vector.load %arg2[%c0, %c0_1] : memref<32x128xbf16, #tpu.memory_space<vmem>>, vector<32x128xbf16>
    %c0_2 = arith.constant 0 : index
    %c0_3 = arith.constant 0 : index
    %4 = vector.load %arg7[%c0_2, %c0_3] : memref<32x32xf32, #tpu.memory_space<vmem>>, vector<32x32xf32>
    %c0_4 = arith.constant 0 : index
    %c0_5 = arith.constant 0 : index
    %5 = vector.load %arg3[%c0_4, %c0_5] : memref<128x32xbf16, #tpu.memory_space<vmem>>, vector<128x32xbf16>
    %cst = arith.constant dense<0.000000e+00> : vector<32x32xf32>
    %6 = tpu.matmul %3, %5, %cst {dimension_numbers = #tpu.dot_dimension_numbers<[1], [0], [0], [1], [0, 0, 1, 1], [], []>} : vector<32x128xbf16>, vector<128x32xbf16>, vector<32x32xf32> -> vector<32x32xf32>
    %7 = arith.addf %4, %6 : vector<32x32xf32>
    %c0_6 = arith.constant 0 : index
    %c0_7 = arith.constant 0 : index
    %8 = vector.load %arg7[%c0_6, %c0_7] : memref<32x32xf32, #tpu.memory_space<vmem>>, vector<32x32xf32>
    tpu.vector_store %arg7[%c0_6, %c0_7], %7 {strides = array<i32>} : memref<32x32xf32, #tpu.memory_space<vmem>>, vector<32x32xf32>,
    %c0_i32_8 = arith.constant 0 : i32
    %9 = arith.cmpi eq, %arg1, %c0_i32_8 : i32
    %10 = arith.extui %9 : i1 to i32
    %c0_i32_9 = arith.constant 0 : i32
    %11 = arith.cmpi ne, %10, %c0_i32_9 : i32
    scf.if %11 {
      %c0_10 = arith.constant 0 : index
      %c0_11 = arith.constant 0 : index
      %12 = vector.load %arg7[%c0_10, %c0_11] : memref<32x32xf32, #tpu.memory_space<vmem>>, vector<32x32xf32>
      %c0_12 = arith.constant 0 : index
      %c0_13 = arith.constant 0 : index
      %13 = vector.load %arg4[%c0_12, %c0_13] : memref<1x32xf32, #tpu.memory_space<vmem>>, vector<1x32xf32>
      %14 = vector.broadcast %13 : vector<1x32xf32> to vector<32x32xf32>
      %15 = arith.addf %12, %14 : vector<32x32xf32>
      %c0_14 = arith.constant 0 : index
      %c0_15 = arith.constant 0 : index
      %16 = vector.load %arg5[%c0_14, %c0_15] : memref<32x32xbf16, #tpu.memory_space<vmem>>, vector<32x32xbf16>
      %17 = arith.extf %16 : vector<32x32xbf16> to vector<32x32xf32>
      %18 = arith.addf %15, %17 : vector<32x32xf32>
      %19 = arith.truncf %18 : vector<32x32xf32> to vector<32x32xbf16>
      %c0_16 = arith.constant 0 : index
      %c0_17 = arith.constant 0 : index
      %20 = vector.load %arg6[%c0_16, %c0_17] : memref<32x32xbf16, #tpu.memory_space<vmem>>, vector<32x32xbf16>
      tpu.vector_store %arg6[%c0_16, %c0_17], %19 {strides = array<i32>} : memref<32x32xbf16, #tpu.memory_space<vmem>>, vector<32x32xbf16>,
    } else {
    }
    return
  }
  func.func @transform_0(%arg0: i32, %arg1: i32) -> (i32, i32) {
    %c0_i32 = arith.constant 0 : i32
    return %arg0, %arg1 : i32, i32
  }
  func.func @transform_1(%arg0: i32, %arg1: i32) -> (i32, i32) {
    %c0_i32 = arith.constant 0 : i32
    %c0_i32_0 = arith.constant 0 : i32
    return %arg1, %c0_i32 : i32, i32
  }
  func.func @transform_2(%arg0: i32, %arg1: i32) -> (i32, i32) {
    %c0_i32 = arith.constant 0 : i32
    %c0_i32_0 = arith.constant 0 : i32
    %c0_i32_1 = arith.constant 0 : i32
    return %c0_i32, %c0_i32_0 : i32, i32
  }
  func.func @transform_3(%arg0: i32, %arg1: i32) -> (i32, i32) {
    %c0_i32 = arith.constant 0 : i32
    %c0_i32_0 = arith.constant 0 : i32
    return %arg0, %c0_i32 : i32, i32
  }
  func.func @transform_4(%arg0: i32, %arg1: i32) -> (i32, i32) {
    %c0_i32 = arith.constant 0 : i32
    %c0_i32_0 = arith.constant 0 : i32
    return %arg0, %c0_i32 : i32, i32
  }
}

</mosaic_0001>

<bundles_post_ra>
// kernel: mix_transformer_stage_forward.23
= control target key start
LH: loop header
LB: loop body
LE: loop exit
PB: predicated region body
PF: predicated region fallthrough
CT: control target
= control target key end

     0   :  { %vm24_vm0 = vcmask 261120   ;;  %v212_v2 = vmov 0.0   ;;  %v213_v18 = vmov 32.0   ;;  %vm157_vm5 = vcmask 257024   ;;  %s287_s1 = inlined_call_operand.vmem [shape: bf16[128,32], index: 1, kind: input, shape index: {}]   ;;  %s288_s0 = inlined_call_operand.vmem [shape: bf16[8,128], index: 0, kind: input, shape index: {}]   ;;  %s289_s2 = inlined_call_operand.vmem [shape: f32[1,32], index: 2, kind: input, shape index: {}]   ;;  %s290_s3 = inlined_call_operand.vmem [shape: f32[1,32], index: 3, kind: input, shape index: {}]   ;;  %s291_s4 = inlined_call_operand.vmem [shape: f32[1,32], index: 4, kind: input, shape index: {}]   ;;  %s292_s5 = inlined_call_operand.vmem [shape: bf16[8,32], index: 5, kind: output, shape index: {}]  }
   0x1   :  { %v202_v0 = vld [vmem:[%s287_s1 + $0x38] sm:$0xff]  ;;  %v201_v1 = vld [vmem:[%s287_s1 + $0x30] sm:$0xff]  ;;  %25 = vst.msk [vmem:[#allocation2] sm:$0xff] %vm24_vm0, %v212_v2  ;;  %v200_v3 = vld [vmem:[%s287_s1 + $0x28] sm:$0xff]  ;;  %208 = vrcp.f32 %v213_v18 }
   0x2   :  { %92 = vmatpush.bf16.msra.mxu0 %v202_v0  ;;  %v199_v4 = vld [vmem:[%s287_s1 + $0x20] sm:$0xff]  ;;  %v198_v5 = vld [vmem:[%s287_s1 + $0x18] sm:$0xff]  ;;  %v197_v6 = vld [vmem:[%s287_s1 + $0x10] sm:$0xff] }
   0x3   :  { %v196_v7 = vld [vmem:[%s287_s1 + $0x8] sm:$0xff]  ;;  %v195_v8 = vld [vmem:[%s287_s1] sm:$0xff] }
   0x4   :  { %v26_v9 = vld [vmem:[%s288_s0] sm:$0xf] }
   0x5   :  { %v205_v13 = vld [vmem:[%s289_s2] ss:$0 sm:$0xff] }
   0x6   :  { %93 = vmatpush.bf16.msra.mxu0 %v201_v1  ;;  %v206_v39 = vld [vmem:[%s290_s3] ss:$0 sm:$0xff] }
   0x7   :  { %v209_v19 = vpop.eup %208  ;;  %v207_v41 = vld [vmem:[%s291_s4] ss:$0 sm:$0xff] }
   0x8   :  { %v27_v10 = vld [vmem:[#allocation2] sm:$0xff]  ;;  %v121_v20 = vmul.f32 32.0, %v209_v19  ;;  %vm125_vm1 = vweird.f32 %v209_v19 }
   0xa   :  { %94 = vmatpush.bf16.msra.mxu0 %v200_v3  ;;  %v122_v21 = vsub.f32 1.0, %v121_v20 }
   0xc   :  { %v123_v22 = vmul.f32 %v209_v19, %v122_v21 }
   0xe   :  { %95 = vmatpush.bf16.msra.mxu0 %v199_v4  ;;  %v124_v23 = vadd.f32 %v209_v19, %v123_v22 }
  0x10   :  { %v126_v24 = vsel %vm125_vm1, %v209_v19, %v124_v23 }
  0x12   :  { %96 = vmatpush.bf16.msra.mxu0 %v198_v5 }
  0x16   :  { %97 = vmatpush.bf16.msra.mxu0 %v197_v6 }
  0x1a   :  { %98 = vmatpush.bf16.msra.mxu0 %v196_v7 }
  0x1e   :  { %99 = vmatpush.bf16.msra.mxu0 %v195_v8 }
  0x21   :  { %100 = vmatmul.bf16.vlgmr.msra.gmra.mxu0 %v26_v9 }
  0x9e   :  { %v101_v11 = vpop.f32.mrf.mxu0 }
  0x9f   :  { %v105_v12 = vadd.f32 %v101_v11, %v27_v10 }
  0xa1   :  { %107 = vst.msk [vmem:[#allocation2] sm:$0xff] %vm24_vm0, %v105_v12 }
  0xa6   :  { %v103_v14 = vpop.f32.mrf.mxu0 }
  0xa8   :  { %v111_v15 = vld [vmem:[#allocation2] sm:$0xff] }
  0xa9   :  { %v116_v16 = vadd.f32 %v205_v13, %v111_v15 }
  0xab   :  { %v117_v17 = vsel %vm24_vm0, %v116_v16, 0.0 }
  0xac   :  { %118 = vadd.xlane.f32.xlu0 %v117_v17 }
 0x11f   :  { %v119_v25 = vpop.xlane.xlu0 %118 }
 0x120   :  { %v127_v26 = vmul.f32 %v126_v24, %v119_v25 }
 0x122   :  { %v128_v27 = vsub.f32 %v116_v16, %v127_v26 }
 0x124   :  { %v129_v28 = vmul.f32 %v128_v27, %v128_v27 }
 0x126   :  { %v130_v29 = vsel %vm24_vm0, %v129_v28, 0.0 }
 0x127   :  { %131 = vadd.xlane.f32.xlu0 %v130_v29 }
 0x19a   :  { %v132_v30 = vpop.xlane.xlu0 %131 }
 0x19b   :  { %v133_v31 = vmul.f32 %v132_v30, %v126_v24 }
 0x19d   :  { %v134_v32 = vadd.f32 1e-05, %v133_v31 }
 0x19f   :  { %210 = vrsqrt.f32 %v134_v32  ;;  %vm141_vm3 = vweird.f32 %v134_v32 }
 0x1a5   :  { %v211_v33 = vpop.eup %210 }
 0x1a6   :  { %v136_v34 = vmul.f32 %v211_v33, %v134_v32  ;;  %vm142_vm2 = vweird.f32 %v211_v33 }
 0x1a7   :  { %vm143_vm4 = vmor %vm141_vm3, %vm142_vm2 }
 0x1a8   :  { %v137_v35 = vmul.f32 %v211_v33, %v136_v34 }
 0x1aa   :  { %v138_v36 = vmul.f32 0.5, %v137_v35 }
 0x1ac   :  { %v139_v37 = vsub.f32 1.5, %v138_v36 }
 0x1ae   :  { %v140_v38 = vmul.f32 %v211_v33, %v139_v37 }
 0x1b0   :  { %v144_v40 = vsel %vm143_vm4, %v211_v33, %v140_v38 }
 0x1b1   :  { %v145_v42 = vmul.f32 %v144_v40, %v128_v27 }
 0x1b3   :  { %v150_v43 = vmul.f32 %v206_v39, %v145_v42 }
 0x1b5   :  { %v155_v44 = vadd.f32 %v207_v41, %v150_v43 }
 0x1b7   :  { %v156_v45 = vpack.c.bf16 %v155_v44, %v155_v44 }
 0x1b9   :  { %158 = vst.msk [vmem:[%s292_s5] sm:$0xf] %vm157_vm5, %v156_v45 }

// kernel: mix_transformer_stage_forward.20
= control target key start
LH: loop header
LB: loop body
LE: loop exit
PB: predicated region body
PF: predicated region fallthrough
CT: control target
= control target key end

     0   :  { %vm24_vm0 = vcmask 261120   ;;  %v502_v28 = vmov 0.0   ;;  %v503_v62 = vmov 32.0   ;;  %vm362_vm8 = vcmask 257024   ;;  %s662_s1 = inlined_call_operand.vmem [shape: bf16[256,32], index: 1, kind: input, shape index: {}]   ;;  %s663_s0 = inlined_call_operand.vmem [shape: bf16[32,256], index: 0, kind: input, shape index: {}]   ;;  %s664_s2 = inlined_call_operand.vmem [shape: f32[1,32], index: 2, kind: input, shape index: {}]   ;;  %s665_s3 = inlined_call_operand.vmem [shape: f32[1,32], index: 3, kind: input, shape index: {}]   ;;  %s666_s4 = inlined_call_operand.vmem [shape: f32[1,32], index: 4, kind: input, shape index: {}]   ;;  %s667_s5 = inlined_call_operand.vmem [shape: bf16[32,32], index: 5, kind: output, shape index: {}]  }
   0x1   :  { %v462_v0 = vld [vmem:[%s662_s1 + $0x38] sm:$0xff]  ;;  %v461_v2 = vld [vmem:[%s662_s1 + $0x30] sm:$0xff]  ;;  %v460_v4 = vld [vmem:[%s662_s1 + $0x28] sm:$0xff]  ;;  %25 = vst.msk [vmem:[#allocation2] sm:$0xff] %vm24_vm0, %v502_v28  ;;  %492 = vrcp.f32 %v503_v62 }
   0x2   :  { %v470_v1 = vld [vmem:[%s662_s1 + $0x78] sm:$0xff]  ;;  %185 = vmatpush.bf16.msra.mxu0 %v462_v0  ;;  %471 = vmatpush.bf16.msra.mxu2 %v462_v0  ;;  %v469_v3 = vld [vmem:[%s662_s1 + $0x70] sm:$0xff]  ;;  %v468_v5 = vld [vmem:[%s662_s1 + $0x68] sm:$0xff]  ;;  %26 = vst.msk [vmem:[#allocation2 + $0x8] sm:$0xff] %vm24_vm0, %v502_v28 }
   0x3   :  { %204 = vmatpush.bf16.msra.mxu1 %v470_v1  ;;  %479 = vmatpush.bf16.msra.mxu3 %v470_v1  ;;  %v459_v6 = vld [vmem:[%s662_s1 + $0x20] sm:$0xff]  ;;  %v458_v8 = vld [vmem:[%s662_s1 + $0x18] sm:$0xff]  ;;  %v457_v10 = vld [vmem:[%s662_s1 + $0x10] sm:$0xff]  ;;  %27 = vst.msk [vmem:[#allocation2 + $0x10] sm:$0xff] %vm24_vm0, %v502_v28 }
   0x4   :  { %v467_v7 = vld [vmem:[%s662_s1 + $0x60] sm:$0xff]  ;;  %v466_v9 = vld [vmem:[%s662_s1 + $0x58] sm:$0xff]  ;;  %v465_v11 = vld [vmem:[%s662_s1 + $0x50] sm:$0xff]  ;;  %28 = vst.msk [vmem:[#allocation2 + $0x18] sm:$0xff] %vm24_vm0, %v502_v28 }
   0x5   :  { %v456_v12 = vld [vmem:[%s662_s1 + $0x8] sm:$0xff]  ;;  %v455_v14 = vld [vmem:[%s662_s1] sm:$0xff]  ;;  %v381_v18 = vld [vmem:[%s663_s0 + $0x10] sm:$0xf] }
   0x6   :  { %186 = vmatpush.bf16.msra.mxu0 %v461_v2  ;;  %472 = vmatpush.bf16.msra.mxu2 %v461_v2  ;;  %v464_v13 = vld [vmem:[%s662_s1 + $0x48] sm:$0xff]  ;;  %v463_v15 = vld [vmem:[%s662_s1 + $0x40] sm:$0xff]  ;;  %v454_v19 = vld [vmem:[%s663_s0 + $0x14] sm:$0xf0] }
   0x7   :  { %205 = vmatpush.bf16.msra.mxu1 %v469_v3  ;;  %480 = vmatpush.bf16.msra.mxu3 %v469_v3  ;;  %v373_v16 = vld [vmem:[%s663_s0] sm:$0xf]  ;;  %v452_v17 = vld [vmem:[%s663_s0 + $0x4] sm:$0xf0]  ;;  %v451_v20 = vld [vmem:[%s663_s0 + $0x4] sm:$0xf]  ;;  %v382_v25 = vor.u32 %v454_v19, %v381_v18  ;;  %v493_v63 = vpop.eup %492 }
   0x8   :  { %v375_v21 = vld [vmem:[%s663_s0 + $0x8] sm:$0xf0]  ;;  %v453_v22 = vld [vmem:[%s663_s0 + $0x14] sm:$0xf]  ;;  %v383_v23 = vld [vmem:[%s663_s0 + $0x18] sm:$0xf0]  ;;  %v374_v24 = vor.u32 %v452_v17, %v373_v16  ;;  %vm264_vm1 = vweird.f32 %v493_v63 }
   0x9   :  { %v378_v26 = vor.u32 %v451_v20, %v375_v21  ;;  %v386_v27 = vor.u32 %v453_v22, %v383_v23  ;;  %v33_v30 = vld [vmem:[#allocation2] sm:$0xff]  ;;  %v34_v39 = vld [vmem:[#allocation2 + $0x8] sm:$0xff]  ;;  %v260_v0 = vmul.f32 32.0, %v493_v63 }
   0xa   :  { %187 = vmatpush.bf16.msra.mxu0 %v460_v4  ;;  %473 = vmatpush.bf16.msra.mxu2 %v460_v4  ;;  %v35_v35 = vld [vmem:[#allocation2 + $0x10] sm:$0xff]  ;;  %v489_v43 = vld [vmem:[%s664_s2] ss:$0 sm:$0xff] }
   0xb   :  { %206 = vmatpush.bf16.msra.mxu1 %v468_v5  ;;  %481 = vmatpush.bf16.msra.mxu3 %v468_v5  ;;  %v36_v48 = vld [vmem:[#allocation2 + $0x18] sm:$0xff]  ;;  %v261_v1 = vsub.f32 1.0, %v260_v0 }
   0xd   :  { %v262_v2 = vmul.f32 %v493_v63, %v261_v1 }
   0xe   :  { %188 = vmatpush.bf16.msra.mxu0 %v459_v6  ;;  %474 = vmatpush.bf16.msra.mxu2 %v459_v6 }
   0xf   :  { %207 = vmatpush.bf16.msra.mxu1 %v467_v7  ;;  %482 = vmatpush.bf16.msra.mxu3 %v467_v7  ;;  %v263_v3 = vadd.f32 %v493_v63, %v262_v2 }
  0x11   :  { %v265_v4 = vsel %vm264_vm1, %v493_v63, %v263_v3 }
  0x12   :  { %189 = vmatpush.bf16.msra.mxu0 %v458_v8  ;;  %475 = vmatpush.bf16.msra.mxu2 %v458_v8 }
  0x13   :  { %208 = vmatpush.bf16.msra.mxu1 %v466_v9  ;;  %483 = vmatpush.bf16.msra.mxu3 %v466_v9 }
  0x16   :  { %190 = vmatpush.bf16.msra.mxu0 %v457_v10  ;;  %476 = vmatpush.bf16.msra.mxu2 %v457_v10 }
  0x17   :  { %209 = vmatpush.bf16.msra.mxu1 %v465_v11  ;;  %484 = vmatpush.bf16.msra.mxu3 %v465_v11 }
  0x1a   :  { %191 = vmatpush.bf16.msra.mxu0 %v456_v12  ;;  %477 = vmatpush.bf16.msra.mxu2 %v456_v12 }
  0x1b   :  { %210 = vmatpush.bf16.msra.mxu1 %v464_v13  ;;  %485 = vmatpush.bf16.msra.mxu3 %v464_v13 }
  0x1e   :  { %192 = vmatpush.bf16.msra.mxu0 %v455_v14  ;;  %478 = vmatpush.bf16.msra.mxu2 %v455_v14 }
  0x1f   :  { %211 = vmatpush.bf16.msra.mxu1 %v463_v15  ;;  %486 = vmatpush.bf16.msra.mxu3 %v463_v15 }
  0x21   :  { %193 = vmatmul.bf16.vlgmr.msra.gmra.mxu0 %v374_v24  ;;  %198 = vmatmul.bf16.vlgmr.msra.gmra.mxu2 %v382_v25 }
  0x22   :  { %212 = vmatmul.bf16.vlgmr.msra.gmra.mxu1 %v378_v26  ;;  %217 = vmatmul.bf16.vlgmr.msra.gmra.mxu3 %v386_v27 }
  0x9e   :  { %v194_v29 = vpop.f32.mrf.mxu0 }
  0x9f   :  { %v213_v31 = vpop.f32.mrf.mxu1 }
  0xa0   :  { %v214_v32 = vadd.f32 %v213_v31, %v194_v29 }
  0xa2   :  { %v223_v33 = vadd.f32 %v214_v32, %v33_v30 }
  0xa4   :  { %228 = vst.msk [vmem:[#allocation2] sm:$0xff] %vm24_vm0, %v223_v33  ;;  %v199_v34 = vpop.f32.mrf.mxu2 }
  0xa5   :  { %v218_v36 = vpop.f32.mrf.mxu3 }
  0xa6   :  { %v219_v37 = vadd.f32 %v218_v36, %v199_v34  ;;  %v196_v38 = vpop.f32.mrf.mxu0 }
  0xa7   :  { %v215_v40 = vpop.f32.mrf.mxu1 }
  0xa8   :  { %v225_v41 = vadd.f32 %v219_v37, %v35_v35  ;;  %v216_v42 = vadd.f32 %v215_v40, %v196_v38 }
  0xaa   :  { %230 = vst.msk [vmem:[#allocation2 + $0x10] sm:$0xff] %vm24_vm0, %v225_v41  ;;  %v224_v44 = vadd.f32 %v216_v42, %v34_v39 }
  0xab   :  { %v235_v45 = vld [vmem:[#allocation2] sm:$0xff] }
  0xac   :  { %229 = vst.msk [vmem:[#allocation2 + $0x8] sm:$0xff] %vm24_vm0, %v224_v44  ;;  %v201_v46 = vpop.f32.mrf.mxu2  ;;  %v243_v47 = vadd.f32 %v489_v43, %v235_v45 }
  0xad   :  { %v220_v49 = vpop.f32.mrf.mxu3 }
  0xae   :  { %v221_v50 = vadd.f32 %v220_v49, %v201_v46  ;;  %v247_v51 = vsel %vm24_vm0, %v243_v47, 0.0 }
  0xaf   :  { %248 = vadd.xlane.f32.xlu0 %v247_v51 }
  0xb0   :  { %v226_v52 = vadd.f32 %v221_v50, %v36_v48  ;;  %v490_v48 = vld [vmem:[%s665_s3] ss:$0 sm:$0xff] }
  0xb1   :  { %v237_v53 = vld [vmem:[#allocation2 + $0x10] sm:$0xff] }
  0xb2   :  { %231 = vst.msk [vmem:[#allocation2 + $0x18] sm:$0xff] %vm24_vm0, %v226_v52  ;;  %v245_v54 = vadd.f32 %v489_v43, %v237_v53  ;;  %v491_v52 = vld [vmem:[%s666_s4] ss:$0 sm:$0xff] }
  0xb3   :  { %v236_v55 = vld [vmem:[#allocation2 + $0x8] sm:$0xff] }
  0xb4   :  { %v253_v56 = vsel %vm24_vm0, %v245_v54, 0.0  ;;  %v244_v57 = vadd.f32 %v489_v43, %v236_v55 }
  0xb5   :  { %254 = vadd.xlane.f32.xlu1 %v253_v56 }
  0xb6   :  { %v250_v58 = vsel %vm24_vm0, %v244_v57, 0.0 }
  0xb7   :  { %251 = vadd.xlane.f32.xlu0 %v250_v58 }
  0xb9   :  { %v238_v59 = vld [vmem:[#allocation2 + $0x18] sm:$0xff] }
  0xba   :  { %v246_v60 = vadd.f32 %v489_v43, %v238_v59 }
  0xbc   :  { %v256_v61 = vsel %vm24_vm0, %v246_v60, 0.0 }
  0xbd   :  { %257 = vadd.xlane.f32.xlu1 %v256_v61 }
 0x122   :  { %v249_v5 = vpop.xlane.xlu0 %248 }
 0x123   :  { %v266_v6 = vmul.f32 %v265_v4, %v249_v5 }
 0x125   :  { %v270_v7 = vsub.f32 %v243_v47, %v266_v6 }
 0x127   :  { %v274_v8 = vmul.f32 %v270_v7, %v270_v7 }
 0x128   :  { %v255_v9 = vpop.xlane.xlu1 %254 }
 0x129   :  { %v268_v10 = vmul.f32 %v265_v4, %v255_v9  ;;  %v278_v11 = vsel %vm24_vm0, %v274_v8, 0.0 }
 0x12a   :  { %279 = vadd.xlane.f32.xlu2 %v278_v11  ;;  %v252_v12 = vpop.xlane.xlu0 %251 }
 0x12b   :  { %v622_v13 = vsub.f32 %v245_v54, %v268_v10  ;;  %v267_v14 = vmul.f32 %v265_v4, %v252_v12 }
 0x12d   :  { %v624_v15 = vsub.f32 %v244_v57, %v267_v14  ;;  %v276_v16 = vmul.f32 %v622_v13, %v622_v13 }
 0x12f   :  { %v284_v17 = vsel %vm24_vm0, %v276_v16, 0.0  ;;  %v275_v18 = vmul.f32 %v624_v15, %v624_v15 }
 0x130   :  { %v258_v19 = vpop.xlane.xlu1 %257  ;;  %285 = vadd.xlane.f32.xlu0 %v284_v17 }
 0x131   :  { %v269_v20 = vmul.f32 %v265_v4, %v258_v19  ;;  %v281_v21 = vsel %vm24_vm0, %v275_v18, 0.0 }
 0x132   :  { %282 = vadd.xlane.f32.xlu2 %v281_v21 }
 0x133   :  { %v632_v22 = vsub.f32 %v246_v60, %v269_v20 }
 0x135   :  { %v277_v23 = vmul.f32 %v632_v22, %v632_v22 }
 0x137   :  { %v287_v24 = vsel %vm24_vm0, %v277_v23, 0.0 }
 0x138   :  { %288 = vadd.xlane.f32.xlu1 %v287_v24 }
 0x19d   :  { %v280_v25 = vpop.xlane.xlu2 %279 }
 0x19e   :  { %v290_v26 = vmul.f32 %v280_v25, %v265_v4 }
 0x1a0   :  { %v294_v27 = vadd.f32 1e-05, %v290_v26 }
 0x1a2   :  { %494 = vrsqrt.f32 %v294_v27  ;;  %vm304_vm3 = vweird.f32 %v294_v27 }
 0x1a3   :  { %v286_v28 = vpop.xlane.xlu0 %285 }
 0x1a4   :  { %v292_v29 = vmul.f32 %v286_v28, %v265_v4 }
 0x1a5   :  { %v283_v30 = vpop.xlane.xlu2 %282 }
 0x1a6   :  { %v296_v31 = vadd.f32 1e-05, %v292_v29  ;;  %v291_v32 = vmul.f32 %v283_v30, %v265_v4 }
 0x1a8   :  { %v495_v33 = vpop.eup %494  ;;  %496 = vrsqrt.f32 %v296_v31  ;;  %v295_v34 = vadd.f32 1e-05, %v291_v32  ;;  %vm324_vm6 = vweird.f32 %v296_v31 }
 0x1a9   :  { %v299_v35 = vmul.f32 %v495_v33, %v294_v27  ;;  %vm305_vm2 = vweird.f32 %v495_v33 }
 0x1aa   :  { %498 = vrsqrt.f32 %v295_v34  ;;  %vm306_vm4 = vmor %vm304_vm3, %vm305_vm2  ;;  %vm314_vm10 = vweird.f32 %v295_v34 }
 0x1ab   :  { %v300_v36 = vmul.f32 %v495_v33, %v299_v35  ;;  %v289_v37 = vpop.xlane.xlu1 %288 }
 0x1ac   :  { %v293_v38 = vmul.f32 %v289_v37, %v265_v4 }
 0x1ad   :  { %v301_v39 = vmul.f32 0.5, %v300_v36 }
 0x1ae   :  { %v497_v40 = vpop.eup %496  ;;  %v297_v41 = vadd.f32 1e-05, %v293_v38 }
 0x1af   :  { %v302_v42 = vsub.f32 1.5, %v301_v39  ;;  %v319_v43 = vmul.f32 %v497_v40, %v296_v31  ;;  %vm325_vm5 = vweird.f32 %v497_v40 }
 0x1b0   :  { %v499_v44 = vpop.eup %498  ;;  %500 = vrsqrt.f32 %v297_v41  ;;  %vm326_vm9 = vmor %vm324_vm6, %vm325_vm5  ;;  %vm334_vm13 = vweird.f32 %v297_v41 }
 0x1b1   :  { %v303_v45 = vmul.f32 %v495_v33, %v302_v42  ;;  %v320_v46 = vmul.f32 %v497_v40, %v319_v43  ;;  %v309_v47 = vmul.f32 %v499_v44, %v295_v34  ;;  %vm315_vm7 = vweird.f32 %v499_v44 }
 0x1b2   :  { %vm316_vm11 = vmor %vm314_vm10, %vm315_vm7 }
 0x1b3   :  { %v307_v49 = vsel %vm306_vm4, %v495_v33, %v303_v45  ;;  %v321_v50 = vmul.f32 0.5, %v320_v46  ;;  %v310_v51 = vmul.f32 %v499_v44, %v309_v47 }
 0x1b4   :  { %v338_v53 = vmul.f32 %v307_v49, %v270_v7 }
 0x1b5   :  { %v322_v54 = vsub.f32 1.5, %v321_v50  ;;  %v311_v55 = vmul.f32 0.5, %v310_v51 }
 0x1b6   :  { %v501_v56 = vpop.eup %500  ;;  %v346_v57 = vmul.f32 %v490_v48, %v338_v53 }
 0x1b7   :  { %v323_v58 = vmul.f32 %v497_v40, %v322_v54  ;;  %v312_v59 = vsub.f32 1.5, %v311_v55  ;;  %v329_v60 = vmul.f32 %v501_v56, %v297_v41  ;;  %vm335_vm12 = vweird.f32 %v501_v56 }
 0x1b8   :  { %v354_v61 = vadd.f32 %v491_v52, %v346_v57  ;;  %vm336_vm14 = vmor %vm334_vm13, %vm335_vm12 }
 0x1b9   :  { %v327_v62 = vsel %vm326_vm9, %v497_v40, %v323_v58  ;;  %v313_v63 = vmul.f32 %v499_v44, %v312_v59  ;;  %v330_v0 = vmul.f32 %v501_v56, %v329_v60 }
 0x1ba   :  { %v358_v1 = vpack.c.bf16 %v354_v61, %v354_v61  ;;  %v340_v2 = vmul.f32 %v327_v62, %v622_v13 }
 0x1bb   :  { %v317_v3 = vsel %vm316_vm11, %v499_v44, %v313_v63  ;;  %v331_v4 = vmul.f32 0.5, %v330_v0 }
 0x1bc   :  { %363 = vst.msk [vmem:[%s667_s5] sm:$0xf] %vm362_vm8, %v358_v1  ;;  %v348_v5 = vmul.f32 %v490_v48, %v340_v2  ;;  %v339_v6 = vmul.f32 %v317_v3, %v624_v15 }
 0x1bd   :  { %v332_v7 = vsub.f32 1.5, %v331_v4 }
 0x1be   :  { %v356_v8 = vadd.f32 %v491_v52, %v348_v5  ;;  %v347_v9 = vmul.f32 %v490_v48, %v339_v6 }
 0x1bf   :  { %v333_v10 = vmul.f32 %v501_v56, %v332_v7 }
 0x1c0   :  { %v360_v11 = vpack.c.bf16 %v356_v8, %v356_v8  ;;  %v355_v12 = vadd.f32 %v491_v52, %v347_v9 }
 0x1c1   :  { %v337_v13 = vsel %vm336_vm14, %v501_v56, %v333_v10 }
 0x1c2   :  { %365 = vst.msk [vmem:[%s667_s5 + $0x8] sm:$0xf] %vm362_vm8, %v360_v11  ;;  %v359_v14 = vpack.c.bf16 %v355_v12, %v355_v12  ;;  %v341_v16 = vmul.f32 %v337_v13, %v632_v22 }
 0x1c4   :  { %364 = vst.msk [vmem:[%s667_s5 + $0x4] sm:$0xf] %vm362_vm8, %v359_v14  ;;  %v349_v15 = vmul.f32 %v490_v48, %v341_v16 }
 0x1c6   :  { %v357_v17 = vadd.f32 %v491_v52, %v349_v15 }
 0x1c8   :  { %v361_v18 = vpack.c.bf16 %v357_v17, %v357_v17 }
 0x1ca   :  { %366 = vst.msk [vmem:[%s667_s5 + $0xc] sm:$0xf] %vm362_vm8, %v361_v18 }

// kernel: mix_transformer_stage_forward.21
= control target key start
LH: loop header
LB: loop body
LE: loop exit
PB: predicated region body
PF: predicated region fallthrough
CT: control target
= control target key end

     0   :  { %vm22_vm0 = vcmask 261120   ;;  %v169_v10 = vmov 32.0   ;;  %vm138_vm10 = vcmask 257024   ;;  %s241_s0 = inlined_call_operand.vmem [shape: bf16[32,32], index: 0, kind: input, shape index: {}]   ;;  %s242_s1 = inlined_call_operand.vmem [shape: f32[1,32], index: 1, kind: input, shape index: {}]   ;;  %s243_s2 = inlined_call_operand.vmem [shape: f32[1,32], index: 2, kind: input, shape index: {}]   ;;  %s244_s3 = inlined_call_operand.vmem [shape: bf16[32,32], index: 3, kind: output, shape index: {}]  }
   0x1   :  { %v155_v0 = vld [vmem:[%s241_s0 + $0x8] sm:$0xff]   ;;  %v148_v1 = vld [vmem:[%s241_s0] sm:$0xff]   ;;  %159 = vrcp.f32 %v169_v10 }
   0x2   :  { %v153_v2 = vunpack.c.l.bf16 %v155_v0  ;;  %v149_v3 = vunpack.c.l.bf16 %v148_v1  ;;  %v154_v6 = vunpack.c.h.bf16 %v155_v0  ;;  %v150_v7 = vunpack.c.h.bf16 %v148_v1  ;;  %v157_v63 = vld [vmem:[%s242_s1] ss:$0 sm:$0xff] }
   0x4   :  { %v29_v4 = vsel %vm22_vm0, %v153_v2, 0.0  ;;  %v23_v5 = vsel %vm22_vm0, %v149_v3, 0.0  ;;  %v32_v8 = vsel %vm22_vm0, %v154_v6, 0.0  ;;  %v26_v9 = vsel %vm22_vm0, %v150_v7, 0.0 }
   0x5   :  { %30 = vadd.xlane.f32.xlu1 %v29_v4  ;;  %24 = vadd.xlane.f32.xlu0 %v23_v5  ;;  %v158_v4 = vld [vmem:[%s243_s2] ss:$0 sm:$0xff] }
   0x7   :  { %v160_v11 = vpop.eup %159 }
   0x8   :  { %v36_v12 = vmul.f32 32.0, %v160_v11  ;;  %vm40_vm1 = vweird.f32 %v160_v11 }
   0xa   :  { %v37_v13 = vsub.f32 1.0, %v36_v12 }
   0xc   :  { %v38_v14 = vmul.f32 %v160_v11, %v37_v13 }
   0xd   :  { %33 = vadd.xlane.f32.xlu1 %v32_v8  ;;  %27 = vadd.xlane.f32.xlu0 %v26_v9 }
   0xe   :  { %v39_v15 = vadd.f32 %v160_v11, %v38_v14 }
  0x10   :  { %v41_v16 = vsel %vm40_vm1, %v160_v11, %v39_v15 }
  0x78   :  { %v31_v17 = vpop.xlane.xlu1 %30  ;;  %v25_v18 = vpop.xlane.xlu0 %24 }
  0x79   :  { %v44_v19 = vmul.f32 %v41_v16, %v31_v17  ;;  %v42_v20 = vmul.f32 %v41_v16, %v25_v18 }
  0x7b   :  { %v200_v21 = vsub.f32 %v153_v2, %v44_v19  ;;  %v46_v22 = vsub.f32 %v149_v3, %v42_v20 }
  0x7d   :  { %v52_v23 = vmul.f32 %v200_v21, %v200_v21  ;;  %v50_v24 = vmul.f32 %v46_v22, %v46_v22 }
  0x7f   :  { %v60_v25 = vsel %vm22_vm0, %v52_v23, 0.0  ;;  %v54_v26 = vsel %vm22_vm0, %v50_v24, 0.0 }
  0x80   :  { %v34_v27 = vpop.xlane.xlu1 %33  ;;  %61 = vadd.xlane.f32.xlu0 %v60_v25  ;;  %55 = vadd.xlane.f32.xlu2 %v54_v26  ;;  %v28_v28 = vpop.xlane.xlu0 %27 }
  0x81   :  { %v45_v29 = vmul.f32 %v41_v16, %v34_v27  ;;  %v43_v30 = vmul.f32 %v41_v16, %v28_v28 }
  0x83   :  { %v206_v31 = vsub.f32 %v154_v6, %v45_v29  ;;  %v208_v32 = vsub.f32 %v150_v7, %v43_v30 }
  0x85   :  { %v53_v33 = vmul.f32 %v206_v31, %v206_v31  ;;  %v51_v34 = vmul.f32 %v208_v32, %v208_v32 }
  0x87   :  { %v63_v35 = vsel %vm22_vm0, %v53_v33, 0.0  ;;  %v57_v36 = vsel %vm22_vm0, %v51_v34, 0.0 }
  0x88   :  { %64 = vadd.xlane.f32.xlu1 %v63_v35  ;;  %58 = vadd.xlane.f32.xlu2 %v57_v36 }
  0xf3   :  { %v56_v37 = vpop.xlane.xlu2 %55  ;;  %v62_v38 = vpop.xlane.xlu0 %61 }
  0xf4   :  { %v66_v39 = vmul.f32 %v56_v37, %v41_v16  ;;  %v68_v40 = vmul.f32 %v62_v38, %v41_v16 }
  0xf6   :  { %v70_v41 = vadd.f32 1e-06, %v66_v39  ;;  %v72_v42 = vadd.f32 1e-06, %v68_v40 }
  0xf8   :  { %161 = vrsqrt.f32 %v70_v41  ;;  %vm80_vm4 = vweird.f32 %v70_v41  ;;  %vm100_vm6 = vweird.f32 %v72_v42 }
  0xf9   :  { %163 = vrsqrt.f32 %v72_v42 }
  0xfb   :  { %v65_v43 = vpop.xlane.xlu1 %64  ;;  %v59_v44 = vpop.xlane.xlu2 %58 }
  0xfc   :  { %v69_v45 = vmul.f32 %v65_v43, %v41_v16  ;;  %v67_v46 = vmul.f32 %v59_v44, %v41_v16 }
  0xfe   :  { %v162_v47 = vpop.eup %161  ;;  %v73_v48 = vadd.f32 1e-06, %v69_v45  ;;  %v71_v49 = vadd.f32 1e-06, %v67_v46 }
  0xff   :  { %v164_v50 = vpop.eup %163  ;;  %v75_v51 = vmul.f32 %v162_v47, %v70_v41  ;;  %vm81_vm2 = vweird.f32 %v162_v47 }
 0x100   :  { %v95_v52 = vmul.f32 %v164_v50, %v72_v42  ;;  %165 = vrsqrt.f32 %v73_v48  ;;  %vm101_vm3 = vweird.f32 %v164_v50  ;;  %vm82_vm5 = vmor %vm80_vm4, %vm81_vm2  ;;  %vm110_vm11 = vweird.f32 %v73_v48 }
 0x101   :  { %v76_v53 = vmul.f32 %v162_v47, %v75_v51  ;;  %167 = vrsqrt.f32 %v71_v49  ;;  %vm102_vm7 = vmor %vm100_vm6, %vm101_vm3  ;;  %vm90_vm13 = vweird.f32 %v71_v49 }
 0x102   :  { %v96_v54 = vmul.f32 %v164_v50, %v95_v52 }
 0x103   :  { %v77_v55 = vmul.f32 0.5, %v76_v53 }
 0x104   :  { %v97_v56 = vmul.f32 0.5, %v96_v54 }
 0x105   :  { %v78_v57 = vsub.f32 1.5, %v77_v55 }
 0x106   :  { %v166_v58 = vpop.eup %165  ;;  %v98_v59 = vsub.f32 1.5, %v97_v56 }
 0x107   :  { %v168_v60 = vpop.eup %167  ;;  %v79_v61 = vmul.f32 %v162_v47, %v78_v57  ;;  %v105_v62 = vmul.f32 %v166_v58, %v73_v48  ;;  %vm111_vm8 = vweird.f32 %v166_v58 }
 0x108   :  { %v99_v0 = vmul.f32 %v164_v50, %v98_v59  ;;  %v85_v1 = vmul.f32 %v168_v60, %v71_v49  ;;  %vm91_vm9 = vweird.f32 %v168_v60  ;;  %vm112_vm12 = vmor %vm110_vm11, %vm111_vm8 }
 0x109   :  { %v83_v2 = vsel %vm82_vm5, %v162_v47, %v79_v61  ;;  %v106_v3 = vmul.f32 %v166_v58, %v105_v62  ;;  %vm92_vm14 = vmor %vm90_vm13, %vm91_vm9 }
 0x10a   :  { %v114_v5 = vmul.f32 %v83_v2, %v46_v22  ;;  %v103_v6 = vsel %vm102_vm7, %v164_v50, %v99_v0  ;;  %v86_v7 = vmul.f32 %v168_v60, %v85_v1 }
 0x10b   :  { %v116_v8 = vmul.f32 %v103_v6, %v200_v21  ;;  %v107_v9 = vmul.f32 0.5, %v106_v3 }
 0x10c   :  { %v122_v10 = vmul.f32 %v157_v63, %v114_v5  ;;  %v87_v11 = vmul.f32 0.5, %v86_v7 }
 0x10d   :  { %v124_v12 = vmul.f32 %v157_v63, %v116_v8  ;;  %v108_v13 = vsub.f32 1.5, %v107_v9 }
 0x10e   :  { %v130_v14 = vadd.f32 %v158_v4, %v122_v10  ;;  %v88_v15 = vsub.f32 1.5, %v87_v11 }
 0x10f   :  { %v132_v16 = vadd.f32 %v158_v4, %v124_v12  ;;  %v109_v17 = vmul.f32 %v166_v58, %v108_v13 }
 0x110   :  { %v134_v18 = vpack.c.bf16 %v130_v14, %v130_v14  ;;  %v89_v19 = vmul.f32 %v168_v60, %v88_v15 }
 0x111   :  { %v136_v20 = vpack.c.bf16 %v132_v16, %v132_v16  ;;  %v113_v22 = vsel %vm112_vm12, %v166_v58, %v109_v17 }
 0x112   :  { %139 = vst.msk [vmem:[%s244_s3] sm:$0xf] %vm138_vm10, %v134_v18  ;;  %v117_v21 = vmul.f32 %v113_v22, %v206_v31  ;;  %v93_v23 = vsel %vm92_vm14, %v168_v60, %v89_v19 }
 0x113   :  { %141 = vst.msk [vmem:[%s244_s3 + $0x8] sm:$0xf] %vm138_vm10, %v136_v20  ;;  %v115_v24 = vmul.f32 %v93_v23, %v208_v32 }
 0x114   :  { %v125_v25 = vmul.f32 %v157_v63, %v117_v21 }
 0x115   :  { %v123_v26 = vmul.f32 %v157_v63, %v115_v24 }
 0x116   :  { %v133_v27 = vadd.f32 %v158_v4, %v125_v25 }
 0x117   :  { %v131_v28 = vadd.f32 %v158_v4, %v123_v26 }
 0x118   :  { %v137_v29 = vpack.c.bf16 %v133_v27, %v133_v27 }
 0x119   :  { %v135_v30 = vpack.c.bf16 %v131_v28, %v131_v28 }
 0x11a   :  { %142 = vst.msk [vmem:[%s244_s3 + $0xc] sm:$0xf] %vm138_vm10, %v137_v29 }
 0x11b   :  { %140 = vst.msk [vmem:[%s244_s3 + $0x4] sm:$0xf] %vm138_vm10, %v135_v30 }

// kernel: mix_transformer_stage_forward.24
= control target key start
LH: loop header
LB: loop body
LE: loop exit
PB: predicated region body
PF: predicated region fallthrough
CT: control target
= control target key end

     0   :  { %vm19_vm0 = vcmask 523264   ;;  %v88_v1 = vmov 0.0   ;;  %vm39_vm1 = vcmask 261120   ;;  %vm69_vm2 = vcmask 519168   ;;  %s124_s1 = inlined_call_operand.vmem [shape: bf16[32,64], index: 1, kind: input, shape index: {}]   ;;  %s125_s2 = inlined_call_operand.vmem [shape: f32[1,64], index: 2, kind: input, shape index: {}]   ;;  %s126_s0 = inlined_call_operand.vmem [shape: bf16[8,32], index: 0, kind: input, shape index: {}]   ;;  %s127_s3 = inlined_call_operand.vmem [shape: bf16[8,64], index: 3, kind: output, shape index: {}]  }
   0x1   :  { %v85_v0 = vld [vmem:[%s124_s1 + $0x8] sm:$0xff]  ;;  %20 = vst.msk [vmem:[#allocation2] sm:$0xff] %vm19_vm0, %v88_v1  ;;  %v84_v2 = vld [vmem:[%s124_s1] sm:$0xff] }
   0x2   :  { %49 = vmatpush.bf16.msra.mxu0 %v85_v0  ;;  %v21_v3 = vld [vmem:[%s126_s0] sm:$0xf] }
   0x3   :  { %v87_v7 = vld [vmem:[%s125_s2] ss:$0 sm:$0xff] }
   0x6   :  { %50 = vmatpush.bf16.msra.mxu0 %v84_v2 }
   0x8   :  { %v22_v4 = vld [vmem:[#allocation2] sm:$0xff] }
   0x9   :  { %83 = vmatmul.msk.bf16.vlgmr.msra.gmra.mxu0 %vm39_vm1, %v21_v3 }
  0x86   :  { %v52_v5 = vpop.f32.mrf.mxu0 }
  0x87   :  { %v56_v6 = vadd.f32 %v52_v5, %v22_v4 }
  0x89   :  { %58 = vst.msk [vmem:[#allocation2] sm:$0xff] %vm19_vm0, %v56_v6 }
  0x8e   :  { %v54_v8 = vpop.f32.mrf.mxu0 }
  0x90   :  { %v62_v9 = vld [vmem:[#allocation2] sm:$0xff] }
  0x91   :  { %v67_v10 = vadd.f32 %v87_v7, %v62_v9 }
  0x93   :  { %v68_v11 = vpack.c.bf16 %v67_v10, %v67_v10 }
  0x95   :  { %70 = vst.msk [vmem:[%s127_s3] sm:$0xf] %vm69_vm2, %v68_v11 }

// kernel: mix_transformer_stage_forward.26
= control target key start
LH: loop header
LB: loop body
LE: loop exit
PB: predicated region body
PF: predicated region fallthrough
CT: control target
= control target key end

     0   :  { %vm22_vm0 = vcmask 261120   ;;  %v170_v1 = vmov 0.0   ;;  %vm126_vm1 = vcmask 257024   ;;  %s243_s1 = inlined_call_operand.vmem [shape: bf16[32,32], index: 1, kind: input, shape index: {}]   ;;  %s244_s2 = inlined_call_operand.vmem [shape: f32[1,32], index: 2, kind: input, shape index: {}]   ;;  %s245_s0 = inlined_call_operand.vmem [shape: bf16[32,32], index: 0, kind: input, shape index: {}]   ;;  %s246_s3 = inlined_call_operand.vmem [shape: bf16[32,32], index: 3, kind: input, shape index: {}]   ;;  %s247_s4 = inlined_call_operand.vmem [shape: bf16[32,32], index: 4, kind: output, shape index: {}]  }
   0x1   :  { %v156_v0 = vld [vmem:[%s243_s1 + $0x8] sm:$0xff]  ;;  %23 = vst.msk [vmem:[#allocation2] sm:$0xff] %vm22_vm0, %v170_v1  ;;  %v155_v2 = vld [vmem:[%s243_s1] sm:$0xff] }
   0x2   :  { %24 = vst.msk [vmem:[#allocation2 + $0x8] sm:$0xff] %vm22_vm0, %v170_v1  ;;  %74 = vmatpush.bf16.msra.mxu0 %v156_v0  ;;  %166 = vmatpush.bf16.msra.mxu1 %v156_v0  ;;  %v153_v3 = vld [vmem:[%s245_s0] sm:$0xff]  ;;  %v154_v4 = vld [vmem:[%s245_s0 + $0x8] sm:$0xff] }
   0x3   :  { %25 = vst.msk [vmem:[#allocation2 + $0x10] sm:$0xff] %vm22_vm0, %v170_v1  ;;  %v158_v11 = vld [vmem:[%s246_s3] sm:$0xff]   ;;  %v165_v15 = vld [vmem:[%s246_s3 + $0x8] sm:$0xff]  }
   0x4   :  { %26 = vst.msk [vmem:[#allocation2 + $0x18] sm:$0xff] %vm22_vm0, %v170_v1  ;;  %v169_v14 = vld [vmem:[%s244_s2] ss:$0 sm:$0xff]  ;;  %v159_v18 = vunpack.c.l.bf16 %v158_v11  ;;  %v163_v22 = vunpack.c.l.bf16 %v165_v15  ;;  %v160_v30 = vunpack.c.h.bf16 %v158_v11  ;;  %v164_v32 = vunpack.c.h.bf16 %v165_v15 }
   0x6   :  { %75 = vmatpush.bf16.msra.mxu0 %v155_v2  ;;  %167 = vmatpush.bf16.msra.mxu1 %v155_v2 }
   0x8   :  { %v31_v5 = vld [vmem:[#allocation2] sm:$0xff] }
   0x9   :  { %151 = vmatmul.msk.bf16.vlgmr.msra.gmra.mxu0 %vm22_vm0, %v153_v3  ;;  %152 = vmatmul.msk.bf16.vlgmr.msra.gmra.mxu1 %vm22_vm0, %v154_v4  ;;  %v32_v12 = vld [vmem:[#allocation2 + $0x8] sm:$0xff] }
   0xa   :  { %v33_v6 = vld [vmem:[#allocation2 + $0x10] sm:$0xff] }
   0xb   :  { %v34_v13 = vld [vmem:[#allocation2 + $0x18] sm:$0xff] }
  0x86   :  { %v77_v7 = vpop.f32.mrf.mxu0  ;;  %v82_v8 = vpop.f32.mrf.mxu1 }
  0x87   :  { %v87_v9 = vadd.f32 %v77_v7, %v31_v5  ;;  %v89_v10 = vadd.f32 %v82_v8, %v33_v6 }
  0x89   :  { %91 = vst.msk [vmem:[#allocation2] sm:$0xff] %vm22_vm0, %v87_v9 }
  0x8a   :  { %93 = vst.msk [vmem:[#allocation2 + $0x10] sm:$0xff] %vm22_vm0, %v89_v10 }
  0x8e   :  { %v79_v16 = vpop.f32.mrf.mxu0  ;;  %v84_v17 = vpop.f32.mrf.mxu1 }
  0x8f   :  { %v88_v19 = vadd.f32 %v79_v16, %v32_v12  ;;  %v90_v20 = vadd.f32 %v84_v17, %v34_v13 }
  0x90   :  { %v98_v21 = vld [vmem:[#allocation2] sm:$0xff] }
  0x91   :  { %v106_v23 = vadd.f32 %v169_v14, %v98_v21  ;;  %v100_v24 = vld [vmem:[#allocation2 + $0x10] sm:$0xff]  ;;  %92 = vst.msk [vmem:[#allocation2 + $0x8] sm:$0xff] %vm22_vm0, %v88_v19 }
  0x92   :  { %v108_v25 = vadd.f32 %v169_v14, %v100_v24  ;;  %94 = vst.msk [vmem:[#allocation2 + $0x18] sm:$0xff] %vm22_vm0, %v90_v20 }
  0x93   :  { %v118_v26 = vadd.f32 %v159_v18, %v106_v23 }
  0x94   :  { %v120_v27 = vadd.f32 %v163_v22, %v108_v25 }
  0x95   :  { %v122_v28 = vpack.c.bf16 %v118_v26, %v118_v26 }
  0x96   :  { %v124_v29 = vpack.c.bf16 %v120_v27, %v120_v27 }
  0x97   :  { %127 = vst.msk [vmem:[%s247_s4] sm:$0xf] %vm126_vm1, %v122_v28 }
  0x98   :  { %129 = vst.msk [vmem:[%s247_s4 + $0x8] sm:$0xf] %vm126_vm1, %v124_v29  ;;  %v99_v31 = vld [vmem:[#allocation2 + $0x8] sm:$0xff] }
  0x99   :  { %v107_v33 = vadd.f32 %v169_v14, %v99_v31  ;;  %v101_v34 = vld [vmem:[#allocation2 + $0x18] sm:$0xff] }
  0x9a   :  { %v109_v35 = vadd.f32 %v169_v14, %v101_v34 }
  0x9b   :  { %v119_v36 = vadd.f32 %v160_v30, %v107_v33 }
  0x9c   :  { %v121_v37 = vadd.f32 %v164_v32, %v109_v35 }
  0x9d   :  { %v123_v38 = vpack.c.bf16 %v119_v36, %v119_v36 }
  0x9e   :  { %v125_v39 = vpack.c.bf16 %v121_v37, %v121_v37 }
  0x9f   :  { %128 = vst.msk [vmem:[%s247_s4 + $0x4] sm:$0xf] %vm126_vm1, %v123_v38 }
  0xa0   :  { %130 = vst.msk [vmem:[%s247_s4 + $0xc] sm:$0xf] %vm126_vm1, %v125_v39 }

// kernel: mix_transformer_stage_forward.25
= control target key start
LH: loop header
LB: loop body
LE: loop exit
PB: predicated region body
PF: predicated region fallthrough
CT: control target
= control target key end

     0   :  { %s638_s9 = smov 0   ;;  %s640_s10 = smov 0   ;;  %s710_s0 = inlined_call_operand.vmem [shape: bf16[2,16,32], index: 0, kind: input, shape index: {}]   ;;  %s711_s1 = inlined_call_operand.vmem [shape: bf16[2,4,64], index: 1, kind: input, shape index: {}]   ;;  %s712_s2 = inlined_call_operand.vmem [shape: bf16[2,16,32], index: 2, kind: output, shape index: {}]  }
   0x1   :  { %s642_s11 = smov 0  }
   0x2 LB: > { %s24_s12 = sadd.s32 1, %s613_s10  ;;  %p532_p0 = scmp.ge.s32.totalorder %s617_s11, 1  ;;  %s617_s11 = sphi %s642_s11, %s12_s11   ;;  %s613_s10 = sphi %s640_s10, %s714_s10   ;;  %s609_s9 = sphi %s638_s9, %s713_s9  }
   0x3   : > { %p26_p1 = scmp.ge.s32.totalorder %s24_s12, 2  ;;  %p142_p2 = scmp.lt.s32.totalorder %s617_s11, 3 }
   0x5   : > { %s716_s12 = smov (%p26_p1, %s24_s12), 0  ;;  %p143_p3 = pnand %p532_p0, %p142_p2 }
   0x6   : > { %p177_p4 = scmp.lt.s32.totalorder (!%p143_p3), %s609_s9, 1  ;;  %s619_s21 = smov (!%p143_p3), 112  }
   0x7   : > { %146 = sbr.rel (%p143_p3) target bundleno = 797 (0x31d), region = 28  ;;  %s620_s22 = smov (!%p143_p3), 80  }
   0x8   : > { %s621_s23 = smov (!%p143_p3), 96   ;;  %s622_s24 = smov (!%p143_p3), 16  }
   0xc   : > { %s718_s9 = smov (!%p177_p4, %s609_s9), 1  ;;  %vm209_vm0 = vcmask 130048   ;;  %vm232_vm1 = vcmask 31744   ;;  %vm290_vm2 = vcmask 1041408  }
   0xd   : > { %s535_s13 = sshll.u32 %s718_s9, 1  ;;  %s548_s17 = sshll.u32 %s718_s9, 3 }
   0xe   : > { %s189_s16 = scalar_lea.vmem %s711_s1, %s535_s13  ;;  %s184_s20 = scalar_lea.vmem %s710_s0, %s548_s17 }
   0xf   : > { %v203_v0 = vld [vmem:[%s189_s16] sm:$0x3]  ;;  %s198_s27 = scalar_lea.vmem %s712_s2, %s548_s17 }
  0x10   : > { %282 = vst [vmem:[#allocation1] ss:$4 sm:$0xff] %v203_v0  ;;  %v214_v1 = vsel %vm209_vm0, %v203_v0, 0  ;;  %v550_v2 = vld [vmem:[%s184_s20] sm:$0xff] }
  0x11   : > { %223 = vmatpush.bf16.xpose.msra.mxu0 %v214_v1 }
  0x17   : > { %v283_v3 = vld.sshfl [vmem:[#allocation1] sm:$0xff pattern:$0x73625140] }
  0x18   : > { %315 = vst [vmem:[#allocation1] ss:$4 sm:$0xff] %v203_v0  ;;  %542 = vmatmul.msk.bf16.vlgmr.msra.gmra.mxu0 %vm209_vm0, %v550_v2 }
  0x1f   : > { %v316_v4 = vld.sshfl [vmem:[#allocation1] sm:$0xff pattern:$0x73625140] }
  0x20   : > { %318 = vrot.lane.b32.xlu0 %v316_v4, %s619_s21  ;;  %391 = vst [vmem:[#allocation1] ss:$4 sm:$0xff] %v203_v0 }
  0x27   : > { %v392_v38 = vld.sshfl [vmem:[#allocation1] sm:$0xff pattern:$0x73625140] }
  0x28   : > { %313 = vrot.lane.b32.xlu0 %v550_v2, %s619_s21 }
  0x92   : > { %v319_v5 = vpop.permute.xlu0 %318 }
  0x93   : > { %v324_v6 = vsel %vm209_vm0, %v319_v5, 0 }
  0x94   : > { %333 = vmatpush.bf16.xpose.msra.mxu2 %v324_v6 }
  0x95   : > { %v225_v7 = vpop.f32.mrf.mxu0 }
  0x96   : > { %v230_v8 = vmul.f32 0.25, %v225_v7 }
  0x98   : > { %v233_v9 = vsel %vm232_vm1, %v230_v8, -inf }
  0x99   : > { %234 = vmax.xlane.f32.xlu2 %v233_v9 }
  0x9a   : > { %v314_v10 = vpop.permute.xlu0 %313 }
  0x9b   : > { %544 = vmatmul.msk.bf16.vlgmr.msra.gmra.mxu2 %vm209_vm0, %v314_v10 }
  0x9d   : > { %v227_v11 = vpop.f32.mrf.mxu0 }
  0x9e   : > { %v231_v12 = vmul.f32 0.25, %v227_v11 }
  0xa0   : > { %v236_v13 = vsel %vm232_vm1, %v231_v12, -inf }
  0xa1   : > { %237 = vmax.xlane.f32.xlu2 %v236_v13 }
  0xb9   : > { %394 = vrot.lane.b32.xlu2 %v392_v38, %s620_s22 }
 0x10c   : > { %v235_v23 = vpop.xlane.xlu2 %234 }
 0x10d   : > { %v239_v27 = vsub.f32 %v230_v8, %v235_v23 }
 0x10f   : > { %v241_v30 = vmul.f32 1.442695, %v239_v27 }
 0x114   : > { %v238_v31 = vpop.xlane.xlu2 %237 }
 0x115   : > { %v240_v33 = vsub.f32 %v231_v12, %v238_v31 }
 0x117   : > { %v243_v35 = vmul.f32 1.442695, %v240_v33 }
 0x11c   : > { %v395_v41 = vpop.permute.xlu2 %394 }
 0x11d   : > { %v400_v42 = vsel %vm290_vm2, %v395_v41, 0 }
 0x11e   : > { %v335_v14 = vpop.f32.mrf.mxu2  ;;  %409 = vmatpush.bf16.msra.mxu3 %v400_v42 }
 0x11f   : > { %v340_v15 = vmul.f32 0.25, %v335_v14 }
 0x121   : > { %v342_v16 = vsel %vm232_vm1, %v340_v15, -inf }
 0x122   : > { %343 = vmax.xlane.f32.xlu1 %v342_v16 }
 0x126   : > { %v337_v17 = vpop.f32.mrf.mxu2 }
 0x127   : > { %v341_v18 = vmul.f32 0.25, %v337_v17 }
 0x129   : > { %v345_v19 = vsel %vm232_vm1, %v341_v18, -inf }
 0x12a   : > { %346 = vmax.xlane.f32.xlu1 %v345_v19 }
 0x195   : > { %v344_v20 = vpop.xlane.xlu1 %343 }
 0x196   : > { %v348_v21 = vsub.f32 %v340_v15, %v344_v20 }
 0x198   : > { %v350_v22 = vmul.f32 1.442695, %v348_v21 }
 0x19a   : > { %579 = vpow2.f32 %v350_v22 }
 0x19d   : > { %v347_v24 = vpop.xlane.xlu1 %346 }
 0x19e   : > { %v349_v25 = vsub.f32 %v341_v18, %v347_v24 }
 0x1a0   : > { %v676_v26 = vpop.eup %579  ;;  %v352_v28 = vmul.f32 1.442695, %v349_v25 }
 0x1a1   : > { %v354_v29 = vsel %vm232_vm1, %v676_v26, 0.0 }
 0x1a2   : > { %581 = vpow2.f32 %v352_v28  ;;  %355 = vadd.xlane.f32.xlu0 %v354_v29 }
 0x1a3   : > { %583 = vpow2.f32 %v241_v30 }
 0x1a4   : > { %585 = vpow2.f32 %v243_v35 }
 0x1a8   : > { %v582_v32 = vpop.eup %581 }
 0x1a9   : > { %v357_v34 = vsel %vm232_vm1, %v582_v32, 0.0  ;;  %v681_v36 = vpop.eup %583 }
 0x1aa   : > { %358 = vadd.xlane.f32.xlu1 %v357_v34  ;;  %v245_v37 = vsel %vm232_vm1, %v681_v36, 0.0  ;;  %v685_v39 = vpop.eup %585 }
 0x1ab   : > { %v248_v40 = vsel %vm232_vm1, %v685_v39, 0.0 }
 0x1b2   : > { %246 = vadd.xlane.f32.xlu1 %v245_v37 }
 0x1ba   : > { %249 = vadd.xlane.f32.xlu1 %v248_v40 }
 0x1d3   : > { %285 = vrot.lane.b32.xlu1 %v283_v3, %s621_s23 }
 0x215   : > { %v356_v43 = vpop.xlane.xlu0 %355 }
 0x216   : > { %587 = vrcp.f32 %v356_v43  ;;  %v371_v53 = vand.u32 2147483648, %v356_v43  ;;  %vm365_vm4 = vweird.f32 %v356_v43  ;;  %v369_v55 = vand.u32 2147483647, %v356_v43 }
 0x218   : > { %v372_v60 = vor.u32 1.1754944e-38, %v371_v53  ;;  %vm370_vm8 = vcmp.eq.f32.partialorder %v369_v55, 8.507059e+37 }
 0x21c   : > { %v588_v44 = vpop.eup %587 }
 0x21d   : > { %v361_v45 = vmul.f32 %v588_v44, %v356_v43  ;;  %v359_v46 = vpop.xlane.xlu1 %358  ;;  %vm366_vm3 = vweird.f32 %v588_v44 }
 0x21e   : > { %589 = vrcp.f32 %v359_v46  ;;  %vm367_vm5 = vmor %vm365_vm4, %vm366_vm3  ;;  %v386_v57 = vand.u32 2147483648, %v359_v46  ;;  %v384_v59 = vand.u32 2147483647, %v359_v46  ;;  %vm380_vm7 = vweird.f32 %v359_v46 }
 0x21f   : > { %v362_v47 = vsub.f32 1.0, %v361_v45 }
 0x220   : > { %v387_v63 = vor.u32 1.1754944e-38, %v386_v57  ;;  %vm385_vm10 = vcmp.eq.f32.partialorder %v384_v59, 8.507059e+37 }
 0x221   : > { %v363_v48 = vmul.f32 %v588_v44, %v362_v47 }
 0x223   : > { %v364_v52 = vadd.f32 %v588_v44, %v363_v48 }
 0x224   : > { %v590_v49 = vpop.eup %589 }
 0x225   : > { %v376_v50 = vmul.f32 %v590_v49, %v359_v46  ;;  %v247_v51 = vpop.xlane.xlu1 %246  ;;  %vm381_vm6 = vweird.f32 %v590_v49  ;;  %v368_v58 = vsel %vm367_vm5, %v588_v44, %v364_v52 }
 0x226   : > { %591 = vrcp.f32 %v247_v51  ;;  %vm382_vm9 = vmor %vm380_vm7, %vm381_vm6  ;;  %v373_v1 = vsel %vm370_vm8, %v372_v60, %v368_v58  ;;  %v262_v18 = vand.u32 2147483648, %v247_v51  ;;  %vm256_vm15 = vweird.f32 %v247_v51 }
 0x227   : > { %v377_v54 = vsub.f32 1.0, %v376_v50  ;;  %v374_v5 = vmul.f32 %v676_v26, %v373_v1  ;;  %v260_v19 = vand.u32 2147483647, %v247_v51 }
 0x228   : > { %v263_v23 = vor.u32 1.1754944e-38, %v262_v18 }
 0x229   : > { %v378_v56 = vmul.f32 %v590_v49, %v377_v54  ;;  %vm261_vm4 = vcmp.eq.f32.partialorder %v260_v19, 8.507059e+37 }
 0x22b   : > { %v379_v61 = vadd.f32 %v590_v49, %v378_v56 }
 0x22c   : > { %v592_v62 = vpop.eup %591 }
 0x22d   : > { %v250_v0 = vpop.xlane.xlu1 %249  ;;  %v383_v2 = vsel %vm382_vm9, %v590_v49, %v379_v61  ;;  %v252_v4 = vmul.f32 %v592_v62, %v247_v51  ;;  %vm257_vm12 = vweird.f32 %v592_v62 }
 0x22e   : > { %593 = vrcp.f32 %v250_v0  ;;  %v388_v3 = vsel %vm385_vm10, %v387_v63, %v383_v2  ;;  %v277_v15 = vand.u32 2147483648, %v250_v0  ;;  %vm271_vm13 = vweird.f32 %v250_v0  ;;  %vm258_vm0 = vmor %vm256_vm15, %vm257_vm12 }
 0x22f   : > { %v389_v6 = vmul.f32 %v582_v32, %v388_v3  ;;  %v253_v9 = vsub.f32 1.0, %v252_v4  ;;  %v275_v17 = vand.u32 2147483647, %v250_v0 }
 0x230   : > { %v278_v21 = vor.u32 1.1754944e-38, %v277_v15 }
 0x231   : > { %v390_v7 = vpack.c.bf16 %v389_v6, %v374_v5  ;;  %v254_v12 = vmul.f32 %v592_v62, %v253_v9  ;;  %vm276_vm3 = vcmp.eq.f32.partialorder %v275_v17, 8.507059e+37 }
 0x233   : > { %545 = vmatmul.msk.bf16.vlgmr.msra.gmra.mxu3 %vm232_vm1, %v390_v7  ;;  %v255_v16 = vadd.f32 %v592_v62, %v254_v12 }
 0x234   : > { %v594_v8 = vpop.eup %593 }
 0x235   : > { %v267_v10 = vmul.f32 %v594_v8, %v250_v0  ;;  %vm272_vm11 = vweird.f32 %v594_v8  ;;  %v259_v22 = vsel %vm258_vm0, %v592_v62, %v255_v16 }
 0x236   : > { %vm273_vm14 = vmor %vm271_vm13, %vm272_vm11  ;;  %v264_v25 = vsel %vm261_vm4, %v263_v23, %v259_v22 }
 0x237   : > { %v268_v11 = vsub.f32 1.0, %v267_v10  ;;  %v265_v29 = vmul.f32 %v681_v36, %v264_v25 }
 0x239   : > { %v269_v13 = vmul.f32 %v594_v8, %v268_v11 }
 0x23b   : > { %v270_v14 = vadd.f32 %v594_v8, %v269_v13 }
 0x23d   : > { %v274_v20 = vsel %vm273_vm14, %v594_v8, %v270_v14 }
 0x23e   : > { %v279_v24 = vsel %vm276_vm3, %v278_v21, %v274_v20 }
 0x23f   : > { %v280_v26 = vmul.f32 %v685_v39, %v279_v24 }
 0x241   : > { %v281_v30 = vpack.c.bf16 %v280_v26, %v265_v29 }
 0x245   : > { %v286_v27 = vpop.permute.xlu1 %285 }
 0x246   : > { %v292_v28 = vsel %vm290_vm2, %v286_v27, 0  ;;  %vm310_vm2 = vcmask 125952  }
 0x247   : > { %301 = vmatpush.bf16.msra.mxu1 %v292_v28 }
 0x24a   : > { %543 = vmatmul.msk.bf16.vlgmr.msra.gmra.mxu1 %vm232_vm1, %v281_v30  ;;  %vm426_vm1 = vcmask 257152  }
 0x2b6   : > { %v411_v31 = vpop.f32.mrf.mxu3 }
 0x2b7   : > { %v416_v32 = vpack.c.bf16 %v411_v31, %v411_v31 }
 0x2b9   : > { %420 = vrot.lane.b32.xlu2 %v416_v32, %s622_s24 }
 0x2be   : > { %v413_v33 = vpop.f32.mrf.mxu3 }
 0x2bf   : > { %v417_v34 = vpack.c.bf16 %v413_v33, %v413_v33 }
 0x2c1   : > { %422 = vrot.lane.b32.xlu2 %v417_v34, %s622_s24 }
 0x2c7   : > { %v303_v35 = vpop.f32.mrf.mxu1 }
 0x2c8   : > { %v308_v37 = vpack.c.bf16 %v303_v35, %v303_v35 }
 0x2ca   : > { %311 = vst.msk [vmem:[%s198_s27] sm:$0xf] %vm310_vm2, %v308_v37 }
 0x2cf   : > { %v305_v36 = vpop.f32.mrf.mxu1 }
 0x2d0   : > { %v309_v38 = vpack.c.bf16 %v305_v36, %v305_v36 }
 0x2d2   : > { %312 = vst.msk [vmem:[%s198_s27 + $0x4] sm:$0xf] %vm310_vm2, %v309_v38 }
 0x313   : > { %v421_v39 = vpop.permute.xlu2 %420 }
 0x314   : > { %427 = vst.msk [vmem:[%s198_s27] sm:$0xf] %vm426_vm1, %v421_v39 }
 0x31b   : > { %v423_v40 = vpop.permute.xlu2 %422 }
 0x31c   : > { %428 = vst.msk [vmem:[%s198_s27 + $0x4] sm:$0xf] %vm426_vm1, %v423_v40 }
 0x31d PF: > { %s12_s11 = sadd.s32 1, %s617_s11   ;;  %s713_s9 = smov %s613_s10 }
 0x31e   : > { %p9_p5 = scmp.ge.s32.totalorder %s12_s11, 4   ;;  %s714_s10 = smov %s716_s12 }
 0x320   :  { %11 = sbr.rel (!%p9_p5) target bundleno = 2 (0x2), region = 61 }

// kernel: mix_transformer_stage_forward.22
= control target key start
LH: loop header
LB: loop body
LE: loop exit
PB: predicated region body
PF: predicated region fallthrough
CT: control target
= control target key end

     0   :  { %vm19_vm0 = vcmask 261120   ;;  %v146_v1 = vmov 0.0   ;;  %vm111_vm1 = vcmask 257024   ;;  %s204_s1 = inlined_call_operand.vmem [shape: bf16[32,32], index: 1, kind: input, shape index: {}]   ;;  %s205_s2 = inlined_call_operand.vmem [shape: f32[1,32], index: 2, kind: input, shape index: {}]   ;;  %s206_s0 = inlined_call_operand.vmem [shape: bf16[32,32], index: 0, kind: input, shape index: {}]   ;;  %s207_s3 = inlined_call_operand.vmem [shape: bf16[32,32], index: 3, kind: output, shape index: {}]  }
   0x1   :  { %v141_v0 = vld [vmem:[%s204_s1 + $0x8] sm:$0xff]  ;;  %20 = vst.msk [vmem:[#allocation2] sm:$0xff] %vm19_vm0, %v146_v1  ;;  %v140_v2 = vld [vmem:[%s204_s1] sm:$0xff] }
   0x2   :  { %21 = vst.msk [vmem:[#allocation2 + $0x8] sm:$0xff] %vm19_vm0, %v146_v1  ;;  %71 = vmatpush.bf16.msra.mxu0 %v141_v0  ;;  %142 = vmatpush.bf16.msra.mxu1 %v141_v0  ;;  %v138_v3 = vld [vmem:[%s206_s0] sm:$0xff]  ;;  %v139_v4 = vld [vmem:[%s206_s0 + $0x8] sm:$0xff] }
   0x3   :  { %22 = vst.msk [vmem:[#allocation2 + $0x10] sm:$0xff] %vm19_vm0, %v146_v1  ;;  %v145_v13 = vld [vmem:[%s205_s2] ss:$0 sm:$0xff] }
   0x4   :  { %23 = vst.msk [vmem:[#allocation2 + $0x18] sm:$0xff] %vm19_vm0, %v146_v1 }
   0x6   :  { %72 = vmatpush.bf16.msra.mxu0 %v140_v2  ;;  %143 = vmatpush.bf16.msra.mxu1 %v140_v2 }
   0x8   :  { %v28_v5 = vld [vmem:[#allocation2] sm:$0xff] }
   0x9   :  { %136 = vmatmul.msk.bf16.vlgmr.msra.gmra.mxu0 %vm19_vm0, %v138_v3  ;;  %137 = vmatmul.msk.bf16.vlgmr.msra.gmra.mxu1 %vm19_vm0, %v139_v4  ;;  %v29_v11 = vld [vmem:[#allocation2 + $0x8] sm:$0xff] }
   0xa   :  { %v30_v6 = vld [vmem:[#allocation2 + $0x10] sm:$0xff] }
   0xb   :  { %v31_v12 = vld [vmem:[#allocation2 + $0x18] sm:$0xff] }
  0x86   :  { %v74_v7 = vpop.f32.mrf.mxu0  ;;  %v79_v8 = vpop.f32.mrf.mxu1 }
  0x87   :  { %v84_v9 = vadd.f32 %v74_v7, %v28_v5  ;;  %v86_v10 = vadd.f32 %v79_v8, %v30_v6 }
  0x89   :  { %88 = vst.msk [vmem:[#allocation2] sm:$0xff] %vm19_vm0, %v84_v9 }
  0x8a   :  { %90 = vst.msk [vmem:[#allocation2 + $0x10] sm:$0xff] %vm19_vm0, %v86_v10 }
  0x8e   :  { %v76_v14 = vpop.f32.mrf.mxu0  ;;  %v81_v15 = vpop.f32.mrf.mxu1 }
  0x8f   :  { %v85_v16 = vadd.f32 %v76_v14, %v29_v11  ;;  %v87_v17 = vadd.f32 %v81_v15, %v31_v12 }
  0x90   :  { %v95_v18 = vld [vmem:[#allocation2] sm:$0xff] }
  0x91   :  { %v103_v19 = vadd.f32 %v145_v13, %v95_v18  ;;  %v97_v20 = vld [vmem:[#allocation2 + $0x10] sm:$0xff]  ;;  %89 = vst.msk [vmem:[#allocation2 + $0x8] sm:$0xff] %vm19_vm0, %v85_v16 }
  0x92   :  { %v105_v21 = vadd.f32 %v145_v13, %v97_v20  ;;  %91 = vst.msk [vmem:[#allocation2 + $0x18] sm:$0xff] %vm19_vm0, %v87_v17 }
  0x93   :  { %v107_v22 = vpack.c.bf16 %v103_v19, %v103_v19 }
  0x94   :  { %v109_v23 = vpack.c.bf16 %v105_v21, %v105_v21 }
  0x95   :  { %112 = vst.msk [vmem:[%s207_s3] sm:$0xf] %vm111_vm1, %v107_v22 }
  0x96   :  { %114 = vst.msk [vmem:[%s207_s3 + $0x8] sm:$0xf] %vm111_vm1, %v109_v23 }
  0x98   :  { %v96_v24 = vld [vmem:[#allocation2 + $0x8] sm:$0xff] }
  0x99   :  { %v104_v25 = vadd.f32 %v145_v13, %v96_v24  ;;  %v98_v26 = vld [vmem:[#allocation2 + $0x18] sm:$0xff] }
  0x9a   :  { %v106_v27 = vadd.f32 %v145_v13, %v98_v26 }
  0x9b   :  { %v108_v28 = vpack.c.bf16 %v104_v25, %v104_v25 }
  0x9c   :  { %v110_v29 = vpack.c.bf16 %v106_v27, %v106_v27 }
  0x9d   :  { %113 = vst.msk [vmem:[%s207_s3 + $0x4] sm:$0xf] %vm111_vm1, %v108_v28 }
  0x9e   :  { %115 = vst.msk [vmem:[%s207_s3 + $0xc] sm:$0xf] %vm111_vm1, %v110_v29 }

// kernel: mix_transformer_stage_forward.27
= control target key start
LH: loop header
LB: loop body
LE: loop exit
PB: predicated region body
PF: predicated region fallthrough
CT: control target
= control target key end

     0   :  { %vm37_vm0 = vcmask 261120   ;;  %v279_v10 = vmov 32.0   ;;  %s367_s0 = inlined_call_operand.vmem [shape: bf16[32,32], index: 0, kind: input, shape index: {}]   ;;  %s368_s3 = inlined_call_operand.vmem [shape: f32[1,32], index: 3, kind: input, shape index: {}]   ;;  %s369_s4 = inlined_call_operand.vmem [shape: f32[1,32], index: 4, kind: input, shape index: {}]   ;;  %s370_s2 = inlined_call_operand.vmem [shape: f32[1,128], index: 2, kind: input, shape index: {}]   ;;  %s371_s1 = inlined_call_operand.vmem [shape: bf16[32,128], index: 1, kind: input, shape index: {}]   ;;  %s372_s5 = inlined_call_operand.vmem [shape: bf16[32,128], index: 5, kind: output, shape index: {}]  }
   0x1   :  { %v261_v0 = vld [vmem:[%s367_s0 + $0x8] sm:$0xff]   ;;  %v244_v1 = vld [vmem:[%s367_s0] sm:$0xff]   ;;  %269 = vrcp.f32 %v279_v10 }
   0x2   :  { %v249_v2 = vunpack.c.l.bf16 %v261_v0  ;;  %v245_v3 = vunpack.c.l.bf16 %v244_v1  ;;  %v250_v6 = vunpack.c.h.bf16 %v261_v0  ;;  %v246_v7 = vunpack.c.h.bf16 %v244_v1  ;;  %v242_v37 = vld [vmem:[%s371_s1 + $0x8] sm:$0xff]  ;;  %v241_v42 = vld [vmem:[%s371_s1] sm:$0xff] }
   0x3   :  { %183 = vmatpush.bf16.msra.mxu0 %v242_v37  ;;  %263 = vmatpush.bf16.msra.mxu1 %v242_v37 }
   0x4   :  { %v44_v4 = vsel %vm37_vm0, %v249_v2, 0.0  ;;  %v38_v5 = vsel %vm37_vm0, %v245_v3, 0.0  ;;  %v47_v8 = vsel %vm37_vm0, %v250_v6, 0.0  ;;  %v41_v9 = vsel %vm37_vm0, %v246_v7, 0.0 }
   0x5   :  { %45 = vadd.xlane.f32.xlu1 %v44_v4  ;;  %39 = vadd.xlane.f32.xlu0 %v38_v5 }
   0x7   :  { %v270_v11 = vpop.eup %269  ;;  %184 = vmatpush.bf16.msra.mxu0 %v241_v42  ;;  %264 = vmatpush.bf16.msra.mxu1 %v241_v42 }
   0x8   :  { %v51_v12 = vmul.f32 32.0, %v270_v11  ;;  %vm55_vm1 = vweird.f32 %v270_v11 }
   0xa   :  { %v52_v13 = vsub.f32 1.0, %v51_v12  ;;  %v266_v12 = vld [vmem:[%s368_s3] ss:$0 sm:$0xff] }
   0xc   :  { %v53_v14 = vmul.f32 %v270_v11, %v52_v13 }
   0xd   :  { %48 = vadd.xlane.f32.xlu1 %v47_v8  ;;  %42 = vadd.xlane.f32.xlu0 %v41_v9 }
   0xe   :  { %v54_v15 = vadd.f32 %v270_v11, %v53_v14 }
  0x10   :  { %v56_v16 = vsel %vm55_vm1, %v270_v11, %v54_v15 }
  0x78   :  { %v46_v17 = vpop.xlane.xlu1 %45  ;;  %v40_v18 = vpop.xlane.xlu0 %39 }
  0x79   :  { %v59_v19 = vmul.f32 %v56_v16, %v46_v17  ;;  %v57_v20 = vmul.f32 %v56_v16, %v40_v18 }
  0x7b   :  { %v320_v21 = vsub.f32 %v249_v2, %v59_v19  ;;  %v322_v22 = vsub.f32 %v245_v3, %v57_v20  ;;  %v267_v19 = vld [vmem:[%s369_s4] ss:$0 sm:$0xff] }
  0x7d   :  { %v67_v23 = vmul.f32 %v320_v21, %v320_v21  ;;  %v65_v24 = vmul.f32 %v322_v22, %v322_v22 }
  0x7f   :  { %v75_v25 = vsel %vm37_vm0, %v67_v23, 0.0  ;;  %v69_v26 = vsel %vm37_vm0, %v65_v24, 0.0 }
  0x80   :  { %v49_v27 = vpop.xlane.xlu1 %48  ;;  %76 = vadd.xlane.f32.xlu0 %v75_v25  ;;  %70 = vadd.xlane.f32.xlu2 %v69_v26  ;;  %v43_v28 = vpop.xlane.xlu0 %42 }
  0x81   :  { %v60_v29 = vmul.f32 %v56_v16, %v49_v27  ;;  %v58_v30 = vmul.f32 %v56_v16, %v43_v28 }
  0x83   :  { %v330_v31 = vsub.f32 %v250_v6, %v60_v29  ;;  %v332_v32 = vsub.f32 %v246_v7, %v58_v30 }
  0x85   :  { %v68_v33 = vmul.f32 %v330_v31, %v330_v31  ;;  %v66_v34 = vmul.f32 %v332_v32, %v332_v32 }
  0x87   :  { %v78_v35 = vsel %vm37_vm0, %v68_v33, 0.0  ;;  %v72_v36 = vsel %vm37_vm0, %v66_v34, 0.0  ;;  %v268_v34 = vld [vmem:[%s370_s2] ss:$0 sm:$0xff] }
  0x88   :  { %79 = vadd.xlane.f32.xlu1 %v78_v35  ;;  %73 = vadd.xlane.f32.xlu2 %v72_v36 }
  0xf3   :  { %v71_v38 = vpop.xlane.xlu2 %70  ;;  %v77_v39 = vpop.xlane.xlu0 %76 }
  0xf4   :  { %v81_v40 = vmul.f32 %v71_v38, %v56_v16  ;;  %v83_v41 = vmul.f32 %v77_v39, %v56_v16 }
  0xf6   :  { %v85_v43 = vadd.f32 1e-06, %v81_v40  ;;  %v87_v44 = vadd.f32 1e-06, %v83_v41 }
  0xf8   :  { %271 = vrsqrt.f32 %v85_v43  ;;  %vm115_vm4 = vweird.f32 %v87_v44  ;;  %vm95_vm5 = vweird.f32 %v85_v43 }
  0xf9   :  { %273 = vrsqrt.f32 %v87_v44 }
  0xfb   :  { %v80_v45 = vpop.xlane.xlu1 %79  ;;  %v74_v46 = vpop.xlane.xlu2 %73 }
  0xfc   :  { %v84_v47 = vmul.f32 %v80_v45, %v56_v16  ;;  %v82_v48 = vmul.f32 %v74_v46, %v56_v16 }
  0xfe   :  { %v272_v49 = vpop.eup %271  ;;  %v88_v50 = vadd.f32 1e-06, %v84_v47  ;;  %v86_v51 = vadd.f32 1e-06, %v82_v48 }
  0xff   :  { %v274_v52 = vpop.eup %273  ;;  %v90_v53 = vmul.f32 %v272_v49, %v85_v43  ;;  %vm96_vm3 = vweird.f32 %v272_v49 }
 0x100   :  { %v110_v54 = vmul.f32 %v274_v52, %v87_v44  ;;  %275 = vrsqrt.f32 %v88_v50  ;;  %vm116_vm2 = vweird.f32 %v274_v52  ;;  %vm97_vm7 = vmor %vm95_vm5, %vm96_vm3  ;;  %vm125_vm10 = vweird.f32 %v88_v50 }
 0x101   :  { %v91_v55 = vmul.f32 %v272_v49, %v90_v53  ;;  %277 = vrsqrt.f32 %v86_v51  ;;  %vm117_vm6 = vmor %vm115_vm4, %vm116_vm2  ;;  %vm105_vm12 = vweird.f32 %v86_v51 }
 0x102   :  { %v111_v56 = vmul.f32 %v274_v52, %v110_v54 }
 0x103   :  { %v92_v57 = vmul.f32 0.5, %v91_v55 }
 0x104   :  { %v112_v58 = vmul.f32 0.5, %v111_v56 }
 0x105   :  { %v93_v59 = vsub.f32 1.5, %v92_v57 }
 0x106   :  { %v276_v60 = vpop.eup %275  ;;  %v113_v61 = vsub.f32 1.5, %v112_v58 }
 0x107   :  { %v278_v62 = vpop.eup %277  ;;  %v120_v63 = vmul.f32 %v276_v60, %v88_v50  ;;  %v94_v0 = vmul.f32 %v272_v49, %v93_v59  ;;  %vm126_vm8 = vweird.f32 %v276_v60 }
 0x108   :  { %v114_v1 = vmul.f32 %v274_v52, %v113_v61  ;;  %v100_v2 = vmul.f32 %v278_v62, %v86_v51  ;;  %vm106_vm9 = vweird.f32 %v278_v62  ;;  %vm127_vm11 = vmor %vm125_vm10, %vm126_vm8 }
 0x109   :  { %v121_v3 = vmul.f32 %v276_v60, %v120_v63  ;;  %v98_v7 = vsel %vm97_vm7, %v272_v49, %v94_v0  ;;  %vm107_vm13 = vmor %vm105_vm12, %vm106_vm9 }
 0x10a   :  { %v101_v4 = vmul.f32 %v278_v62, %v100_v2  ;;  %v118_v5 = vsel %vm117_vm6, %v274_v52, %v114_v1  ;;  %v129_v13 = vmul.f32 %v98_v7, %v322_v22 }
 0x10b   :  { %v122_v6 = vmul.f32 0.5, %v121_v3  ;;  %v131_v10 = vmul.f32 %v118_v5, %v320_v21 }
 0x10c   :  { %v102_v8 = vmul.f32 0.5, %v101_v4  ;;  %v137_v23 = vmul.f32 %v266_v12, %v129_v13 }
 0x10d   :  { %v123_v9 = vsub.f32 1.5, %v122_v6  ;;  %v139_v20 = vmul.f32 %v266_v12, %v131_v10 }
 0x10e   :  { %v103_v11 = vsub.f32 1.5, %v102_v8  ;;  %v145_v27 = vadd.f32 %v267_v19, %v137_v23 }
 0x10f   :  { %v124_v14 = vmul.f32 %v276_v60, %v123_v9  ;;  %v147_v25 = vadd.f32 %v267_v19, %v139_v20 }
 0x110   :  { %v104_v15 = vmul.f32 %v278_v62, %v103_v11 }
 0x111   :  { %v128_v16 = vsel %vm127_vm11, %v276_v60, %v124_v14 }
 0x112   :  { %v132_v17 = vmul.f32 %v128_v16, %v330_v31  ;;  %v108_v18 = vsel %vm107_vm13, %v278_v62, %v104_v15 }
 0x113   :  { %v130_v21 = vmul.f32 %v108_v18, %v332_v32 }
 0x114   :  { %v140_v24 = vmul.f32 %v266_v12, %v132_v17 }
 0x115   :  { %v138_v22 = vmul.f32 %v266_v12, %v130_v21 }
 0x116   :  { %v148_v26 = vadd.f32 %v267_v19, %v140_v24 }
 0x117   :  { %v146_v28 = vadd.f32 %v267_v19, %v138_v22 }
 0x118   :  { %v150_v29 = vpack.c.bf16 %v148_v26, %v147_v25 }
 0x119   :  { %v149_v30 = vpack.c.bf16 %v146_v28, %v145_v27 }
 0x11a   :  { %240 = vmatmul.msk.bf16.vlgmr.msra.gmra.mxu1 %vm37_vm0, %v150_v29 }
 0x11b   :  { %239 = vmatmul.msk.bf16.vlgmr.msra.gmra.mxu0 %vm37_vm0, %v149_v30 }
 0x197   :  { %v191_v31 = vpop.f32.mrf.mxu1 }
 0x198   :  { %v186_v33 = vpop.f32.mrf.mxu0  ;;  %v217_v35 = vadd.f32 %v268_v34, %v191_v31 }
 0x199   :  { %v215_v38 = vadd.f32 %v268_v34, %v186_v33 }
 0x19f   :  { %v193_v32 = vpop.f32.mrf.mxu1 }
 0x1a0   :  { %v188_v36 = vpop.f32.mrf.mxu0  ;;  %v218_v37 = vadd.f32 %v268_v34, %v193_v32 }
 0x1a1   :  { %v216_v39 = vadd.f32 %v268_v34, %v188_v36 }
 0x1a2   :  { %v259_v40 = vpack.c.bf16 %v218_v37, %v217_v35 }
 0x1a3   :  { %v254_v41 = vpack.c.bf16 %v216_v39, %v215_v38 }
 0x1a4   :  { %262 = vst [vmem:[%s372_s5 + $0x8] sm:$0xff] %v259_v40  }
 0x1a5   :  { %255 = vst [vmem:[%s372_s5] sm:$0xff] %v254_v41  }

// kernel: mix_transformer_stage_forward.28
= control target key start
LH: loop header
LB: loop body
LE: loop exit
PB: predicated region body
PF: predicated region fallthrough
CT: control target
= control target key end

     0   :  { %s655_s12 = smov 0   ;;  %s657_s13 = smov 0   ;;  %s771_s0 = inlined_call_operand.vmem [shape: bf16[2,6,6,128], index: 0, kind: input, shape index: {}]   ;;  %s772_s1 = inlined_call_operand.vmem [shape: f32[3,3,128], index: 1, kind: input, shape index: {}]   ;;  %s773_s2 = inlined_call_operand.vmem [shape: f32[1,128], index: 2, kind: input, shape index: {}]   ;;  %s774_s3 = inlined_call_operand.vmem [shape: bf16[2,4,4,128], index: 3, kind: output, shape index: {}]  }
   0x1   :  { %s659_s14 = smov 0  }
   0x2 LB: > { %s25_s15 = sadd.s32 1, %s629_s13  ;;  %p570_p0 = scmp.ge.s32.totalorder %s633_s14, 1  ;;  %s633_s14 = sphi %s659_s14, %s13_s14   ;;  %s629_s13 = sphi %s657_s13, %s776_s13   ;;  %s625_s12 = sphi %s655_s12, %s775_s12  }
   0x3   : > { %p27_p1 = scmp.ge.s32.totalorder %s25_s15, 2  ;;  %p173_p2 = scmp.lt.s32.totalorder %s633_s14, 3 }
   0x5   : > { %s778_s15 = smov (%p27_p1, %s25_s15), 0  ;;  %p174_p3 = pnand %p570_p0, %p173_p2 }
   0x6   : > { %p210_p4 = scmp.lt.s32.totalorder (!%p174_p3), %s625_s12, 1 }
   0x7   : > { %177 = sbr.rel (%p174_p3) target bundleno = 79 (0x4f), region = 32 }
   0xc   : > { %s780_s12 = smov (!%p210_p4, %s625_s12), 1  ;;  %v239_v0 = vld [vmem:[%s772_s1] sm:$0x7]  ;;  %v240_v1 = vld [vmem:[%s772_s1 + $0x4] sm:$0x7] }
   0xd   : > { %s577_s20 = smul.u32 24, %s780_s12  ;;  %v241_v2 = vld [vmem:[%s772_s1 + $0x8] sm:$0x7]  ;;  %v688_v3 = vperm.slane %v239_v0, 0  ;;  %v690_v4 = vperm.slane %v239_v0, 1  ;;  %v692_v5 = vperm.slane %v239_v0, 2 }
   0xe   : > { %v694_v6 = vperm.slane %v240_v1, 1  ;;  %v696_v12 = vperm.slane %v240_v1, 2  ;;  %v698_v13 = vperm.slane %v241_v2, 1  ;;  %v700_v15 = vperm.slane %v240_v1, 0  ;;  %s576_s28 = sshll.u32 %s780_s12, 3 }
   0xf   : > { %s217_s25 = scalar_lea.vmem %s771_s0, %s577_s20  ;;  %v702_v16 = vperm.slane %v241_v2, 2  ;;  %v708_v25 = vperm.slane %v241_v2, 0  ;;  %s232_s4 = scalar_lea.vmem %s774_s3, %s576_s28 }
  0x10   : > { %v233_v7 = vld [vmem:[%s217_s25] sm:$0x7]  ;;  %v234_v8 = vld [vmem:[%s217_s25 + $0x4] sm:$0x7]  ;;  %v235_v9 = vld [vmem:[%s217_s25 + $0x8] sm:$0x7] }
  0x11   : > { %v236_v10 = vld [vmem:[%s217_s25 + $0xc] sm:$0x7]  ;;  %v243_v11 = vunpack.c.l.bf16 %v233_v7  ;;  %v244_v14 = vunpack.c.l.bf16 %v234_v8  ;;  %v237_v17 = vld [vmem:[%s217_s25 + $0x10] sm:$0x7]  ;;  %v238_v18 = vld [vmem:[%s217_s25 + $0x14] sm:$0x7]  ;;  %v245_v19 = vunpack.c.l.bf16 %v235_v9 }
  0x12   : > { %v246_v23 = vunpack.c.l.bf16 %v236_v10  ;;  %v712_v30 = vunpack.c.l.bf16 %v237_v17  ;;  %v714_v31 = vunpack.c.l.bf16 %v238_v18 }
  0x13   : > { %v250_v20 = vmul.f32 %v688_v3, %v243_v11  ;;  %v259_v21 = vmul.f32 %v690_v4, %v243_v11  ;;  %v280_v22 = vmul.f32 %v692_v5, %v243_v11  ;;  %v310_v24 = vmul.f32 %v694_v6, %v244_v14 }
  0x14   : > { %v331_v28 = vmul.f32 %v696_v12, %v244_v14  ;;  %v361_v29 = vmul.f32 %v698_v13, %v245_v19  ;;  %v251_v32 = vmul.f32 %v688_v3, %v244_v14  ;;  %v260_v33 = vmul.f32 %v690_v4, %v244_v14 }
  0x15   : > { %v267_v26 = vrot.slane %v259_v21, 1  ;;  %v288_v27 = vrot.slane %v280_v22, 2  ;;  %v301_v35 = vmul.f32 %v700_v15, %v244_v14  ;;  %v382_v36 = vmul.f32 %v702_v16, %v245_v19 }
  0x16   : > { %v281_v37 = vmul.f32 %v692_v5, %v244_v14  ;;  %v318_v38 = vrot.slane %v310_v24, 1  ;;  %v352_v39 = vmul.f32 %v708_v25, %v245_v19  ;;  %v268_v40 = vrot.slane %v260_v33, 1 }
  0x17   : > { %v275_v34 = vadd.f32 %v267_v26, %v250_v20  ;;  %v311_v41 = vmul.f32 %v694_v6, %v245_v19  ;;  %v339_v43 = vrot.slane %v331_v28, 2  ;;  %v369_v44 = vrot.slane %v361_v29, 1 }
  0x18   : > { %v289_v45 = vrot.slane %v281_v37, 2  ;;  %v276_v46 = vadd.f32 %v268_v40, %v251_v32  ;;  %v302_v47 = vmul.f32 %v700_v15, %v245_v19  ;;  %v332_v48 = vmul.f32 %v696_v12, %v245_v19 }
  0x19   : > { %v296_v42 = vadd.f32 %v288_v27, %v275_v34  ;;  %v362_v49 = vmul.f32 %v698_v13, %v246_v23  ;;  %v390_v51 = vrot.slane %v382_v36, 2  ;;  %v252_v52 = vmul.f32 %v688_v3, %v245_v19 }
  0x1a   : > { %v261_v53 = vmul.f32 %v690_v4, %v245_v19  ;;  %v297_v54 = vadd.f32 %v289_v45, %v276_v46  ;;  %v319_v55 = vrot.slane %v311_v41, 1  ;;  %v383_v56 = vmul.f32 %v702_v16, %v246_v23 }
  0x1b   : > { %v305_v50 = vadd.f32 %v301_v35, %v296_v42  ;;  %v282_v57 = vmul.f32 %v692_v5, %v245_v19  ;;  %v353_v59 = vmul.f32 %v708_v25, %v246_v23  ;;  %v312_v61 = vmul.f32 %v694_v6, %v246_v23 }
  0x1c   : > { %v269_v60 = vrot.slane %v261_v53, 1  ;;  %v306_v62 = vadd.f32 %v302_v47, %v297_v54  ;;  %v340_v63 = vrot.slane %v332_v48, 2  ;;  %v370_v0 = vrot.slane %v362_v49, 1 }
  0x1d   : > { %v326_v58 = vadd.f32 %v318_v38, %v305_v50  ;;  %v290_v1 = vrot.slane %v282_v57, 2  ;;  %v303_v8 = vmul.f32 %v700_v15, %v246_v23  ;;  %v333_v9 = vmul.f32 %v696_v12, %v246_v23 }
  0x1e   : > { %v277_v7 = vadd.f32 %v269_v60, %v252_v52  ;;  %v327_v10 = vadd.f32 %v319_v55, %v306_v62  ;;  %v391_v11 = vrot.slane %v383_v56, 2  ;;  %v253_v14 = vmul.f32 %v688_v3, %v246_v23  ;;  %v602_v3 = vld [vmem:[%s773_s2] ss:$0 sm:$0xff] }
  0x1f   : > { %v347_v2 = vadd.f32 %v339_v43, %v326_v58  ;;  %v262_v17 = vmul.f32 %v690_v4, %v246_v23  ;;  %v320_v20 = vrot.slane %v312_v61, 1  ;;  %v283_v21 = vmul.f32 %v692_v5, %v246_v23 }
  0x20   : > { %v298_v19 = vadd.f32 %v290_v1, %v277_v7  ;;  %v348_v22 = vadd.f32 %v340_v63, %v327_v10  ;;  %v363_v24 = vmul.f32 %v698_v13, %v712_v30  ;;  %v313_v27 = vmul.f32 %v694_v6, %v712_v30 }
  0x21   : > { %v356_v18 = vadd.f32 %v352_v39, %v347_v2  ;;  %v270_v26 = vrot.slane %v262_v17, 1  ;;  %v341_v4 = vrot.slane %v333_v9, 2  ;;  %v291_v32 = vrot.slane %v283_v21, 2 }
  0x22   : > { %v307_v29 = vadd.f32 %v303_v8, %v298_v19  ;;  %v357_v33 = vadd.f32 %v353_v59, %v348_v22  ;;  %v304_v5 = vmul.f32 %v700_v15, %v712_v30  ;;  %v334_v23 = vmul.f32 %v696_v12, %v712_v30 }
  0x23   : > { %v377_v28 = vadd.f32 %v369_v44, %v356_v18  ;;  %v278_v34 = vadd.f32 %v270_v26, %v253_v14  ;;  %v354_v6 = vmul.f32 %v708_v25, %v712_v30  ;;  %v384_v37 = vmul.f32 %v702_v16, %v712_v30 }
  0x24   : > { %v328_v36 = vadd.f32 %v320_v20, %v307_v29  ;;  %v378_v38 = vadd.f32 %v370_v0, %v357_v33  ;;  %v321_v40 = vrot.slane %v313_v27, 1  ;;  %v371_v43 = vrot.slane %v363_v24, 1 }
  0x25   : > { %v398_v35 = vadd.f32 %v390_v51, %v377_v28  ;;  %v299_v39 = vadd.f32 %v291_v32, %v278_v34  ;;  %v342_v15 = vrot.slane %v334_v23, 2  ;;  %v364_v12 = vmul.f32 %v698_v13, %v714_v31 }
  0x26   : > { %v349_v42 = vadd.f32 %v341_v4, %v328_v36  ;;  %v399_v44 = vadd.f32 %v391_v11, %v378_v38  ;;  %v392_v48 = vrot.slane %v384_v37, 2  ;;  %v355_v30 = vmul.f32 %v708_v25, %v714_v31 }
  0x27   : > { %v405_v41 = vadd.f32 %v602_v3, %v398_v35  ;;  %v308_v45 = vadd.f32 %v304_v5, %v299_v39  ;;  %v385_v51 = vmul.f32 %v702_v16, %v714_v31  ;;  %v372_v56 = vrot.slane %v364_v12, 1 }
  0x28   : > { %v358_v47 = vadd.f32 %v354_v6, %v349_v42  ;;  %v406_v49 = vadd.f32 %v602_v3, %v399_v44 }
  0x29   : > { %v409_v46 = vmul.f32 %v405_v41, %v405_v41  ;;  %v329_v50 = vadd.f32 %v321_v40, %v308_v45  ;;  %v393_v60 = vrot.slane %v385_v51, 2 }
  0x2a   : > { %v379_v53 = vadd.f32 %v371_v43, %v358_v47  ;;  %v410_v54 = vmul.f32 %v406_v49, %v406_v49 }
  0x2b   : > { %v413_v52 = vmul.f32 %v409_v46, %v405_v41  ;;  %v350_v55 = vadd.f32 %v342_v15, %v329_v50 }
  0x2c   : > { %v400_v58 = vadd.f32 %v392_v48, %v379_v53  ;;  %v414_v59 = vmul.f32 %v410_v54, %v406_v49 }
  0x2d   : > { %v417_v57 = vmul.f32 0.044715, %v413_v52  ;;  %v359_v13 = vadd.f32 %v355_v30, %v350_v55 }
  0x2e   : > { %v407_v62 = vadd.f32 %v602_v3, %v400_v58  ;;  %v418_v63 = vmul.f32 0.044715, %v414_v59 }
  0x2f   : > { %v421_v61 = vadd.f32 %v417_v57, %v405_v41  ;;  %v380_v0 = vadd.f32 %v372_v56, %v359_v13 }
  0x30   : > { %v411_v2 = vmul.f32 %v407_v62, %v407_v62  ;;  %v422_v25 = vadd.f32 %v418_v63, %v406_v49 }
  0x31   : > { %v425_v1 = vmul.f32 0.7978846, %v421_v61  ;;  %v401_v7 = vadd.f32 %v393_v60, %v380_v0 }
  0x32   : > { %v415_v16 = vmul.f32 %v411_v2, %v407_v62  ;;  %v426_v31 = vmul.f32 0.7978846, %v422_v25 }
  0x33   : > { %603 = vtanh.f32 %v425_v1  ;;  %v408_v8 = vadd.f32 %v602_v3, %v401_v7 }
  0x34   : > { %v419_v9 = vmul.f32 0.044715, %v415_v16  ;;  %605 = vtanh.f32 %v426_v31 }
  0x35   : > { %v412_v10 = vmul.f32 %v408_v8, %v408_v8 }
  0x36   : > { %v423_v11 = vadd.f32 %v419_v9, %v407_v62 }
  0x37   : > { %v416_v14 = vmul.f32 %v412_v10, %v408_v8 }
  0x38   : > { %v427_v18 = vmul.f32 0.7978846, %v423_v11 }
  0x39   : > { %v604_v17 = vpop.eup %603  ;;  %v420_v20 = vmul.f32 0.044715, %v416_v14 }
  0x3a   : > { %v433_v19 = vadd.f32 1.0, %v604_v17  ;;  %607 = vtanh.f32 %v427_v18  ;;  %v606_v21 = vpop.eup %605 }
  0x3b   : > { %v424_v24 = vadd.f32 %v420_v20, %v408_v8  ;;  %v434_v26 = vadd.f32 1.0, %v606_v21 }
  0x3c   : > { %v437_v22 = vmul.f32 0.5, %v433_v19 }
  0x3d   : > { %v428_v28 = vmul.f32 0.7978846, %v424_v24  ;;  %v438_v3 = vmul.f32 0.5, %v434_v26 }
  0x3e   : > { %v441_v27 = vmul.f32 %v437_v22, %v405_v41 }
  0x3f   : > { %609 = vtanh.f32 %v428_v28  ;;  %v442_v32 = vmul.f32 %v438_v3, %v406_v49 }
  0x40   : > { %v445_v29 = vpack.c.bf16 %v441_v27, %v441_v27  ;;  %v608_v4 = vpop.eup %607 }
  0x41   : > { %v435_v33 = vadd.f32 1.0, %v608_v4  ;;  %v446_v34 = vpack.c.bf16 %v442_v32, %v442_v32 }
  0x42   : > { %449 = vst [vmem:[%s232_s4] sm:$0x3] %v445_v29 }
  0x43   : > { %v439_v5 = vmul.f32 0.5, %v435_v33  ;;  %450 = vst [vmem:[%s232_s4 + $0x2] sm:$0x3] %v446_v34 }
  0x45   : > { %v610_v23 = vpop.eup %609  ;;  %v443_v35 = vmul.f32 %v439_v5, %v407_v62 }
  0x46   : > { %v436_v36 = vadd.f32 1.0, %v610_v23 }
  0x47   : > { %v447_v6 = vpack.c.bf16 %v443_v35, %v443_v35 }
  0x48   : > { %v440_v37 = vmul.f32 0.5, %v436_v36 }
  0x49   : > { %451 = vst [vmem:[%s232_s4 + $0x4] sm:$0x3] %v447_v6 }
  0x4a   : > { %v444_v38 = vmul.f32 %v440_v37, %v408_v8 }
  0x4c   : > { %v448_v39 = vpack.c.bf16 %v444_v38, %v444_v38 }
  0x4e   : > { %452 = vst [vmem:[%s232_s4 + $0x6] sm:$0x3] %v448_v39 }
  0x4f PF: > { %s13_s14 = sadd.s32 1, %s633_s14   ;;  %s775_s12 = smov %s629_s13 }
  0x50   : > { %p10_p5 = scmp.ge.s32.totalorder %s13_s14, 4   ;;  %s776_s13 = smov %s778_s15 }
  0x52   :  { %12 = sbr.rel (!%p10_p5) target bundleno = 2 (0x2), region = 68 }

// kernel: mix_transformer_stage_forward.39
= control target key start
LH: loop header
LB: loop body
LE: loop exit
PB: predicated region body
PF: predicated region fallthrough
CT: control target
= control target key end

     0   :  { %vm23_vm0 = vcmask 261120   ;;  %s274_s0 = inlined_call_operand.vmem [shape: bf16[32,32], index: 0, kind: input, shape index: {}]   ;;  %s275_s1 = inlined_call_operand.vmem [shape: f32[1,32], index: 1, kind: input, shape index: {}]   ;;  %s276_s2 = inlined_call_operand.vmem [shape: f32[1,32], index: 2, kind: input, shape index: {}]   ;;  %s277_s3 = inlined_call_operand.hbm [shape: f32[32,32], index: 3, kind: output, shape index: {}]  }
   0x1   :  { %v165_v0 = vld [vmem:[%s274_s0 + $0x8] sm:$0xff]   ;;  %v158_v1 = vld [vmem:[%s274_s0] sm:$0xff]  }
   0x2   :  { %v163_v2 = vunpack.c.l.bf16 %v165_v0  ;;  %v159_v3 = vunpack.c.l.bf16 %v158_v1 }
   0x3   :  { %8 = vsyncpa [#allocation3], 0  ;;  %v164_v6 = vunpack.c.h.bf16 %v165_v0  ;;  %v160_v7 = vunpack.c.h.bf16 %v158_v1  ;;  %v208_v10 = vmov 32.0   ;;  %v170_v63 = vld [vmem:[%s275_s1] ss:$0 sm:$0xff]  ;;  %s209_s1 = smov [#allocation2]  }
   0x4   :  { %v30_v4 = vsel %vm23_vm0, %v163_v2, 0.0  ;;  %v24_v5 = vsel %vm23_vm0, %v159_v3, 0.0  ;;  %172 = vrcp.f32 %v208_v10  ;;  %s145_s21 = sshll.u32 %s277_s3, 4  ;;  %s210_s22 = smov 128   ;;  %s146_s21 = int_to_ptr.hbm [resolvable:$true] %s145_s21 }
   0x5   :  { %31 = vadd.xlane.f32.xlu1 %v30_v4  ;;  %25 = vadd.xlane.f32.xlu0 %v24_v5  ;;  %v33_v8 = vsel %vm23_vm0, %v164_v6, 0.0  ;;  %v27_v9 = vsel %vm23_vm0, %v160_v7, 0.0  ;;  %v171_v4 = vld [vmem:[%s276_s2] ss:$0 sm:$0xff]  ;;  %s143_s2 = sshll.u32 %s209_s1, 4  ;;  %s211_s23 = smov 8   ;;  %s144_s2 = int_to_ptr.vmem [resolvable:$true] %s143_s2 }
   0xa   :  { %v173_v11 = vpop.eup %172 }
   0xb   :  { %v37_v12 = vmul.f32 32.0, %v173_v11  ;;  %vm41_vm1 = vweird.f32 %v173_v11 }
   0xd   :  { %34 = vadd.xlane.f32.xlu1 %v33_v8  ;;  %28 = vadd.xlane.f32.xlu0 %v27_v9  ;;  %v38_v13 = vsub.f32 1.0, %v37_v12 }
   0xf   :  { %v39_v14 = vmul.f32 %v173_v11, %v38_v13 }
  0x11   :  { %v40_v15 = vadd.f32 %v173_v11, %v39_v14 }
  0x13   :  { %v42_v16 = vsel %vm41_vm1, %v173_v11, %v40_v15 }
  0x78   :  { %v32_v17 = vpop.xlane.xlu1 %31  ;;  %v26_v18 = vpop.xlane.xlu0 %25 }
  0x79   :  { %v45_v19 = vmul.f32 %v42_v16, %v32_v17  ;;  %v43_v20 = vmul.f32 %v42_v16, %v26_v18 }
  0x7b   :  { %v242_v21 = vsub.f32 %v163_v2, %v45_v19  ;;  %v47_v22 = vsub.f32 %v159_v3, %v43_v20 }
  0x7d   :  { %v53_v23 = vmul.f32 %v242_v21, %v242_v21  ;;  %v51_v24 = vmul.f32 %v47_v22, %v47_v22 }
  0x7f   :  { %v61_v25 = vsel %vm23_vm0, %v53_v23, 0.0  ;;  %v55_v26 = vsel %vm23_vm0, %v51_v24, 0.0 }
  0x80   :  { %v35_v27 = vpop.xlane.xlu1 %34  ;;  %62 = vadd.xlane.f32.xlu0 %v61_v25  ;;  %56 = vadd.xlane.f32.xlu2 %v55_v26  ;;  %v29_v28 = vpop.xlane.xlu0 %28 }
  0x81   :  { %v46_v29 = vmul.f32 %v42_v16, %v35_v27  ;;  %v44_v30 = vmul.f32 %v42_v16, %v29_v28 }
  0x83   :  { %v248_v31 = vsub.f32 %v164_v6, %v46_v29  ;;  %v250_v32 = vsub.f32 %v160_v7, %v44_v30 }
  0x85   :  { %v54_v33 = vmul.f32 %v248_v31, %v248_v31  ;;  %v52_v34 = vmul.f32 %v250_v32, %v250_v32 }
  0x87   :  { %v64_v35 = vsel %vm23_vm0, %v54_v33, 0.0  ;;  %v58_v36 = vsel %vm23_vm0, %v52_v34, 0.0 }
  0x88   :  { %65 = vadd.xlane.f32.xlu1 %v64_v35  ;;  %59 = vadd.xlane.f32.xlu2 %v58_v36 }
  0xf3   :  { %v57_v37 = vpop.xlane.xlu2 %56  ;;  %v63_v38 = vpop.xlane.xlu0 %62 }
  0xf4   :  { %v67_v39 = vmul.f32 %v57_v37, %v42_v16  ;;  %v69_v40 = vmul.f32 %v63_v38, %v42_v16 }
  0xf6   :  { %v71_v41 = vadd.f32 1e-06, %v67_v39  ;;  %v73_v42 = vadd.f32 1e-06, %v69_v40 }
  0xf8   :  { %174 = vrsqrt.f32 %v71_v41  ;;  %vm81_vm4 = vweird.f32 %v71_v41  ;;  %vm101_vm6 = vweird.f32 %v73_v42 }
  0xf9   :  { %176 = vrsqrt.f32 %v73_v42 }
  0xfb   :  { %v66_v43 = vpop.xlane.xlu1 %65  ;;  %v60_v44 = vpop.xlane.xlu2 %59 }
  0xfc   :  { %v70_v45 = vmul.f32 %v66_v43, %v42_v16  ;;  %v68_v46 = vmul.f32 %v60_v44, %v42_v16 }
  0xfe   :  { %v175_v47 = vpop.eup %174  ;;  %v74_v48 = vadd.f32 1e-06, %v70_v45  ;;  %v72_v49 = vadd.f32 1e-06, %v68_v46 }
  0xff   :  { %v177_v50 = vpop.eup %176  ;;  %v76_v51 = vmul.f32 %v175_v47, %v71_v41  ;;  %vm82_vm2 = vweird.f32 %v175_v47 }
 0x100   :  { %v96_v52 = vmul.f32 %v177_v50, %v73_v42  ;;  %178 = vrsqrt.f32 %v74_v48  ;;  %vm102_vm3 = vweird.f32 %v177_v50  ;;  %vm83_vm5 = vmor %vm81_vm4, %vm82_vm2  ;;  %vm111_vm10 = vweird.f32 %v74_v48 }
 0x101   :  { %v77_v53 = vmul.f32 %v175_v47, %v76_v51  ;;  %180 = vrsqrt.f32 %v72_v49  ;;  %vm103_vm7 = vmor %vm101_vm6, %vm102_vm3  ;;  %vm91_vm12 = vweird.f32 %v72_v49 }
 0x102   :  { %v97_v54 = vmul.f32 %v177_v50, %v96_v52 }
 0x103   :  { %v78_v55 = vmul.f32 0.5, %v77_v53 }
 0x104   :  { %v98_v56 = vmul.f32 0.5, %v97_v54 }
 0x105   :  { %v79_v57 = vsub.f32 1.5, %v78_v55 }
 0x106   :  { %v179_v58 = vpop.eup %178  ;;  %v99_v59 = vsub.f32 1.5, %v98_v56 }
 0x107   :  { %v181_v60 = vpop.eup %180  ;;  %v80_v61 = vmul.f32 %v175_v47, %v79_v57  ;;  %v106_v62 = vmul.f32 %v179_v58, %v74_v48  ;;  %vm112_vm8 = vweird.f32 %v179_v58 }
 0x108   :  { %v100_v0 = vmul.f32 %v177_v50, %v99_v59  ;;  %v86_v1 = vmul.f32 %v181_v60, %v72_v49  ;;  %vm92_vm9 = vweird.f32 %v181_v60  ;;  %vm113_vm11 = vmor %vm111_vm10, %vm112_vm8 }
 0x109   :  { %v84_v2 = vsel %vm83_vm5, %v175_v47, %v80_v61  ;;  %v107_v3 = vmul.f32 %v179_v58, %v106_v62  ;;  %vm93_vm13 = vmor %vm91_vm12, %vm92_vm9 }
 0x10a   :  { %v115_v5 = vmul.f32 %v84_v2, %v47_v22  ;;  %v104_v6 = vsel %vm103_vm7, %v177_v50, %v100_v0  ;;  %v87_v7 = vmul.f32 %v181_v60, %v86_v1 }
 0x10b   :  { %v117_v8 = vmul.f32 %v104_v6, %v242_v21  ;;  %v108_v9 = vmul.f32 0.5, %v107_v3 }
 0x10c   :  { %v123_v10 = vmul.f32 %v170_v63, %v115_v5  ;;  %v88_v11 = vmul.f32 0.5, %v87_v7 }
 0x10d   :  { %v125_v12 = vmul.f32 %v170_v63, %v117_v8  ;;  %v109_v13 = vsub.f32 1.5, %v108_v9 }
 0x10e   :  { %v131_v14 = vadd.f32 %v171_v4, %v123_v10  ;;  %v89_v15 = vsub.f32 1.5, %v88_v11 }
 0x10f   :  { %v133_v16 = vadd.f32 %v171_v4, %v125_v12  ;;  %v110_v17 = vmul.f32 %v179_v58, %v109_v13 }
 0x110   :  { %135 = vst.msk [vmem:[#allocation2] sm:$0xff] %vm23_vm0, %v131_v14  ;;  %v90_v18 = vmul.f32 %v181_v60, %v89_v15 }
 0x111   :  { %137 = vst.msk [vmem:[#allocation2 + $0x10] sm:$0xff] %vm23_vm0, %v133_v16  ;;  %v114_v19 = vsel %vm113_vm11, %v179_v58, %v110_v17 }
 0x112   :  { %v118_v20 = vmul.f32 %v114_v19, %v248_v31  ;;  %v94_v21 = vsel %vm93_vm13, %v181_v60, %v90_v18 }
 0x113   :  { %v116_v22 = vmul.f32 %v94_v21, %v250_v32 }
 0x114   :  { %v126_v23 = vmul.f32 %v170_v63, %v118_v20 }
 0x115   :  { %v124_v24 = vmul.f32 %v170_v63, %v116_v22 }
 0x116   :  { %v134_v25 = vadd.f32 %v171_v4, %v126_v23 }
 0x117   :  { %v132_v26 = vadd.f32 %v171_v4, %v124_v24 }
 0x118   :  { %138 = vst.msk [vmem:[#allocation2 + $0x18] sm:$0xff] %vm23_vm0, %v134_v25 }
 0x119   :  { %136 = vst.msk [vmem:[#allocation2 + $0x8] sm:$0xff] %vm23_vm0, %v132_v26 }
 0x11a   :  { %151 = dma.vmem_to_hbm [thread:$0]  %s144_s2, 512, %s146_s21, [#allocation3], %s210_s22, %s210_s22, %s211_s23  }
 0x11b   :  { %206 = dma.done.wait [#allocation3], 512  }
 0x11c   :  { %207 = vsyncadd [#allocation3], 4294966784 }
 0x11d   :  { %156 = vsyncpa [#allocation3], 1 }

// kernel: mix_transformer_stage_forward.29
= control target key start
LH: loop header
LB: loop body
LE: loop exit
PB: predicated region body
PF: predicated region fallthrough
CT: control target
= control target key end

     0   :  { %vm21_vm0 = vcmask 261120   ;;  %v247_v2 = vmov 0.0   ;;  %vm169_vm1 = vcmask 257024   ;;  %s336_s1 = inlined_call_operand.vmem [shape: bf16[128,32], index: 1, kind: input, shape index: {}]   ;;  %s337_s2 = inlined_call_operand.vmem [shape: f32[1,32], index: 2, kind: input, shape index: {}]   ;;  %s338_s0 = inlined_call_operand.vmem [shape: bf16[32,128], index: 0, kind: input, shape index: {}]   ;;  %s339_s3 = inlined_call_operand.vmem [shape: bf16[32,32], index: 3, kind: input, shape index: {}]   ;;  %s340_s4 = inlined_call_operand.vmem [shape: bf16[32,32], index: 4, kind: output, shape index: {}]  }
   0x1   :  { %v227_v0 = vld [vmem:[%s336_s1 + $0x38] sm:$0xff]  ;;  %v226_v1 = vld [vmem:[%s336_s1 + $0x30] sm:$0xff]  ;;  %22 = vst.msk [vmem:[#allocation2] sm:$0xff] %vm21_vm0, %v247_v2  ;;  %v225_v3 = vld [vmem:[%s336_s1 + $0x28] sm:$0xff] }
   0x2   :  { %110 = vmatpush.bf16.msra.mxu0 %v227_v0  ;;  %237 = vmatpush.bf16.msra.mxu1 %v227_v0  ;;  %23 = vst.msk [vmem:[#allocation2 + $0x8] sm:$0xff] %vm21_vm0, %v247_v2  ;;  %v224_v4 = vld [vmem:[%s336_s1 + $0x20] sm:$0xff]  ;;  %v223_v5 = vld [vmem:[%s336_s1 + $0x18] sm:$0xff]  ;;  %v222_v6 = vld [vmem:[%s336_s1 + $0x10] sm:$0xff] }
   0x3   :  { %24 = vst.msk [vmem:[#allocation2 + $0x10] sm:$0xff] %vm21_vm0, %v247_v2  ;;  %v221_v7 = vld [vmem:[%s336_s1 + $0x8] sm:$0xff]  ;;  %v220_v8 = vld [vmem:[%s336_s1] sm:$0xff] }
   0x4   :  { %25 = vst.msk [vmem:[#allocation2 + $0x18] sm:$0xff] %vm21_vm0, %v247_v2  ;;  %v218_v9 = vld [vmem:[%s338_s0] sm:$0xff]  ;;  %v219_v10 = vld [vmem:[%s338_s0 + $0x8] sm:$0xff] }
   0x5   :  { %v229_v17 = vld [vmem:[%s339_s3] sm:$0xff]   ;;  %v236_v21 = vld [vmem:[%s339_s3 + $0x8] sm:$0xff]  }
   0x6   :  { %111 = vmatpush.bf16.msra.mxu0 %v226_v1  ;;  %238 = vmatpush.bf16.msra.mxu1 %v226_v1  ;;  %v246_v20 = vld [vmem:[%s337_s2] ss:$0 sm:$0xff]  ;;  %v230_v24 = vunpack.c.l.bf16 %v229_v17  ;;  %v234_v28 = vunpack.c.l.bf16 %v236_v21  ;;  %v231_v36 = vunpack.c.h.bf16 %v229_v17  ;;  %v235_v38 = vunpack.c.h.bf16 %v236_v21 }
   0x8   :  { %v30_v11 = vld [vmem:[#allocation2] sm:$0xff] }
   0x9   :  { %v31_v18 = vld [vmem:[#allocation2 + $0x8] sm:$0xff] }
   0xa   :  { %112 = vmatpush.bf16.msra.mxu0 %v225_v3  ;;  %239 = vmatpush.bf16.msra.mxu1 %v225_v3  ;;  %v32_v12 = vld [vmem:[#allocation2 + $0x10] sm:$0xff] }
   0xb   :  { %v33_v19 = vld [vmem:[#allocation2 + $0x18] sm:$0xff] }
   0xe   :  { %113 = vmatpush.bf16.msra.mxu0 %v224_v4  ;;  %240 = vmatpush.bf16.msra.mxu1 %v224_v4 }
  0x12   :  { %114 = vmatpush.bf16.msra.mxu0 %v223_v5  ;;  %241 = vmatpush.bf16.msra.mxu1 %v223_v5 }
  0x16   :  { %115 = vmatpush.bf16.msra.mxu0 %v222_v6  ;;  %242 = vmatpush.bf16.msra.mxu1 %v222_v6 }
  0x1a   :  { %116 = vmatpush.bf16.msra.mxu0 %v221_v7  ;;  %243 = vmatpush.bf16.msra.mxu1 %v221_v7 }
  0x1e   :  { %117 = vmatpush.bf16.msra.mxu0 %v220_v8  ;;  %244 = vmatpush.bf16.msra.mxu1 %v220_v8 }
  0x21   :  { %118 = vmatmul.bf16.vlgmr.msra.gmra.mxu0 %v218_v9  ;;  %123 = vmatmul.bf16.vlgmr.msra.gmra.mxu1 %v219_v10 }
  0x9e   :  { %v119_v13 = vpop.f32.mrf.mxu0  ;;  %v124_v14 = vpop.f32.mrf.mxu1 }
  0x9f   :  { %v129_v15 = vadd.f32 %v119_v13, %v30_v11  ;;  %v131_v16 = vadd.f32 %v124_v14, %v32_v12 }
  0xa1   :  { %134 = vst.msk [vmem:[#allocation2] sm:$0xff] %vm21_vm0, %v129_v15 }
  0xa2   :  { %136 = vst.msk [vmem:[#allocation2 + $0x10] sm:$0xff] %vm21_vm0, %v131_v16 }
  0xa6   :  { %v121_v22 = vpop.f32.mrf.mxu0  ;;  %v126_v23 = vpop.f32.mrf.mxu1 }
  0xa7   :  { %v130_v25 = vadd.f32 %v121_v22, %v31_v18  ;;  %v132_v26 = vadd.f32 %v126_v23, %v33_v19 }
  0xa8   :  { %v141_v27 = vld [vmem:[#allocation2] sm:$0xff] }
  0xa9   :  { %v149_v29 = vadd.f32 %v246_v20, %v141_v27  ;;  %v143_v30 = vld [vmem:[#allocation2 + $0x10] sm:$0xff]  ;;  %135 = vst.msk [vmem:[#allocation2 + $0x8] sm:$0xff] %vm21_vm0, %v130_v25 }
  0xaa   :  { %v151_v31 = vadd.f32 %v246_v20, %v143_v30  ;;  %137 = vst.msk [vmem:[#allocation2 + $0x18] sm:$0xff] %vm21_vm0, %v132_v26 }
  0xab   :  { %v161_v32 = vadd.f32 %v230_v24, %v149_v29 }
  0xac   :  { %v163_v33 = vadd.f32 %v234_v28, %v151_v31 }
  0xad   :  { %v165_v34 = vpack.c.bf16 %v161_v32, %v161_v32 }
  0xae   :  { %v167_v35 = vpack.c.bf16 %v163_v33, %v163_v33 }
  0xaf   :  { %170 = vst.msk [vmem:[%s340_s4] sm:$0xf] %vm169_vm1, %v165_v34 }
  0xb0   :  { %172 = vst.msk [vmem:[%s340_s4 + $0x8] sm:$0xf] %vm169_vm1, %v167_v35  ;;  %v142_v37 = vld [vmem:[#allocation2 + $0x8] sm:$0xff] }
  0xb1   :  { %v150_v39 = vadd.f32 %v246_v20, %v142_v37  ;;  %v144_v40 = vld [vmem:[#allocation2 + $0x18] sm:$0xff] }
  0xb2   :  { %v152_v41 = vadd.f32 %v246_v20, %v144_v40 }
  0xb3   :  { %v162_v42 = vadd.f32 %v231_v36, %v150_v39 }
  0xb4   :  { %v164_v43 = vadd.f32 %v235_v38, %v152_v41 }
  0xb5   :  { %v166_v44 = vpack.c.bf16 %v162_v42, %v162_v42 }
  0xb6   :  { %v168_v45 = vpack.c.bf16 %v164_v43, %v164_v43 }
  0xb7   :  { %171 = vst.msk [vmem:[%s340_s4 + $0x4] sm:$0xf] %vm169_vm1, %v166_v44 }
  0xb8   :  { %173 = vst.msk [vmem:[%s340_s4 + $0xc] sm:$0xf] %vm169_vm1, %v168_v45 }

</bundles_post_ra>
